<compile_context>
chip_gen: v6e
topology: v6e:2x2x1
jax: 0.10.0
libtpu: 0.0.40
codegen_flags: <defaults>
</compile_context>

<pallas_src>
import jax
import jax.numpy as jnp
from jax import lax
from jax.experimental import pallas as pl
from jax.experimental.pallas import tpu as pltpu


def _asyconv_kernel(x_ref, w_ref, b_ref, out_ref, xpad_ref):
    # x_ref:    (1, H, W, Cin)   bf16 input block for one batch element
    # w_ref:    (9*Cin, Cout)    bf16 fused conv weight, tap-major (dy, dx, cin)
    # b_ref:    (1, Cout)        f32 fused bias
    # out_ref:  (1, H*W, Cout)   f32 output block
    # xpad_ref: (H+2, W+2, Cin)  bf16 scratch holding the zero-padded image
    _, H, W, C = x_ref.shape

    # In-kernel zero padding: zero the scratch, then copy the interior.
    # (Zeroing every step keeps the halo correct regardless of how the
    # 'parallel' batch axis is split across TensorCores.)
    xpad_ref[...] = jnp.zeros_like(xpad_ref)
    xpad_ref[1:H + 1, 1:W + 1, :] = x_ref[0]

    # im2col: concatenate the 9 shifted taps along channels -> (H*W, 9*Cin).
    taps = []
    for dy in range(3):
        for dx in range(3):
            taps.append(xpad_ref[dy:dy + H, dx:dx + W, :].reshape(H * W, C))
    col = jnp.concatenate(taps, axis=1)                      # (H*W, 9*C) bf16

    # Single fused 3x3 conv as one MXU matmul, f32 accumulation.
    acc = jnp.dot(col, w_ref[...], preferred_element_type=jnp.float32)
    out_ref[0] = (acc + b_ref[...]).astype(out_ref.dtype)


def _fold_bn(bn, eps=1e-5):
    scale = bn["gamma"] / jnp.sqrt(bn["var"] + eps)
    shift = bn["beta"] - bn["mean"] * scale
    return scale, shift


def fuse_asyconv_params(params, eps=1e-5):
    """Fold the 3 conv+BN branches into one 3x3 HWIO conv weight + bias."""
    s_sq, b_sq = _fold_bn(params["bn_sq"], eps)
    s_v, b_v = _fold_bn(params["bn_ver"], eps)
    s_h, b_h = _fold_bn(params["bn_hor"], eps)
    w = params["w_sq"] * s_sq                                   # (3,3,Cin,Cout)
    w = w.at[:, 1, :, :].add(params["w_ver"][:, 0, :, :] * s_v)  # centre column
    w = w.at[1, :, :, :].add(params["w_hor"][0, :, :, :] * s_h)  # centre row
    bias = b_sq + b_v + b_h
    return w, bias


def asy_conv(x_nchw, params):
    """asyConv.forward (eval-mode BN, k=3 / stride=1 / padding=1). NCHW in/out."""
    # TODO(synk): stride>1, dilation>1, groups>1, padding<k//2 (CropLayer) and
    # training-mode (batch-statistics) BatchNorm are not implemented; only the
    # k=3, stride=1, padding=1, zeros-padding config used in mfnet is handled.
    # TODO(synk): for large H*W*C (v7x 64 MiB VMEM) add a spatial row-chunk
    # grid axis instead of one whole image per grid step.
    N, Cin, H, W = x_nchw.shape
    Cout = params["w_sq"].shape[-1]

    w_fused, bias = fuse_asyconv_params(params)
    # bf16 MXU operands; accumulation stays f32 inside the kernel.
    w9 = w_fused.reshape(9 * Cin, Cout).astype(jnp.bfloat16)
    bias = bias.reshape(1, Cout).astype(jnp.float32)
    x = jnp.transpose(x_nchw, (0, 2, 3, 1)).astype(jnp.bfloat16)   # NHWC bf16

    out = pl.pallas_call(
        _asyconv_kernel,
        out_shape=jax.ShapeDtypeStruct((N, H * W, Cout), jnp.float32),
        grid_spec=pltpu.PrefetchScalarGridSpec(
            num_scalar_prefetch=0,
            grid=(N,),
            in_specs=[
                pl.BlockSpec((1, H, W, Cin), lambda n: (n, 0, 0, 0)),
                pl.BlockSpec((9 * Cin, Cout), lambda n: (0, 0)),
                pl.BlockSpec((1, Cout), lambda n: (0, 0)),
            ],
            out_specs=pl.BlockSpec((1, H * W, Cout), lambda n: (n, 0, 0)),
            scratch_shapes=[pltpu.VMEM((H + 2, W + 2, Cin), jnp.bfloat16)],
        ),
        compiler_params=pltpu.CompilerParams(
            dimension_semantics=("parallel",),       # batch -> both TCs on v7x
            vmem_limit_bytes=64 * 1024 * 1024),
    )(x, w9, bias)

    out = out.reshape(N, H, W, Cout)
    return jnp.transpose(out, (0, 3, 1, 2))          # back to NCHW


def asy_conv_ref(x_nchw, params, eps=1e-5):
    """Pure-JAX reference: 3 conv branches + eval-mode BN, summed (f32)."""
    x = jnp.transpose(x_nchw, (0, 2, 3, 1)).astype(jnp.float32)
    dn = ("NHWC", "HWIO", "NHWC")
    hp = lax.Precision.HIGHEST

    def branch(w, pad, bn):
        y = lax.conv_general_dilated(x, w, (1, 1), pad,
                                     dimension_numbers=dn, precision=hp)
        s, b = _fold_bn(bn, eps)
        return y * s + b

    out = (branch(params["w_sq"], ((1, 1), (1, 1)), params["bn_sq"]) +
           branch(params["w_ver"], ((1, 1), (0, 0)), params["bn_ver"]) +
           branch(params["w_hor"], ((0, 0), (1, 1)), params["bn_hor"]))
    return jnp.transpose(out, (0, 3, 1, 2))


def make_params(key, Cin, Cout):
    ks = jax.random.split(key, 6)

    def bn_params(k):
        k1, k2, k3, k4 = jax.random.split(k, 4)
        return {
            "gamma": 0.5 + jax.random.uniform(k1, (Cout,), jnp.float32),
            "beta": 0.1 * jax.random.normal(k2, (Cout,), jnp.float32),
            "mean": 0.1 * jax.random.normal(k3, (Cout,), jnp.float32),
            "var": 0.5 + jax.random.uniform(k4, (Cout,), jnp.float32),
        }

    return {
        # Conv weights stored HWIO.
        "w_sq": 0.1 * jax.random.normal(ks[0], (3, 3, Cin, Cout), jnp.float32),
        "w_ver": 0.1 * jax.random.normal(ks[1], (3, 1, Cin, Cout), jnp.float32),
        "w_hor": 0.1 * jax.random.normal(ks[2], (1, 3, Cin, Cout), jnp.float32),
        "bn_sq": bn_params(ks[3]),
        "bn_ver": bn_params(ks[4]),
        "bn_hor": bn_params(ks[5]),
    }


if __name__ == "__main__":
    key = jax.random.PRNGKey(0)
    k_x, k_p = jax.random.split(key)

    N, Cin, Cout, H, W = 2, 16, 32, 16, 16
    x = jax.random.normal(k_x, (N, Cin, H, W), jnp.float32)
    params = make_params(k_p, Cin, Cout)

    out = jax.block_until_ready(asy_conv(x, params))
    ref = asy_conv_ref(x, params)

    assert out.shape == (N, Cout, H, W), out.shape
    err = float(jnp.max(jnp.abs(out - ref)))
    scale = float(jnp.max(jnp.abs(ref))) + 1e-6
    # bf16 conv operands with f32 accumulation: allow ~2.5% of output scale.
    assert err <= 2.5e-2 * scale, f"mismatch vs reference: {err} (scale={scale})"

    print("KERNEL_OK")
</pallas_src>

<mosaic_0001>
module attributes {stable_mosaic.version = 11 : i64} {
  func.func @_asyconv_kernel(%arg0: i32, %arg1: memref<1x16x16x16xbf16, #tpu.memory_space<vmem>>, %arg2: memref<144x32xbf16, #tpu.memory_space<vmem>>, %arg3: memref<1x32xf32, #tpu.memory_space<vmem>>, %arg4: memref<1x256x32xf32, #tpu.memory_space<vmem>>, %arg5: memref<18x18x16xbf16, #tpu.memory_space<vmem>>) attributes {dimension_semantics = [#tpu.dimension_semantics<parallel>], iteration_bounds = array<i64: 2>, scalar_prefetch = 0 : i64, scratch_operands = 1 : i64, tpu.core_type = #tpu.core_type<tc>, window_params = [{transform_indices = @transform_0, window_bounds = array<i64: 1, 16, 16, 16>}, {pipeline_mode = #tpu.pipeline_mode<synchronous>, transform_indices = @transform_1, window_bounds = array<i64: 144, 32>}, {pipeline_mode = #tpu.pipeline_mode<synchronous>, transform_indices = @transform_2, window_bounds = array<i64: 1, 32>}, {transform_indices = @transform_3, window_bounds = array<i64: 1, 256, 32>}]} {
    %cst = arith.constant 0.000000e+00 : bf16
    %0 = vector.broadcast %cst : bf16 to vector<18x18x16xbf16>
    %c0 = arith.constant 0 : index
    %c0_0 = arith.constant 0 : index
    %c0_1 = arith.constant 0 : index
    %1 = vector.load %arg5[%c0, %c0_0, %c0_1] : memref<18x18x16xbf16, #tpu.memory_space<vmem>>, vector<18x18x16xbf16>
    tpu.vector_store %arg5[%c0, %c0_0, %c0_1], %0 {strides = array<i32>} : memref<18x18x16xbf16, #tpu.memory_space<vmem>>, vector<18x18x16xbf16>,
    %c0_2 = arith.constant 0 : index
    %c0_3 = arith.constant 0 : index
    %c0_4 = arith.constant 0 : index
    %c0_5 = arith.constant 0 : index
    %2 = vector.load %arg1[%c0_2, %c0_3, %c0_4, %c0_5] : memref<1x16x16x16xbf16, #tpu.memory_space<vmem>>, vector<1x16x16x16xbf16>
    %3 = vector.shape_cast %2 : vector<1x16x16x16xbf16> to vector<16x16x16xbf16>
    %c1 = arith.constant 1 : index
    %c1_6 = arith.constant 1 : index
    %c0_7 = arith.constant 0 : index
    %4 = vector.load %arg5[%c1, %c1_6, %c0_7] : memref<18x18x16xbf16, #tpu.memory_space<vmem>>, vector<16x16x16xbf16>
    tpu.vector_store %arg5[%c1, %c1_6, %c0_7], %3 {strides = array<i32>} : memref<18x18x16xbf16, #tpu.memory_space<vmem>>, vector<16x16x16xbf16>,
    %c0_8 = arith.constant 0 : index
    %c0_9 = arith.constant 0 : index
    %c0_10 = arith.constant 0 : index
    %5 = vector.load %arg5[%c0_8, %c0_9, %c0_10] : memref<18x18x16xbf16, #tpu.memory_space<vmem>>, vector<16x16x16xbf16>
    %6 = vector.shape_cast %5 : vector<16x16x16xbf16> to vector<256x16xbf16>
    %c0_11 = arith.constant 0 : index
    %c1_12 = arith.constant 1 : index
    %c0_13 = arith.constant 0 : index
    %7 = vector.load %arg5[%c0_11, %c1_12, %c0_13] : memref<18x18x16xbf16, #tpu.memory_space<vmem>>, vector<16x16x16xbf16>
    %8 = vector.shape_cast %7 : vector<16x16x16xbf16> to vector<256x16xbf16>
    %c0_14 = arith.constant 0 : index
    %c2 = arith.constant 2 : index
    %c0_15 = arith.constant 0 : index
    %9 = vector.load %arg5[%c0_14, %c2, %c0_15] : memref<18x18x16xbf16, #tpu.memory_space<vmem>>, vector<16x16x16xbf16>
    %10 = vector.shape_cast %9 : vector<16x16x16xbf16> to vector<256x16xbf16>
    %c1_16 = arith.constant 1 : index
    %c0_17 = arith.constant 0 : index
    %c0_18 = arith.constant 0 : index
    %11 = vector.load %arg5[%c1_16, %c0_17, %c0_18] : memref<18x18x16xbf16, #tpu.memory_space<vmem>>, vector<16x16x16xbf16>
    %12 = vector.shape_cast %11 : vector<16x16x16xbf16> to vector<256x16xbf16>
    %c1_19 = arith.constant 1 : index
    %c1_20 = arith.constant 1 : index
    %c0_21 = arith.constant 0 : index
    %13 = vector.load %arg5[%c1_19, %c1_20, %c0_21] : memref<18x18x16xbf16, #tpu.memory_space<vmem>>, vector<16x16x16xbf16>
    %14 = vector.shape_cast %13 : vector<16x16x16xbf16> to vector<256x16xbf16>
    %c1_22 = arith.constant 1 : index
    %c2_23 = arith.constant 2 : index
    %c0_24 = arith.constant 0 : index
    %15 = vector.load %arg5[%c1_22, %c2_23, %c0_24] : memref<18x18x16xbf16, #tpu.memory_space<vmem>>, vector<16x16x16xbf16>
    %16 = vector.shape_cast %15 : vector<16x16x16xbf16> to vector<256x16xbf16>
    %c2_25 = arith.constant 2 : index
    %c0_26 = arith.constant 0 : index
    %c0_27 = arith.constant 0 : index
    %17 = vector.load %arg5[%c2_25, %c0_26, %c0_27] : memref<18x18x16xbf16, #tpu.memory_space<vmem>>, vector<16x16x16xbf16>
    %18 = vector.shape_cast %17 : vector<16x16x16xbf16> to vector<256x16xbf16>
    %c2_28 = arith.constant 2 : index
    %c1_29 = arith.constant 1 : index
    %c0_30 = arith.constant 0 : index
    %19 = vector.load %arg5[%c2_28, %c1_29, %c0_30] : memref<18x18x16xbf16, #tpu.memory_space<vmem>>, vector<16x16x16xbf16>
    %20 = vector.shape_cast %19 : vector<16x16x16xbf16> to vector<256x16xbf16>
    %c2_31 = arith.constant 2 : index
    %c2_32 = arith.constant 2 : index
    %c0_33 = arith.constant 0 : index
    %21 = vector.load %arg5[%c2_31, %c2_32, %c0_33] : memref<18x18x16xbf16, #tpu.memory_space<vmem>>, vector<16x16x16xbf16>
    %22 = vector.shape_cast %21 : vector<16x16x16xbf16> to vector<256x16xbf16>
    %23 = tpu.concatenate %6, %8, %10, %12, %14, %16, %18, %20, %22 in 1 : vector<256x16xbf16>, vector<256x16xbf16>, vector<256x16xbf16>, vector<256x16xbf16>, vector<256x16xbf16>, vector<256x16xbf16>, vector<256x16xbf16>, vector<256x16xbf16>, vector<256x16xbf16> -> vector<256x144xbf16>
    %c0_34 = arith.constant 0 : index
    %c0_35 = arith.constant 0 : index
    %24 = vector.load %arg2[%c0_34, %c0_35] : memref<144x32xbf16, #tpu.memory_space<vmem>>, vector<144x32xbf16>
    %cst_36 = arith.constant dense<0.000000e+00> : vector<256x32xf32>
    %25 = tpu.matmul %23, %24, %cst_36 {dimension_numbers = #tpu.dot_dimension_numbers<[1], [0], [0], [1], [0, 0, 1, 1], [], []>} : vector<256x144xbf16>, vector<144x32xbf16>, vector<256x32xf32> -> vector<256x32xf32>
    %c0_37 = arith.constant 0 : index
    %c0_38 = arith.constant 0 : index
    %26 = vector.load %arg3[%c0_37, %c0_38] : memref<1x32xf32, #tpu.memory_space<vmem>>, vector<1x32xf32>
    %27 = vector.broadcast %26 : vector<1x32xf32> to vector<256x32xf32>
    %28 = arith.addf %25, %27 : vector<256x32xf32>
    %c0_39 = arith.constant 0 : index
    %c0_40 = arith.constant 0 : index
    %c0_41 = arith.constant 0 : index
    %29 = vector.load %arg4[%c0_39, %c0_40, %c0_41] : memref<1x256x32xf32, #tpu.memory_space<vmem>>, vector<1x256x32xf32>
    %30 = vector.shape_cast %29 : vector<1x256x32xf32> to vector<256x32xf32>
    %31 = vector.shape_cast %28 : vector<256x32xf32> to vector<1x256x32xf32>
    tpu.vector_store %arg4[%c0_39, %c0_40, %c0_41], %31 {strides = array<i32>} : memref<1x256x32xf32, #tpu.memory_space<vmem>>, vector<1x256x32xf32>,
    return
  }
  func.func @transform_0(%arg0: i32) -> (i32, i32, i32, i32) {
    %c0_i32 = arith.constant 0 : i32
    %c0_i32_0 = arith.constant 0 : i32
    %c0_i32_1 = arith.constant 0 : i32
    %c0_i32_2 = arith.constant 0 : i32
    return %arg0, %c0_i32, %c0_i32_0, %c0_i32_1 : i32, i32, i32, i32
  }
  func.func @transform_1(%arg0: i32) -> (i32, i32) {
    %c0_i32 = arith.constant 0 : i32
    %c0_i32_0 = arith.constant 0 : i32
    %c0_i32_1 = arith.constant 0 : i32
    return %c0_i32, %c0_i32_0 : i32, i32
  }
  func.func @transform_2(%arg0: i32) -> (i32, i32) {
    %c0_i32 = arith.constant 0 : i32
    %c0_i32_0 = arith.constant 0 : i32
    %c0_i32_1 = arith.constant 0 : i32
    return %c0_i32, %c0_i32_0 : i32, i32
  }
  func.func @transform_3(%arg0: i32) -> (i32, i32, i32) {
    %c0_i32 = arith.constant 0 : i32
    %c0_i32_0 = arith.constant 0 : i32
    %c0_i32_1 = arith.constant 0 : i32
    return %arg0, %c0_i32, %c0_i32_0 : i32, i32, i32
  }
}

</mosaic_0001>

<bundles_post_ra>
// kernel: tpu_custom_call.1
= control target key start
LH: loop header
LB: loop body
LE: loop exit
PB: predicated region body
PF: predicated region fallthrough
CT: control target
= control target key end

     0   :  { %8 = vsyncpa [#allocation4], 0  ;;  %s6403_s0 = inlined_call_operand.hbm [shape: bf16[2,16,16,16], index: 0, kind: input, shape index: {}]   ;;  %s6404_s1 = inlined_call_operand.vmem [shape: bf16[144,32], index: 1, kind: input, shape index: {}]   ;;  %s6405_s2 = inlined_call_operand.vmem [shape: f32[1,32], index: 2, kind: input, shape index: {}]   ;;  %s6406_s3 = inlined_call_operand.vmem [shape: f32[2,256,32], index: 3, kind: output, shape index: {}]  }
   0x1   :  { %10 = vsyncpa [#allocation4 + $0x1], 0  ;;  %s4376_s12 = smov 0   ;;  %s4378_s13 = smov 0  }
   0x2   :  { %s4380_s14 = smov 0   ;;  %s4382_s15 = smov 0  }
   0x3 LB: > { %s4395_s16 = sadd.s32 4294967295, %s4343_s15   ;;  %s4398_s17 = sadd.s32 1, %s4343_s15   ;;  %s4343_s15 = sphi %s4382_s15, %s6495_s15   ;;  %s4339_s14 = sphi %s4380_s14, %s6494_s14   ;;  %s4335_s13 = sphi %s4378_s13, %s6493_s13   ;;  %s4331_s12 = sphi %s4376_s12, %s6492_s12  }
   0x4   : > { %s20_s18 = ssub.s32 %s4343_s15, %s4398_s17  ;;  %s23_s19 = sadd.s32 1, %s4339_s14 }
   0x5   : > { %p21_p0 = scmp.eq.s32.totalorder %s20_s18, 0  ;;  %p30_p1 = scmp.ne.s32.totalorder %s4339_s14, %s4335_s13 }
   0x6   : > { %p31_p2 = scmp.eq.s32.totalorder %s4343_s15, 0  ;;  %p36_p3 = scmp.ne.s32.totalorder %s4335_s13, %s4331_s12 }
   0x7   : > { %s4408_s20 = scalar_select %p21_p0, %s4339_s14, %s23_s19  }
   0x8   : > { %p32_p4 = por %p31_p2, %p30_p1  ;;  %p37_p5 = scmp.eq.s32.totalorder %s4395_s16, 0 }
   0x9   : > { %p4162_p6 = scmp.lt.s32.totalorder %s4343_s15, 2  ;;  %s134_s22 = sand.u32 1, %s4339_s14  }
   0xa   : > { %p4412_p7 = por %p37_p5, %p36_p3  ;;  %s3909_s23 = sshll.u32 %s134_s22, 7 }
   0xb   : > { %s4136_s24 = sshll.u32 %s4343_s15, 11  ;;  %s138_s28 = scalar_lea.vmem [#allocation3], %s3909_s23 }
   0xc   : > { %s6425_s21 = scalar_select %p4412_p7, 1, 0 }
   0xd   : > { %s4421_s27 = scalar_lea.hbm %s6403_s0, %s4136_s24  ;;  %s145_s29 = sshll.u32 %s138_s28, 4  ;;  %s4423_s29 = int_to_ptr.vmem [resolvable:$true] %s145_s29 }
   0xe   : > { %p4425_p8 = pnand %p4162_p6, %p32_p4  ;;  %s4430_s4 = scalar_lea.sflag [#allocation4], %s134_s22 }
   0xf   : > { %s4281_s5 = scalar_lea.hbm %s4421_s27, 2048  ;;  %s4286_s8 = scalar_lea.hbm %s6403_s0, 4096 }
  0x10   : > { %p4282_p10 = scmp.ne.s32.totalorder %s4421_s27, %s4281_s5  ;;  %p4283_p11 = pneg %p4425_p8 }
  0x11   : > { %p4287_p0 = scmp.lt.s32.totalorder %s4421_s27, %s6403_s0  ;;  %p4288_p1 = scmp.lt.s32.totalorder %s4286_s8, %s4281_s5 }
  0x12   : > { %p4284_p12 = pnand %p4283_p11, %p4282_p10 }
  0x13   : > { %p4289_p2 = por %p4288_p1, %p4287_p0 }
  0x14   : > { %p4285_p13 = pneg %p4284_p12 }
  0x16   : > { %p4290_p3 = pnand %p4289_p2, %p4285_p13 }
  0x18   : > { %4293 = shalt.err (!%p4290_p3)
}
  0x19   : > { %s4294_s11 = scalar_lea.vmem %s4423_s29, 2048  ;;  %s4345_s12 = smov [#allocation3]  }
  0x1a   : > { %p4295_p4 = scmp.ne.s32.totalorder %s4423_s29, %s4294_s11  ;;  %s4299_s18 = sshll.u32 %s4345_s12, 4  ;;  %s4300_s18 = int_to_ptr.vmem [resolvable:$false] %s4299_s18 }
  0x1b   : > { %s4301_s19 = scalar_lea.vmem %s4300_s18, 4096  ;;  %p4302_p10 = scmp.lt.s32.totalorder %s4423_s29, %s4300_s18 }
  0x1c   : > { %p4297_p5 = pnand %p4295_p4, %p4283_p11  ;;  %p4303_p12 = scmp.lt.s32.totalorder %s4301_s19, %s4294_s11 }
  0x1e   : > { %p4298_p6 = pneg %p4297_p5  ;;  %p4304_p9 = por %p4303_p12, %p4302_p10 }
  0x20   : > { %p4305_p7 = pnand %p4304_p9, %p4298_p6 }
  0x22   : > { %4308 = shalt.err (!%p4305_p7)
}
  0x23   : > { %s4346_s22 = smov 64   ;;  %s4347_s23 = smov 4  }
  0x24   : > { %4161 = dma.hbm_to_vmem [thread:$0]  (!%p4425_p8), %s4421_s27, 2048, %s4423_s29, %s4430_s4, %s4346_s22, %s4346_s22, %s4347_s23  }
  0x25   : > { %p153_p11 = scmp.lt.s32.totalorder %s4343_s15, 3  ;;  %p6427_p13 = scmp.ge.s32.totalorder %s4343_s15, 1 }
  0x27   : > { %p154_p0 = pnand %p6427_p13, %p153_p11 }
  0x29   : > { %157 = sbr.rel (%p154_p0) target bundleno = 747 (0x2eb), region = 32 }
  0x2e   : > { %s159_s24 = sand.u32 1, %s4335_s13   ;;  %p6428_p7 = scmp.ne.s32.totalorder %s6425_s21, 0 }
  0x2f   : > { %s3913_s25 = sshll.u32 %s159_s24, 7  ;;  %s160_s26 = scalar_lea.sflag [#allocation4], %s159_s24 }
  0x30   : > { %s4455_s28 = scalar_lea.vmem [#allocation3], %s3913_s25 }
  0x31   : > { %4326 = dma.done.wait (%p6428_p7), %s160_s26, 2048  }
  0x32   : > { %4328 = vsyncadd (%p6428_p7), %s160_s26, 4294965248  ;;  %vm192_vm0 = vcmask 125952   ;;  %vm195_vm1 = vcmask 122880   ;;  %v4348_v0 = vmov 0   ;;  %vm769_vm2 = vsmask.f32 3328 }
  0x33   : > { %193 = vst.msk [vmem:[#allocation2] sm:$0xf] %vm192_vm0, %v4348_v0  ;;  %194 = vst.msk [vmem:[#allocation2 + $0x4] sm:$0xf] %vm192_vm0, %v4348_v0  ;;  %3646 = vmatprep.subr.bf16.mxu0 %v4348_v0  ;;  %4138 = vmatprep.subr.bf16.mxu1 %v4348_v0  ;;  %vm770_vm3 = vsmask.f32 7440 }
  0x34   : > { %196 = vst.msk [vmem:[#allocation2 + $0x8] sm:$0x1] %vm195_vm1, %v4348_v0  ;;  %199 = vst.msk [vmem:[#allocation2 + $0x14] sm:$0x1] %vm195_vm1, %v4348_v0  ;;  %vm1220_vm4 = vcmask 1042432   ;;  %vm1221_vm5 = vcmask 1046532  }
  0x35   : > { %197 = vst.msk [vmem:[#allocation2 + $0xc] sm:$0xf] %vm192_vm0, %v4348_v0  ;;  %198 = vst.msk [vmem:[#allocation2 + $0x10] sm:$0xf] %vm192_vm0, %v4348_v0  ;;  %vm280_vm6 = vsmask.f32 256 }
  0x36   : > { %200 = vst.msk [vmem:[#allocation2 + $0x18] sm:$0xf] %vm192_vm0, %v4348_v0  ;;  %201 = vst.msk [vmem:[#allocation2 + $0x1c] sm:$0xf] %vm192_vm0, %v4348_v0  ;;  %v264_v1 = vld [vmem:[%s4455_s28 + $0x40] sm:$0xf] }
  0x37   : > { %202 = vst.msk [vmem:[#allocation2 + $0x20] sm:$0x1] %vm195_vm1, %v4348_v0  ;;  %205 = vst.msk [vmem:[#allocation2 + $0x2c] sm:$0x1] %vm195_vm1, %v4348_v0  ;;  %vm281_vm7 = vsmask.f32 4368 }
  0x38   : > { %203 = vst.msk [vmem:[#allocation2 + $0x24] sm:$0xf] %vm192_vm0, %v4348_v0  ;;  %204 = vst.msk [vmem:[#allocation2 + $0x28] sm:$0xf] %vm192_vm0, %v4348_v0  ;;  %vm605_vm8 = vsmask.f32 7938 }
  0x39   : > { %206 = vst.msk [vmem:[#allocation2 + $0x30] sm:$0xf] %vm192_vm0, %v4348_v0  ;;  %207 = vst.msk [vmem:[#allocation2 + $0x34] sm:$0xf] %vm192_vm0, %v4348_v0  ;;  %v265_v15 = vld [vmem:[%s4455_s28 + $0x44] sm:$0xf] }
  0x3a   : > { %208 = vst.msk [vmem:[#allocation2 + $0x38] sm:$0x1] %vm195_vm1, %v4348_v0  ;;  %211 = vst.msk [vmem:[#allocation2 + $0x44] sm:$0x1] %vm195_vm1, %v4348_v0  ;;  %v721_v2 = vld [vmem:[#allocation2] sm:$0xf] }
  0x3b   : > { %209 = vst.msk [vmem:[#allocation2 + $0x3c] sm:$0xf] %vm192_vm0, %v4348_v0  ;;  %210 = vst.msk [vmem:[#allocation2 + $0x40] sm:$0xf] %vm192_vm0, %v4348_v0  ;;  %v722_v3 = vld [vmem:[#allocation2 + $0x4] sm:$0xf] }
  0x3c   : > { %212 = vst.msk [vmem:[#allocation2 + $0x48] sm:$0xf] %vm192_vm0, %v4348_v0  ;;  %213 = vst.msk [vmem:[#allocation2 + $0x4c] sm:$0xf] %vm192_vm0, %v4348_v0  ;;  %v753_v4 = vld [vmem:[#allocation2 + $0x8] sm:$0x1] }
  0x3d   : > { %214 = vst.msk [vmem:[#allocation2 + $0x50] sm:$0x1] %vm195_vm1, %v4348_v0  ;;  %217 = vst.msk [vmem:[#allocation2 + $0x5c] sm:$0x1] %vm195_vm1, %v4348_v0  ;;  %v773_v5 = vshrl.u32 %v721_v2, 16  ;;  %v776_v6 = vshll.u32 %v721_v2, 16 }
  0x3e   : > { %215 = vst.msk [vmem:[#allocation2 + $0x54] sm:$0xf] %vm192_vm0, %v4348_v0  ;;  %216 = vst.msk [vmem:[#allocation2 + $0x58] sm:$0xf] %vm192_vm0, %v4348_v0  ;;  %v782_v7 = vshll.u32 %v722_v3, 16  ;;  %v786_v8 = vshrl.u32 %v722_v3, 16 }
  0x3f   : > { %218 = vst.msk [vmem:[#allocation2 + $0x60] sm:$0xf] %vm192_vm0, %v4348_v0  ;;  %219 = vst.msk [vmem:[#allocation2 + $0x64] sm:$0xf] %vm192_vm0, %v4348_v0  ;;  %v1156_v9 = vld [vmem:[#allocation2] sm:$0xe] }
  0x40   : > { %220 = vst.msk [vmem:[#allocation2 + $0x68] sm:$0x1] %vm195_vm1, %v4348_v0  ;;  %223 = vst.msk [vmem:[#allocation2 + $0x74] sm:$0x1] %vm195_vm1, %v4348_v0  ;;  %v792_v11 = vshll.u32 %v753_v4, 16  ;;  %v3916_v12 = vrot.slane %v1156_v9, 9 }
  0x41   : > { %221 = vst.msk [vmem:[#allocation2 + $0x6c] sm:$0xf] %vm192_vm0, %v4348_v0  ;;  %222 = vst.msk [vmem:[#allocation2 + $0x70] sm:$0xf] %vm192_vm0, %v4348_v0  ;;  %v1225_v13 = vrot.slane %v722_v3, 5  ;;  %v1228_v14 = vrot.slane %v753_v4, 5 }
  0x42   : > { %224 = vst.msk [vmem:[#allocation2 + $0x78] sm:$0xf] %vm192_vm0, %v4348_v0  ;;  %225 = vst.msk [vmem:[#allocation2 + $0x7c] sm:$0xf] %vm192_vm0, %v4348_v0  ;;  %v775_v16 = vrot.slane %v773_v5, 4  ;;  %v778_v17 = vrot.slane %v776_v6, 5 }
  0x43   : > { %226 = vst.msk [vmem:[#allocation2 + $0x80] sm:$0x1] %vm195_vm1, %v4348_v0  ;;  %229 = vst.msk [vmem:[#allocation2 + $0x8c] sm:$0x1] %vm195_vm1, %v4348_v0  ;;  %v784_v18 = vrot.slane %v782_v7, 5  ;;  %v788_v19 = vrot.slane %v786_v8, 4 }
  0x44   : > { %227 = vst.msk [vmem:[#allocation2 + $0x84] sm:$0xf] %vm192_vm0, %v4348_v0  ;;  %228 = vst.msk [vmem:[#allocation2 + $0x88] sm:$0xf] %vm192_vm0, %v4348_v0  ;;  %v248_v20 = vld [vmem:[%s4455_s28] sm:$0xf]  ;;  %v779_v25 = vor.u32 %v778_v17, %v775_v16 }
  0x45   : > { %230 = vst.msk [vmem:[#allocation2 + $0x90] sm:$0xf] %vm192_vm0, %v4348_v0  ;;  %231 = vst.msk [vmem:[#allocation2 + $0x94] sm:$0xf] %vm192_vm0, %v4348_v0  ;;  %v794_v21 = vrot.slane %v792_v11, 5  ;;  %v1227_v23 = vrot.slane %v1225_v13, 4  ;;  %v789_v26 = vor.u32 %v788_v19, %v784_v18 }
  0x46   : > { %232 = vst.msk [vmem:[#allocation2 + $0x98] sm:$0x1] %vm195_vm1, %v4348_v0  ;;  %235 = vst.msk [vmem:[#allocation2 + $0xa4] sm:$0x1] %vm195_vm1, %v4348_v0  ;;  %v420_v24 = vshrl.u32 %v264_v1, 16  ;;  %v423_v27 = vshll.u32 %v264_v1, 16 }
  0x47   : > { %233 = vst.msk [vmem:[#allocation2 + $0x9c] sm:$0xf] %vm192_vm0, %v4348_v0  ;;  %234 = vst.msk [vmem:[#allocation2 + $0xa0] sm:$0xf] %vm192_vm0, %v4348_v0  ;;  %v428_v28 = vshrl.u32 %v265_v15, 16  ;;  %v431_v32 = vshll.u32 %v265_v15, 16 }
  0x48   : > { %236 = vst.msk [vmem:[#allocation2 + $0xa8] sm:$0xf] %vm192_vm0, %v4348_v0  ;;  %237 = vst.msk [vmem:[#allocation2 + $0xac] sm:$0xf] %vm192_vm0, %v4348_v0  ;;  %v422_v31 = vrot.slane %v420_v24, 7  ;;  %v284_v34 = vshrl.u32 %v248_v20, 16 }
  0x49   : > { %238 = vst.msk [vmem:[#allocation2 + $0xb0] sm:$0x1] %vm195_vm1, %v4348_v0  ;;  %241 = vst.msk [vmem:[#allocation2 + $0xbc] sm:$0x1] %vm195_vm1, %v4348_v0  ;;  %v249_v33 = vld [vmem:[%s4455_s28 + $0x4] sm:$0xf] }
  0x4a   : > { %239 = vst.msk [vmem:[#allocation2 + $0xb4] sm:$0xf] %vm192_vm0, %v4348_v0  ;;  %240 = vst.msk [vmem:[#allocation2 + $0xb8] sm:$0xf] %vm192_vm0, %v4348_v0  ;;  %v780_v35 = vrot.slane %v779_v25, 4  ;;  %v790_v36 = vrot.slane %v789_v26, 4  ;;  %v425_v42 = vor.u32 %v423_v27, %v422_v31 }
  0x4b   : > { %242 = vst.msk [vmem:[#allocation2 + $0xc0] sm:$0xf] %vm192_vm0, %v4348_v0  ;;  %243 = vst.msk [vmem:[#allocation2 + $0xc4] sm:$0xf] %vm192_vm0, %v4348_v0  ;;  %v4589_v38 = vrot.slane %v428_v28, 7  ;;  %v426_v43 = vrot.slane %v422_v31, 4 }
  0x4c   : > { %244 = vst.msk [vmem:[#allocation2 + $0xc8] sm:$0x1] %vm195_vm1, %v4348_v0  ;;  %247 = vst.msk [vmem:[#allocation2 + $0xd4] sm:$0x1] %vm195_vm1, %v4348_v0  ;;  %v665_v40 = vld [vmem:[#allocation2 + $0x6c] sm:$0xf] }
  0x4d   : > { %245 = vst.msk [vmem:[#allocation2 + $0xcc] sm:$0xf] %vm192_vm0, %v4348_v0  ;;  %246 = vst.msk [vmem:[#allocation2 + $0xd0] sm:$0xf] %vm192_vm0, %v4348_v0  ;;  %v286_v44 = vrot.slane %v284_v34, 7  ;;  %v287_v45 = vshll.u32 %v248_v20, 16  ;;  %v433_v49 = vor.u32 %v431_v32, %v4589_v38 }
  0x4e   : > { %vm4572_vm9 = vmor %vm1220_vm4, %vm1221_vm5  ;;  %v266_v46 = vld [vmem:[%s4455_s28 + $0x48] sm:$0xf]  ;;  %s4349_s15 = smov 32   ;;  %v292_v50 = vshrl.u32 %v249_v33, 16  ;;  %v607_v51 = vld [vmem:[#allocation2 + $0xc] sm:$0xf] }
  0x4f   : > { %v1226_v22 = vsel %vm4572_vm9, %v3916_v12, %v1225_v13  ;;  %vm4582_vm10 = vmor %vm769_vm2, %vm770_vm3  ;;  %v1229_v30 = vsel %vm4572_vm9, %v1227_v23, %v1228_v14  ;;  %v267_v52 = vld [vmem:[%s4455_s28 + $0x4c] sm:$0xf]  ;;  %v289_v55 = vor.u32 %v287_v45, %v286_v44  ;;  %v290_v56 = vrot.slane %v286_v44, 4  ;;  %v250_v57 = vld [vmem:[%s4455_s28 + $0x8] sm:$0xf]  ;;  %s4350_s21 = smov 16  }
  0x50   : > { %v3996_v37 = vcombine.low %v1226_v22, %v1229_v30  ;;  %vm4593_vm11 = vmand %vm192_vm0, %vm605_vm8  ;;  %v785_v47 = vsel %vm4582_vm10, %v780_v35, %v784_v18  ;;  %v795_v48 = vsel %vm4582_vm10, %v790_v36, %v794_v21  ;;  %v251_v58 = vld [vmem:[%s4455_s28 + $0xc] sm:$0xf]  ;;  %v4617_v60 = vrot.slane %v292_v50, 7  ;;  %v262_v63 = vld [vmem:[%s4455_s28 + $0x38] sm:$0xf]  ;;  %s4351_s27 = smov 48  }
  0x51   : > { %vm4599_vm12 = vmor %vm280_vm6, %vm281_vm7  ;;  %v3980_v53 = vcombine.low %v785_v47, %v795_v48  ;;  %v666_v54 = vsel %vm4593_vm11, %v425_v42, %v665_v40  ;;  %v295_v61 = vshll.u32 %v249_v33, 16  ;;  %v437_v62 = vshrl.u32 %v266_v46, 16  ;;  %v672_v7 = vld [vmem:[#allocation2 + $0x78] sm:$0xf]  ;;  %v263_v14 = vld [vmem:[%s4455_s28 + $0x3c] sm:$0xf] }
  0x52   : > { %2744 = vrot.lane.b32.xlu1 %v3996_v37, %s4349_s15  ;;  %v434_v59 = vsel %vm4599_vm12, %v426_v43, %v433_v49  ;;  %667 = vst [vmem:[#allocation2 + $0x6c] sm:$0xf] %v666_v54  ;;  %v608_v1 = vsel %vm4593_vm11, %v289_v55, %v607_v51  ;;  %v440_v2 = vshll.u32 %v266_v46, 16  ;;  %v445_v3 = vshrl.u32 %v267_v52, 16  ;;  %v616_v22 = vld [vmem:[#allocation2 + $0x18] sm:$0xf]  ;;  %vm4650_vm13 = vmand %vm195_vm1, %vm280_vm6 }
  0x53   : > { %2664 = vrot.lane.b32.xlu0 %v3980_v53, %s4350_s21  ;;  %668 = vst.msk [vmem:[#allocation2 + $0x70] sm:$0xf] %vm192_vm0, %v434_v59  ;;  %v448_v4 = vshll.u32 %v267_v52, 16  ;;  %v297_v5 = vor.u32 %v295_v61, %v4617_v60  ;;  %609 = vst [vmem:[#allocation2 + $0xc] sm:$0xf] %v608_v1  ;;  %v439_v6 = vrot.slane %v437_v62, 7 }
  0x54   : > { %v301_v8 = vshrl.u32 %v250_v57, 16  ;;  %v304_v9 = vshll.u32 %v250_v57, 16  ;;  %v4625_v11 = vrot.slane %v445_v3, 7  ;;  %v309_v12 = vshrl.u32 %v251_v58, 16  ;;  %v658_v35 = vld [vmem:[#allocation2 + $0x60] sm:$0xf] }
  0x55   : > { %v312_v13 = vshll.u32 %v251_v58, 16  ;;  %v403_v15 = vshrl.u32 %v262_v63, 16  ;;  %v298_v16 = vsel %vm4599_vm12, %v290_v56, %v297_v5  ;;  %v442_v17 = vor.u32 %v440_v2, %v439_v6  ;;  %v662_v44 = vld [vmem:[#allocation2 + $0x68] sm:$0x1]  ;;  %v613_v50 = vld [vmem:[#allocation2 + $0x14] sm:$0x1] }
  0x56   : > { %v443_v18 = vrot.slane %v439_v6, 4  ;;  %v303_v19 = vrot.slane %v301_v8, 7  ;;  %610 = vst.msk [vmem:[#allocation2 + $0x10] sm:$0xf] %vm192_vm0, %v298_v16  ;;  %v450_v20 = vor.u32 %v448_v4, %v4625_v11  ;;  %v4632_v21 = vrot.slane %v309_v12, 7  ;;  %s4352_s29 = smov 96  }
  0x57   : > { %v405_v23 = vrot.slane %v403_v15, 7  ;;  %v406_v24 = vshll.u32 %v262_v63, 16  ;;  %v673_v25 = vsel %vm4593_vm11, %v442_v17, %v672_v7  ;;  %v411_v28 = vshrl.u32 %v263_v14, 16  ;;  %v669_v57 = vld [vmem:[#allocation2 + $0x74] sm:$0x1]  ;;  %s4353_s30 = smov 80  }
  0x58   : > { %v306_v26 = vor.u32 %v304_v9, %v303_v19  ;;  %v307_v27 = vrot.slane %v303_v19, 4  ;;  %v451_v31 = vsel %vm4599_vm12, %v443_v18, %v450_v20  ;;  %674 = vst [vmem:[#allocation2 + $0x78] sm:$0xf] %v673_v25  ;;  %v314_v32 = vor.u32 %v312_v13, %v4632_v21  ;;  %s4354_s4 = smov 64   ;;  %s4355_s7 = smov 112  }
  0x59   : > { %v1351_v30 = vld [vmem:[#allocation2 + $0x6c] sm:$0xf]  ;;  %v408_v33 = vor.u32 %v406_v24, %v405_v23  ;;  %v409_v34 = vrot.slane %v405_v23, 4  ;;  %675 = vst.msk [vmem:[#allocation2 + $0x7c] sm:$0xf] %vm192_vm0, %v451_v31  ;;  %v413_v43 = vrot.slane %v411_v28, 7 }
  0x5a   : > { %v4639_v36 = vld [vmem:[#allocation2 + $0x70] sm:$0xf]  ;;  %v1576_v37 = vshrl.u32 %v1351_v30, 16  ;;  %v1579_v40 = vshll.u32 %v1351_v30, 16  ;;  %v617_v42 = vsel %vm4593_vm11, %v306_v26, %v616_v22  ;;  %v1335_v47 = vld [vmem:[#allocation2 + $0xc] sm:$0xf]  ;;  %v315_v48 = vsel %vm4599_vm12, %v307_v27, %v314_v32 }
  0x5b   : > { %v1589_v45 = vshrl.u32 %v4639_v36, 16  ;;  %v4020_v46 = vcombine.low %v1351_v30, %v4639_v36  ;;  %618 = vst [vmem:[#allocation2 + $0x18] sm:$0xf] %v617_v42  ;;  %v414_v49 = vshll.u32 %v263_v14, 16  ;;  %v1767_v51 = vld [vmem:[#allocation2 + $0xc] sm:$0xe]  ;;  %v659_v61 = vsel %vm4593_vm11, %v408_v33, %v658_v35 }
  0x5c   : > { %v4654_v53 = vrot.slane %v1576_v37, 4  ;;  %v4656_v54 = vrot.slane %v1579_v40, 5  ;;  %v1384_v55 = vshrl.u32 %v1335_v47, 16  ;;  %v1387_v56 = vshll.u32 %v1335_v47, 16  ;;  %619 = vst.msk [vmem:[#allocation2 + $0x1c] sm:$0xf] %vm192_vm0, %v315_v48 }
  0x5d   : > { %2856 = vrot.lane.b32.xlu1 %v4020_v46, %s4351_s27  ;;  %v416_v58 = vor.u32 %v414_v49, %v413_v43  ;;  %v418_v59 = vrot.slane %v413_v43, 4  ;;  %v299_v62 = vrot.slane %v4617_v60, 4  ;;  %v1775_v63 = vld [vmem:[#allocation2 + $0x6c] sm:$0xe]  ;;  %v4663_v2 = vld [vmem:[#allocation2 + $0x10] sm:$0xf] }
  0x5e   : > { %v1157_v1 = vld [vmem:[#allocation2 + $0xc] sm:$0xe]  ;;  %v4665_v3 = vrot.slane %v1384_v55, 4  ;;  %v4667_v4 = vrot.slane %v1387_v56, 5  ;;  %660 = vst [vmem:[#allocation2 + $0x60] sm:$0xf] %v659_v61  ;;  %v4012_v8 = vcombine.low %v1335_v47, %v4663_v2  ;;  %v1582_v56 = vor.u32 %v4656_v54, %v4654_v53 }
  0x5f   : > { %v3932_v5 = vrot.slane %v1767_v51, 9  ;;  %v435_v6 = vrot.slane %v4589_v38, 4  ;;  %v1397_v7 = vshrl.u32 %v4663_v2, 16  ;;  %v417_v9 = vsel %vm4599_vm12, %v409_v34, %v416_v58  ;;  %v1960_v12 = vld [vmem:[#allocation2 + $0x78] sm:$0xf]  ;;  %p186_p8 = scmp.lt.s32.totalorder %s4395_s16, 1 }
  0x60   : > { %v663_v60 = vsel %vm4650_vm13, %v418_v59, %v662_v44  ;;  %661 = vst.msk [vmem:[#allocation2 + $0x64] sm:$0xf] %vm192_vm0, %v417_v9  ;;  %v614_v13 = vsel %vm4650_vm13, %v299_v62, %v613_v50  ;;  %v1833_v14 = vrot.slane %v4663_v2, 5  ;;  %v3940_v15 = vrot.slane %v1775_v63, 9  ;;  %v1165_v16 = vld [vmem:[#allocation2 + $0x6c] sm:$0xe]  ;;  %2840 = vrot.lane.b32.xlu0 %v4012_v8, %s4351_s27 }
  0x61   : > { %664 = vst [vmem:[#allocation2 + $0x68] sm:$0x1] %v663_v60  ;;  %v670_v38 = vsel %vm4650_vm13, %v435_v6, %v669_v57  ;;  %v4683_v17 = vld [vmem:[#allocation2 + $0x7c] sm:$0xf]  ;;  %v2185_v18 = vshrl.u32 %v1960_v12, 16  ;;  %v2188_v19 = vshll.u32 %v1960_v12, 16  ;;  %v1390_v6 = vor.u32 %v4667_v4, %v4665_v3 }
  0x62   : > { %615 = vst [vmem:[#allocation2 + $0x14] sm:$0x1] %v614_v13  ;;  %671 = vst [vmem:[#allocation2 + $0x74] sm:$0x1] %v670_v38  ;;  %v1889_v20 = vrot.slane %v4639_v36, 5  ;;  %v3917_v22 = vrot.slane %v1157_v1, 9  ;;  %v4068_v25 = vcombine.low %v1960_v12, %v4683_v17  ;;  %v1834_v27 = vsel %vm4572_vm9, %v3932_v5, %v1833_v14 }
  0x63   : > { %v4686_v23 = vld [vmem:[#allocation2 + $0x70] sm:$0xf]  ;;  %v2198_v24 = vshrl.u32 %v4683_v17, 16  ;;  %v1944_v26 = vld [vmem:[#allocation2 + $0x18] sm:$0xf]  ;;  %v1835_v28 = vrot.slane %v1833_v14, 4 }
  0x64   : > { %v4692_v30 = vld [vmem:[#allocation2 + $0x10] sm:$0xf]  ;;  %v4694_v31 = vrot.slane %v2185_v18, 4  ;;  %v4696_v32 = vrot.slane %v2188_v19, 5  ;;  %v4698_v33 = vld [vmem:[#allocation2 + $0x1c] sm:$0xf]  ;;  %3112 = vrot.lane.b32.xlu1 %v4068_v25, %s4352_s29  ;;  %v4705_v42 = vsel %vm4572_vm9, %v3940_v15, %v1889_v20 }
  0x65   : > { %v1993_v34 = vshrl.u32 %v1944_v26, 16  ;;  %v1996_v35 = vshll.u32 %v1944_v26, 16  ;;  %v2006_v37 = vshrl.u32 %v4698_v33, 16  ;;  %v4060_v40 = vcombine.low %v1944_v26, %v4698_v33  ;;  %v1164_v47 = vld [vmem:[#allocation2 + $0x60] sm:$0xe]  ;;  %s6497_s16 = smov (!%p186_p8, %s4395_s16), 1 }
  0x66   : > { %v1891_v43 = vrot.slane %v1889_v20, 4  ;;  %v1232_v48 = vrot.slane %v4692_v30, 5  ;;  %v3925_v49 = vrot.slane %v1165_v16, 9  ;;  %v3924_v50 = vrot.slane %v1164_v47, 9  ;;  %v737_v55 = vld [vmem:[#allocation2 + $0x60] sm:$0xf] }
  0x67   : > { %v4707_v44 = vrot.slane %v1993_v34, 4  ;;  %v4709_v46 = vrot.slane %v1996_v35, 5  ;;  %3096 = vrot.lane.b32.xlu0 %v4060_v40, %s4352_s29  ;;  %v1288_v51 = vrot.slane %v4686_v23, 5  ;;  %v1585_v57 = vshll.u32 %v4639_v36, 16  ;;  %v4717_v58 = vld [vmem:[#allocation2 + $0x78] sm:$0xf] }
  0x68   : > { %v4719_v59 = vld [vmem:[#allocation2 + $0x7c] sm:$0xf]  ;;  %v738_v61 = vld [vmem:[#allocation2 + $0x64] sm:$0xf]  ;;  %v761_v62 = vld [vmem:[#allocation2 + $0x68] sm:$0x1]  ;;  %v1233_v63 = vsel %vm4572_vm9, %v3917_v22, %v1232_v48  ;;  %v2191_v12 = vor.u32 %v4696_v32, %v4694_v31 }
  0x69   : > { %v1234_v1 = vrot.slane %v1232_v48, 4  ;;  %v965_v5 = vshrl.u32 %v737_v55, 16  ;;  %v1281_v8 = vrot.slane %v738_v61, 5  ;;  %v1284_v9 = vrot.slane %v761_v62, 5  ;;  %v4725_v60 = vld [vmem:[#allocation2 + $0x14] sm:$0x1] }
  0x6a   : > { %v1375_v53 = vld [vmem:[#allocation2 + $0x74] sm:$0x1]  ;;  %v4729_v54 = vsel %vm4572_vm9, %v3925_v49, %v1288_v51  ;;  %v1836_v13 = vrot.slane %v4725_v60, 5  ;;  %v1999_v3 = vor.u32 %v4709_v46, %v4707_v44  ;;  %v4021_v4 = vcombine.low %v4717_v58, %v4719_v59 }
  0x6b   : > { %v1892_v14 = vrot.slane %v1375_v53, 5  ;;  %v4734_v38 = vld [vmem:[#allocation2 + $0x14] sm:$0x1]  ;;  %v1282_v16 = vsel %vm4572_vm9, %v3924_v50, %v1281_v8  ;;  %v1283_v18 = vrot.slane %v1281_v8, 4  ;;  %v1290_v20 = vrot.slane %v1288_v51, 4 }
  0x6c   : > { %v4736_v15 = vld [vmem:[#allocation2 + $0x74] sm:$0x1]  ;;  %v1235_v19 = vrot.slane %v4734_v38, 5  ;;  %v1837_v22 = vsel %vm4572_vm9, %v1835_v28, %v1836_v13  ;;  %v967_v31 = vrot.slane %v965_v5, 4  ;;  %v968_v49 = vshll.u32 %v737_v55, 16 }
  0x6d   : > { %v1893_v25 = vsel %vm4572_vm9, %v1891_v43, %v1892_v14  ;;  %v1291_v26 = vrot.slane %v4736_v15, 5  ;;  %v1285_v32 = vsel %vm4572_vm9, %v1283_v18, %v1284_v9  ;;  %v4044_v34 = vcombine.low %v1834_v27, %v1837_v22 }
  0x6e   : > { %v4052_v35 = vcombine.low %v4705_v42, %v1893_v25  ;;  %v1236_v40 = vsel %vm4572_vm9, %v1234_v1, %v1235_v19  ;;  %v4004_v47 = vcombine.low %v1282_v16, %v1285_v32  ;;  %v974_v50 = vshll.u32 %v738_v61, 16 }
  0x6f   : > { %v3997_v48 = vcombine.low %v1233_v63, %v1236_v40  ;;  %v1292_v28 = vsel %vm4572_vm9, %v1290_v20, %v1291_v26  ;;  %3000 = vrot.lane.b32.xlu0 %v4044_v34, %s4353_s30  ;;  %v978_v51 = vshrl.u32 %v738_v61, 16  ;;  %v984_v5 = vshll.u32 %v761_v62, 16  ;;  %v739_v40 = vld [vmem:[#allocation2 + $0x6c] sm:$0xf] }
  0x70   : > { %v4005_v43 = vcombine.low %v4729_v54, %v1292_v28  ;;  %2760 = vrot.lane.b32.xlu1 %v4004_v47, %s4349_s15  ;;  %v970_v27 = vrot.slane %v968_v49, 5  ;;  %v1583_v42 = vrot.slane %v1582_v56, 4  ;;  %v1587_v8 = vrot.slane %v1585_v57, 5 }
  0x71   : > { %v1591_v63 = vrot.slane %v1589_v45, 4  ;;  %v976_v1 = vrot.slane %v974_v50, 5  ;;  %v980_v9 = vrot.slane %v978_v51, 4  ;;  %v986_v13 = vrot.slane %v984_v5, 5  ;;  %v676_v45 = vld [vmem:[#allocation2 + $0x80] sm:$0x1] }
  0x72   : > { %v1595_v55 = vshll.u32 %v1375_v53, 16  ;;  %v971_v14 = vor.u32 %v970_v27, %v967_v31  ;;  %v1588_v16 = vsel %vm4582_vm10, %v1583_v42, %v1587_v8  ;;  %v1391_v18 = vrot.slane %v1390_v6, 4 }
  0x73   : > { %v1592_v54 = vor.u32 %v1591_v63, %v1587_v8  ;;  %2746 = vrot.lane.b32.xlu0 %v3997_v48, %s4349_s15  ;;  %v981_v61 = vor.u32 %v980_v9, %v976_v1  ;;  %v1393_v56 = vshll.u32 %v4663_v2, 16  ;;  %v1399_v36 = vrot.slane %v1397_v7, 4 }
  0x74   : > { %v1597_v62 = vrot.slane %v1595_v55, 5  ;;  %3016 = vrot.lane.b32.xlu1 %v4052_v35, %s4353_s30  ;;  %v972_v57 = vrot.slane %v971_v14, 4  ;;  %v1403_v19 = vshll.u32 %v4725_v60, 16  ;;  %v452_v20 = vrot.slane %v4625_v11, 4  ;;  %v620_v35 = vld [vmem:[#allocation2 + $0x20] sm:$0x1] }
  0x75   : > { %v1593_v53 = vrot.slane %v1592_v54, 4  ;;  %v982_v22 = vrot.slane %v981_v61, 4  ;;  %v1395_v6 = vrot.slane %v1393_v56, 5  ;;  %v4771_v25 = vrot.slane %v2191_v12, 4 }
  0x76   : > { %v2194_v26 = vshll.u32 %v4683_v17, 16  ;;  %v977_v31 = vsel %vm4582_vm10, %v972_v57, %v976_v1  ;;  %v1405_v7 = vrot.slane %v1403_v19, 5  ;;  %v677_v32 = vsel %vm4650_vm13, %v452_v20, %v676_v45 }
  0x77   : > { %v1598_v2 = vsel %vm4582_vm10, %v1593_v53, %v1597_v62  ;;  %v987_v60 = vsel %vm4582_vm10, %v982_v22, %v986_v13  ;;  %v1396_v12 = vsel %vm4582_vm10, %v1391_v18, %v1395_v6  ;;  %v1400_v34 = vor.u32 %v1399_v36, %v1395_v6  ;;  %678 = vst [vmem:[#allocation2 + $0x80] sm:$0x1] %v677_v32 }
  0x78   : > { %v4036_v11 = vcombine.low %v1588_v16, %v1598_v2  ;;  %2762 = vrot.lane.b32.xlu1 %v4005_v43, %s4349_s15  ;;  %v3988_v47 = vcombine.low %v977_v31, %v987_v60  ;;  %v2196_v48 = vrot.slane %v2194_v26, 5  ;;  %v2200_v28 = vrot.slane %v2198_v24, 4  ;;  %v4221_v60 = vld [vmem:[%s6404_s1 + $0x38] sm:$0xff]  }
  0x79   : > { %v316_v49 = vrot.slane %v4632_v21, 4  ;;  %v1401_v50 = vrot.slane %v1400_v34, 4  ;;  %v4791_v51 = vrot.slane %v1999_v3, 4  ;;  %v2002_v5 = vshll.u32 %v4698_v33, 16  ;;  %3647 = vmatpush1.bf16.msra.mxu0 %v4221_v60  ;;  %4147 = vmatpush1.bf16.msra.mxu1 %v4221_v60 }
  0x7a   : > { %v2008_v27 = vrot.slane %v2006_v37, 4  ;;  %2680 = vrot.lane.b32.xlu0 %v3988_v47, %s4350_s21  ;;  %v2197_v17 = vsel %vm4582_vm10, %v4771_v25, %v2196_v48  ;;  %v2201_v24 = vor.u32 %v2200_v28, %v2196_v48  ;;  %v989_v43 = vshrl.u32 %v739_v40, 16  ;;  %v723_v37 = vld [vmem:[#allocation2 + $0xc] sm:$0xf]  ;;  %3648 = vmatprep.subr.bf16.mxu0 %v4348_v0 }
  0x7b   : > { %v621_v21 = vsel %vm4650_vm13, %v316_v49, %v620_v35  ;;  %v1406_v44 = vsel %vm4582_vm10, %v1401_v50, %v1405_v7  ;;  %v4804_v46 = vrot.slane %v2002_v5, 5  ;;  %v992_v3 = vshll.u32 %v739_v40, 16  ;;  %v4829_v40 = vld [vmem:[#allocation2 + $0x1c] sm:$0xf]  ;;  %4139 = vmatprep.subr.bf16.mxu1 %v4348_v0 }
  0x7c   : > { %622 = vst [vmem:[#allocation2 + $0x20] sm:$0x1] %v621_v21  ;;  %v998_v33 = vshll.u32 %v4686_v23, 16  ;;  %2936 = vrot.lane.b32.xlu1 %v4036_v11, %s4354_s4  ;;  %v4028_v42 = vcombine.low %v1396_v12, %v1406_v44  ;;  %v2202_v8 = vrot.slane %v2201_v24, 4  ;;  %v991_v63 = vrot.slane %v989_v43, 4 }
  0x7d   : > { %v1002_v1 = vshrl.u32 %v4686_v23, 16  ;;  %v2005_v9 = vsel %vm4582_vm10, %v4791_v51, %v4804_v46  ;;  %v2009_v13 = vor.u32 %v2008_v27, %v4804_v46  ;;  %v994_v55 = vrot.slane %v992_v3, 5  ;;  %v4222_v46 = vld [vmem:[%s6404_s1 + $0x30] sm:$0xff]  }
  0x7e   : > { %v1000_v14 = vrot.slane %v998_v33, 5  ;;  %2920 = vrot.lane.b32.xlu0 %v4028_v42, %s4354_s4  ;;  %v1984_v16 = vld [vmem:[#allocation2 + $0x80] sm:$0x1]  ;;  %v1008_v18 = vshll.u32 %v4736_v15, 16  ;;  %v797_v61 = vshrl.u32 %v723_v37, 16  ;;  %v800_v62 = vshll.u32 %v723_v37, 16  ;;  %3649 = vmatpush1.bf16.msra.mxu0 %v4222_v46 }
  0x7f   : > { %v1004_v54 = vrot.slane %v1002_v1, 4  ;;  %v2204_v56 = vshll.u32 %v1984_v16, 16  ;;  %v2010_v36 = vrot.slane %v2009_v13, 4  ;;  %v995_v23 = vor.u32 %v994_v55, %v991_v63  ;;  %v4833_v27 = vld [vmem:[#allocation2 + $0x80] sm:$0x1]  ;;  %4148 = vmatpush1.bf16.msra.mxu1 %v4222_v46  ;;  %3650 = vmatprep.subr.bf16.mxu0 %v4348_v0 }
  0x80   : > { %v806_v45 = vshll.u32 %v4692_v30, 16  ;;  %v1010_v53 = vrot.slane %v1008_v18, 5  ;;  %v799_v19 = vrot.slane %v797_v61, 4  ;;  %v802_v20 = vrot.slane %v800_v62, 5  ;;  %v1768_v61 = vld [vmem:[#allocation2 + $0x18] sm:$0xe]  ;;  %4140 = vmatprep.subr.bf16.mxu1 %v4348_v0 }
  0x81   : > { %v1005_v57 = vor.u32 %v1004_v54, %v1000_v14  ;;  %v2206_v22 = vrot.slane %v2204_v56, 5  ;;  %v996_v6 = vrot.slane %v995_v23, 4  ;;  %v810_v26 = vshrl.u32 %v4692_v30, 16  ;;  %v4827_v30 = vld [vmem:[#allocation2 + $0x18] sm:$0xf]  ;;  %v4223_v23 = vld [vmem:[%s6404_s1 + $0x28] sm:$0xff]  }
  0x82   : > { %v808_v25 = vrot.slane %v806_v45, 5  ;;  %v803_v7 = vor.u32 %v802_v20, %v799_v19  ;;  %v816_v15 = vshll.u32 %v4734_v38, 16  ;;  %v1600_v32 = vshrl.u32 %v4717_v58, 16  ;;  %3651 = vmatpush1.bf16.msra.mxu0 %v4223_v23 }
  0x83   : > { %v1976_v31 = vld [vmem:[#allocation2 + $0x20] sm:$0x1]  ;;  %v1006_v2 = vrot.slane %v1005_v57, 4  ;;  %v2207_v11 = vsel %vm4582_vm10, %v2202_v8, %v2206_v22  ;;  %v1001_v34 = vsel %vm4582_vm10, %v996_v6, %v1000_v14  ;;  %v812_v35 = vrot.slane %v810_v26, 4  ;;  %v1776_v8 = vld [vmem:[#allocation2 + $0x78] sm:$0xe]  ;;  %4149 = vmatpush1.bf16.msra.mxu1 %v4223_v23  ;;  %3652 = vmatprep.subr.bf16.mxu0 %v4348_v0 }
  0x84   : > { %v2012_v12 = vshll.u32 %v1976_v31, 16  ;;  %v4084_v47 = vcombine.low %v2197_v17, %v2207_v11  ;;  %v804_v48 = vrot.slane %v803_v7, 4  ;;  %v818_v28 = vrot.slane %v816_v15, 5  ;;  %v4843_v44 = vld [vmem:[#allocation2 + $0x20] sm:$0x1]  ;;  %4141 = vmatprep.subr.bf16.mxu1 %v4348_v0 }
  0x85   : > { %v1011_v38 = vsel %vm4582_vm10, %v1006_v2, %v1010_v53  ;;  %v813_v51 = vor.u32 %v812_v35, %v808_v25  ;;  %v1602_v5 = vrot.slane %v1600_v32, 4  ;;  %v1603_v24 = vshll.u32 %v4717_v58, 16  ;;  %v268_v26 = vld [vmem:[%s4455_s28 + $0x50] sm:$0xf]  ;;  %v269_v32 = vld [vmem:[%s4455_s28 + $0x54] sm:$0xf] }
  0x86   : > { %v2014_v49 = vrot.slane %v2012_v12, 5  ;;  %v3989_v50 = vcombine.low %v1001_v34, %v1011_v38  ;;  %3192 = vrot.lane.b32.xlu1 %v4084_v47, %s4355_s7  ;;  %v809_v17 = vsel %vm4582_vm10, %v804_v48, %v808_v25  ;;  %v1613_v21 = vshrl.u32 %v4719_v59, 16  ;;  %v4226_v35 = vld [vmem:[%s6404_s1 + $0x20] sm:$0xff]  }
  0x87   : > { %v1408_v43 = vshrl.u32 %v4827_v30, 16  ;;  %v814_v33 = vrot.slane %v813_v51, 4  ;;  %v1411_v37 = vshll.u32 %v4827_v30, 16  ;;  %v1421_v42 = vshrl.u32 %v4829_v40, 16  ;;  %3653 = vmatpush1.bf16.msra.mxu0 %v4226_v35  ;;  %4150 = vmatpush1.bf16.msra.mxu1 %v4226_v35 }
  0x88   : > { %v2015_v3 = vsel %vm4582_vm10, %v2010_v36, %v2014_v49  ;;  %v1605_v1 = vrot.slane %v1603_v24, 5  ;;  %v4013_v55 = vcombine.low %v4827_v30, %v4829_v40  ;;  %v1609_v54 = vshll.u32 %v4719_v59, 16  ;;  %3654 = vmatprep.subr.bf16.mxu0 %v4348_v0  ;;  %4142 = vmatprep.subr.bf16.mxu1 %v4348_v0 }
  0x89   : > { %v4076_v63 = vcombine.low %v2005_v9, %v2015_v3  ;;  %v1410_v13 = vrot.slane %v1408_v43, 4  ;;  %v819_v14 = vsel %vm4582_vm10, %v814_v33, %v818_v28  ;;  %v1413_v16 = vrot.slane %v1411_v37, 5 }
  0x8a   : > { %v1615_v18 = vrot.slane %v1613_v21, 4  ;;  %2682 = vrot.lane.b32.xlu1 %v3989_v50, %s4350_s21  ;;  %v3981_v9 = vcombine.low %v809_v17, %v819_v14  ;;  %v1606_v62 = vor.u32 %v1605_v1, %v1602_v5  ;;  %v1619_v56 = vshll.u32 %v4833_v27, 16 }
  0x8b   : > { %3176 = vrot.lane.b32.xlu0 %v4076_v63, %s4355_s7  ;;  %v1417_v36 = vshll.u32 %v4829_v40, 16  ;;  %v1611_v45 = vrot.slane %v1609_v54, 5  ;;  %v1414_v57 = vor.u32 %v1413_v16, %v1410_v13  ;;  %v1423_v53 = vrot.slane %v1421_v42, 4  ;;  %v679_v42 = vld [vmem:[#allocation2 + $0x84] sm:$0xf] }
  0x8c   : > { %v1427_v19 = vshll.u32 %v4843_v44, 16  ;;  %v1607_v20 = vrot.slane %v1606_v62, 4  ;;  %v1621_v22 = vrot.slane %v1619_v56, 5  ;;  %v3941_v25 = vrot.slane %v1776_v8, 9 }
  0x8d   : > { %v1419_v6 = vrot.slane %v1417_v36, 5  ;;  %v1616_v31 = vor.u32 %v1615_v18, %v1611_v45  ;;  %v1415_v2 = vrot.slane %v1414_v57, 4  ;;  %v1896_v15 = vrot.slane %v4719_v59, 5  ;;  %v252_v59 = vld [vmem:[%s4455_s28 + $0x10] sm:$0xf]  ;;  %v4228_v57 = vld [vmem:[%s6404_s1 + $0x10] sm:$0xff]  }
  0x8e   : > { %v1429_v7 = vrot.slane %v1427_v19, 5  ;;  %2858 = vrot.lane.b32.xlu1 %v4021_v4, %s4351_s27  ;;  %v1612_v60 = vsel %vm4582_vm10, %v1607_v20, %v1611_v45  ;;  %v1899_v12 = vrot.slane %v4833_v27, 5  ;;  %v3933_v34 = vrot.slane %v1768_v61, 9  ;;  %v253_v4 = vld [vmem:[%s4455_s28 + $0x14] sm:$0xf] }
  0x8f   : > { %2666 = vrot.lane.b32.xlu0 %v3981_v9, %s4350_s21  ;;  %v1424_v11 = vor.u32 %v1423_v53, %v1419_v6  ;;  %v1617_v30 = vrot.slane %v1616_v31, 4  ;;  %v1420_v47 = vsel %vm4582_vm10, %v1415_v2, %v1419_v6  ;;  %v1897_v38 = vsel %vm4572_vm9, %v3941_v25, %v1896_v15  ;;  %v623_v61 = vld [vmem:[#allocation2 + $0x24] sm:$0xf]  ;;  %v683_v9 = vld [vmem:[#allocation2 + $0x8c] sm:$0x1] }
  0x90   : > { %v1898_v58 = vrot.slane %v1896_v15, 4  ;;  %v1840_v28 = vrot.slane %v4829_v40, 5  ;;  %v1843_v49 = vrot.slane %v4843_v44, 5  ;;  %v454_v50 = vshrl.u32 %v268_v26, 16  ;;  %v4227_v44 = vld [vmem:[%s6404_s1 + $0x18] sm:$0xff]  }
  0x91   : > { %v1425_v48 = vrot.slane %v1424_v11, 4  ;;  %v1622_v51 = vsel %vm4582_vm10, %v1617_v30, %v1621_v22  ;;  %v457_v27 = vshll.u32 %v268_v26, 16  ;;  %v462_v17 = vshrl.u32 %v269_v32, 16  ;;  %3655 = vmatpush1.bf16.msra.mxu0 %v4227_v44  ;;  %4151 = vmatpush1.bf16.msra.mxu1 %v4227_v44  ;;  %v627_v45 = vld [vmem:[#allocation2 + $0x2c] sm:$0x1] }
  0x92   : > { %v1900_v5 = vsel %vm4572_vm9, %v1898_v58, %v1899_v12  ;;  %v4037_v40 = vcombine.low %v1612_v60, %v1622_v51  ;;  %v1841_v43 = vsel %vm4572_vm9, %v3933_v34, %v1840_v28  ;;  %v1842_v3 = vrot.slane %v1840_v28, 4  ;;  %3656 = vmatprep.subr.bf16.mxu0 %v4348_v0  ;;  %4143 = vmatprep.subr.bf16.mxu1 %v4348_v0  ;;  %v4916_v20 = vld [vmem:[#allocation2 + $0x7c] sm:$0xf]  ;;  %v725_v15 = vld [vmem:[#allocation2 + $0x18] sm:$0xf] }
  0x93   : > { %2842 = vrot.lane.b32.xlu0 %v4013_v55, %s4351_s27  ;;  %v1430_v24 = vsel %vm4582_vm10, %v1425_v48, %v1429_v7  ;;  %v4053_v21 = vcombine.low %v1897_v38, %v1900_v5  ;;  %v456_v33 = vrot.slane %v454_v50, 7  ;;  %v464_v37 = vrot.slane %v462_v17, 7  ;;  %v741_v55 = vld [vmem:[#allocation2 + $0x78] sm:$0xf]  ;;  %v4921_v7 = vld [vmem:[#allocation2 + $0x80] sm:$0x1] }
  0x94   : > { %v4029_v46 = vcombine.low %v1420_v47, %v1430_v24  ;;  %2938 = vrot.lane.b32.xlu1 %v4037_v40, %s4354_s4  ;;  %v465_v8 = vshll.u32 %v269_v32, 16  ;;  %v318_v63 = vshrl.u32 %v252_v59, 16  ;;  %v321_v1 = vshll.u32 %v252_v59, 16  ;;  %v4926_v34 = vld [vmem:[#allocation2 + $0x1c] sm:$0xf] }
  0x95   : > { %v326_v13 = vshrl.u32 %v253_v4, 16  ;;  %v1844_v14 = vsel %vm4572_vm9, %v1842_v3, %v1843_v49  ;;  %v459_v16 = vor.u32 %v457_v27, %v456_v33  ;;  %v460_v54 = vrot.slane %v456_v33, 4  ;;  %3657 = vmatpush1.bf16.msra.mxu0 %v4228_v57  ;;  %4152 = vmatpush1.bf16.msra.mxu1 %v4228_v57  ;;  %v4941_v50 = vld [vmem:[#allocation2 + $0x20] sm:$0x1] }
  0x96   : > { %v329_v18 = vshll.u32 %v253_v4, 16  ;;  %v4045_v62 = vcombine.low %v1841_v43, %v1844_v14  ;;  %v467_v56 = vor.u32 %v465_v8, %v464_v37  ;;  %v320_v36 = vrot.slane %v318_v63, 7  ;;  %3658 = vmatprep.subr.bf16.mxu0 %v4348_v0  ;;  %4144 = vmatprep.subr.bf16.mxu1 %v4348_v0  ;;  %v4945_v43 = vld [vmem:[#allocation2 + $0x78] sm:$0xe] }
  0x97   : > { %2922 = vrot.lane.b32.xlu0 %v4029_v46, %s4354_s4  ;;  %v328_v23 = vrot.slane %v326_v13, 7  ;;  %v680_v53 = vsel %vm4593_vm11, %v459_v16, %v679_v42  ;;  %v469_v19 = vrot.slane %v464_v37, 4  ;;  %v1013_v22 = vshrl.u32 %v741_v55, 16 }
  0x98   : > { %v1016_v6 = vshll.u32 %v741_v55, 16  ;;  %3018 = vrot.lane.b32.xlu1 %v4053_v21, %s4353_s30  ;;  %v468_v25 = vsel %vm4599_vm12, %v460_v54, %v467_v56  ;;  %681 = vst [vmem:[#allocation2 + $0x84] sm:$0xf] %v680_v53  ;;  %v323_v26 = vor.u32 %v321_v1, %v320_v36  ;;  %v324_v31 = vrot.slane %v320_v36, 4 }
  0x99   : > { %v331_v2 = vor.u32 %v329_v18, %v328_v23  ;;  %682 = vst.msk [vmem:[#allocation2 + $0x88] sm:$0xf] %vm192_vm0, %v468_v25  ;;  %v684_v32 = vsel %vm4650_vm13, %v469_v19, %v683_v9  ;;  %v333_v60 = vrot.slane %v328_v23, 4  ;;  %v1015_v11 = vrot.slane %v1013_v22, 4 }
  0x9a   : > { %v1018_v12 = vrot.slane %v1016_v6, 5  ;;  %v624_v30 = vsel %vm4593_vm11, %v323_v26, %v623_v61  ;;  %685 = vst [vmem:[#allocation2 + $0x8c] sm:$0x1] %v684_v32  ;;  %v1022_v47 = vshll.u32 %v4916_v20, 16  ;;  %v1026_v38 = vshrl.u32 %v4916_v20, 16 }
  0x9b   : > { %3002 = vrot.lane.b32.xlu0 %v4045_v62, %s4353_s30  ;;  %v332_v35 = vsel %vm4599_vm12, %v324_v31, %v331_v2  ;;  %625 = vst [vmem:[#allocation2 + $0x24] sm:$0xf] %v624_v30  ;;  %v628_v58 = vsel %vm4650_vm13, %v333_v60, %v627_v45  ;;  %v1032_v4 = vshll.u32 %v4921_v7, 16  ;;  %v821_v48 = vshrl.u32 %v725_v15, 16  ;;  %v4231_v30 = vld [vmem:[%s6404_s1 + $0x8] sm:$0xff]  }
  0x9c   : > { %626 = vst.msk [vmem:[#allocation2 + $0x28] sm:$0xf] %vm192_vm0, %v332_v35  ;;  %v1019_v59 = vor.u32 %v1018_v12, %v1015_v11  ;;  %629 = vst [vmem:[#allocation2 + $0x2c] sm:$0x1] %v628_v58  ;;  %v1024_v28 = vrot.slane %v1022_v47, 5  ;;  %v1028_v49 = vrot.slane %v1026_v38, 4  ;;  %3659 = vmatpush1.bf16.msra.mxu0 %v4231_v30  ;;  %4153 = vmatpush1.bf16.msra.mxu1 %v4231_v30 }
  0x9d   : > { %v824_v51 = vshll.u32 %v725_v15, 16  ;;  %v830_v5 = vshll.u32 %v4926_v34, 16  ;;  %v834_v27 = vshrl.u32 %v4926_v34, 16  ;;  %v823_v24 = vrot.slane %v821_v48, 4  ;;  %3660 = vmatprep.subr.bf16.mxu0 %v4348_v0  ;;  %4145 = vmatprep.subr.bf16.mxu1 %v4348_v0 }
  0x9e   : > { %v1020_v17 = vrot.slane %v1019_v59, 4  ;;  %v1029_v40 = vor.u32 %v1028_v49, %v1024_v28  ;;  %v1034_v46 = vrot.slane %v1032_v4, 5  ;;  %v840_v33 = vshll.u32 %v4941_v50, 16 }
  0x9f   : > { %v826_v21 = vrot.slane %v824_v51, 5  ;;  %v1962_v44 = vld [vmem:[#allocation2 + $0x84] sm:$0xf]  ;;  %v4947_v3 = vrot.slane %v830_v5, 5  ;;  %v836_v1 = vrot.slane %v834_v27, 4  ;;  %v3926_v54 = vrot.slane %v4945_v43, 9 }
  0xa0   : > { %v4950_v37 = vld [vmem:[#allocation2 + $0x88] sm:$0xf]  ;;  %v2209_v42 = vshrl.u32 %v1962_v44, 16  ;;  %v2212_v8 = vshll.u32 %v1962_v44, 16  ;;  %v1030_v63 = vrot.slane %v1029_v40, 4  ;;  %v1025_v56 = vsel %vm4582_vm10, %v1020_v17, %v1024_v28 }
  0xa1   : > { %v2222_v13 = vshrl.u32 %v4950_v37, 16  ;;  %v4069_v55 = vcombine.low %v1962_v44, %v4950_v37  ;;  %v4954_v14 = vld [vmem:[#allocation2 + $0x8c] sm:$0x1]  ;;  %v2218_v16 = vshll.u32 %v4950_v37, 16  ;;  %v827_v36 = vor.u32 %v826_v21, %v823_v24  ;;  %v1158_v40 = vld [vmem:[#allocation2 + $0x18] sm:$0xe] }
  0xa2   : > { %v2211_v18 = vrot.slane %v2209_v42, 4  ;;  %v2214_v61 = vrot.slane %v2212_v8, 5  ;;  %v1946_v9 = vld [vmem:[#allocation2 + $0x24] sm:$0xf]  ;;  %v1035_v53 = vsel %vm4582_vm10, %v1030_v63, %v1034_v46  ;;  %v2228_v15 = vshll.u32 %v4954_v14, 16 }
  0xa3   : > { %v4958_v62 = vld [vmem:[#allocation2 + $0x28] sm:$0xf]  ;;  %3114 = vrot.lane.b32.xlu1 %v4069_v55, %s4352_s29  ;;  %v2017_v23 = vshrl.u32 %v1946_v9, 16  ;;  %v2020_v45 = vshll.u32 %v1946_v9, 16  ;;  %v2220_v6 = vrot.slane %v2218_v16, 5  ;;  %v2224_v25 = vrot.slane %v2222_v13, 4 }
  0xa4   : > { %v2030_v57 = vshrl.u32 %v4958_v62, 16  ;;  %v4061_v19 = vcombine.low %v1946_v9, %v4958_v62  ;;  %v2215_v22 = vor.u32 %v2214_v61, %v2211_v18  ;;  %v4967_v26 = vld [vmem:[#allocation2 + $0x2c] sm:$0x1]  ;;  %v837_v32 = vor.u32 %v836_v1, %v4947_v3  ;;  %v4986_v44 = vld [vmem:[#allocation2 + $0x84] sm:$0xf] }
  0xa5   : > { %v2019_v31 = vrot.slane %v2017_v23, 4  ;;  %v2022_v2 = vrot.slane %v2020_v45, 5  ;;  %v2225_v11 = vor.u32 %v2224_v25, %v2220_v6  ;;  %v2026_v12 = vshll.u32 %v4958_v62, 16  ;;  %v4993_v1 = vld [vmem:[#allocation2 + $0x88] sm:$0xf] }
  0xa6   : > { %3098 = vrot.lane.b32.xlu0 %v4061_v19, %s4352_s29  ;;  %v2216_v60 = vrot.slane %v2215_v22, 4  ;;  %v2032_v35 = vrot.slane %v2030_v57, 4  ;;  %v2230_v47 = vrot.slane %v2228_v15, 5  ;;  %v2036_v58 = vshll.u32 %v4967_v26, 16  ;;  %v5013_v45 = vld [vmem:[#allocation2 + $0x28] sm:$0xf] }
  0xa7   : > { %v2023_v38 = vor.u32 %v2022_v2, %v2019_v31  ;;  %v1295_v59 = vrot.slane %v4916_v20, 5  ;;  %v2226_v48 = vrot.slane %v2225_v11, 4  ;;  %v2028_v28 = vrot.slane %v2026_v12, 5  ;;  %v1377_v2 = vld [vmem:[#allocation2 + $0x8c] sm:$0x1] }
  0xa8   : > { %v2221_v4 = vsel %vm4582_vm10, %v2216_v60, %v2220_v6  ;;  %v3990_v49 = vcombine.low %v1025_v56, %v1035_v53  ;;  %v2038_v5 = vrot.slane %v2036_v58, 5  ;;  %v828_v27 = vrot.slane %v827_v36, 4  ;;  %v4232_v56 = vld [vmem:[%s6404_s1] sm:$0xff]   ;;  %v1369_v12 = vld [vmem:[#allocation2 + $0x2c] sm:$0x1] }
  0xa9   : > { %v2024_v51 = vrot.slane %v2023_v38, 4  ;;  %v838_v17 = vrot.slane %v837_v32, 4  ;;  %v2231_v20 = vsel %vm4582_vm10, %v2226_v48, %v2230_v47  ;;  %v2033_v24 = vor.u32 %v2032_v35, %v2028_v28  ;;  %3661 = vmatpush1.bf16.msra.mxu0 %v4232_v56  ;;  %4154 = vmatpush1.bf16.msra.mxu1 %v4232_v56  ;;  %v4233_v35 = vld [vmem:[%s6404_s1 + $0x40] sm:$0xff]   ;;  %v271_v56 = vld [vmem:[%s4455_s28 + $0x5c] sm:$0xf] }
  0xaa   : > { %v842_v21 = vrot.slane %v840_v33, 5  ;;  %v1296_v43 = vsel %vm4572_vm9, %v3926_v54, %v1295_v59  ;;  %v4085_v46 = vcombine.low %v2221_v4, %v2231_v20  ;;  %v833_v8 = vsel %vm4582_vm10, %v828_v27, %v4947_v3  ;;  %v5002_v3 = vld [vmem:[#allocation2 + $0x24] sm:$0xf]  ;;  %3676 = vmatprep.subr.bf16.mxu0 %v4348_v0  ;;  %4146 = vmatprep.subr.bf16.mxu1 %v4348_v0 }
  0xab   : > { %v2029_v42 = vsel %vm4582_vm10, %v2024_v51, %v2028_v28  ;;  %v1297_v63 = vrot.slane %v1295_v59, 4  ;;  %v2034_v13 = vrot.slane %v2033_v24, 4  ;;  %v1298_v55 = vrot.slane %v4921_v7, 5  ;;  %v1777_v58 = vld [vmem:[#allocation2 + $0x84] sm:$0xe] }
  0xac   : > { %v843_v33 = vsel %vm4582_vm10, %v838_v17, %v842_v21  ;;  %v3918_v16 = vrot.slane %v1158_v40, 9  ;;  %3194 = vrot.lane.b32.xlu1 %v4085_v46, %s4355_s7  ;;  %v1239_v18 = vrot.slane %v4926_v34, 5  ;;  %v1242_v61 = vrot.slane %v4941_v50, 5  ;;  %v1769_v17 = vld [vmem:[#allocation2 + $0x24] sm:$0xe] }
  0xad   : > { %v3982_v54 = vcombine.low %v833_v8, %v843_v33  ;;  %v1624_v9 = vshrl.u32 %v4986_v44, 16  ;;  %v2039_v36 = vsel %vm4582_vm10, %v2034_v13, %v2038_v5  ;;  %v1299_v7 = vsel %vm4572_vm9, %v1297_v63, %v1298_v55  ;;  %3677 = vmatpush2.bf16.msra.mxu0 %v4233_v35  ;;  %4155 = vmatpush2.bf16.msra.mxu1 %v4233_v35  ;;  %v270_v8 = vld [vmem:[%s4455_s28 + $0x58] sm:$0xf] }
  0xae   : > { %v1627_v23 = vshll.u32 %v4986_v44, 16  ;;  %v1637_v34 = vshrl.u32 %v4993_v1, 16  ;;  %v4077_v50 = vcombine.low %v2029_v42, %v2039_v36  ;;  %v4006_v57 = vcombine.low %v1296_v43, %v1299_v7 }
  0xaf   : > { %v1240_v53 = vsel %vm4572_vm9, %v3918_v16, %v1239_v18  ;;  %v1241_v19 = vrot.slane %v1239_v18, 4  ;;  %v1626_v22 = vrot.slane %v1624_v9, 4  ;;  %v4022_v25 = vcombine.low %v4986_v44, %v4993_v1 }
  0xb0   : > { %v1629_v6 = vrot.slane %v1627_v23, 5  ;;  %v1432_v31 = vshrl.u32 %v5002_v3, 16  ;;  %3178 = vrot.lane.b32.xlu0 %v4077_v50, %s4355_s7  ;;  %2684 = vrot.lane.b32.xlu1 %v3990_v49, %s4350_s21  ;;  %v1435_v32 = vshll.u32 %v5002_v3, 16  ;;  %v1445_v60 = vshrl.u32 %v5013_v45, 16  ;;  %v254_v50 = vld [vmem:[%s4455_s28 + $0x18] sm:$0xf] }
  0xb1   : > { %v1243_v15 = vsel %vm4572_vm9, %v1241_v19, %v1242_v61  ;;  %v4014_v11 = vcombine.low %v5002_v3, %v5013_v45  ;;  %v1633_v38 = vshll.u32 %v4993_v1, 16  ;;  %v1639_v4 = vrot.slane %v1637_v34, 4 }
  0xb2   : > { %v3998_v0 = vcombine.low %v1240_v53, %v1243_v15  ;;  %v1434_v30 = vrot.slane %v1432_v31, 4  ;;  %v1630_v47 = vor.u32 %v1629_v6, %v1626_v22  ;;  %v1437_v59 = vrot.slane %v1435_v32, 5  ;;  %v255_v6 = vld [vmem:[%s4455_s28 + $0x1c] sm:$0xf]  ;;  %v743_v32 = vld [vmem:[#allocation2 + $0x84] sm:$0xf] }
  0xb3   : > { %v1643_v48 = vshll.u32 %v1377_v2, 16  ;;  %v1441_v28 = vshll.u32 %v5013_v45, 16  ;;  %v1635_v51 = vrot.slane %v1633_v38, 5  ;;  %v1447_v5 = vrot.slane %v1445_v60, 4 }
  0xb4   : > { %v1631_v49 = vrot.slane %v1630_v47, 4  ;;  %v1451_v27 = vshll.u32 %v1369_v12, 16  ;;  %2668 = vrot.lane.b32.xlu0 %v3982_v54, %s4350_s21  ;;  %2764 = vrot.lane.b32.xlu1 %v4006_v57, %s4349_s15  ;;  %v1438_v20 = vor.u32 %v1437_v59, %v1434_v30  ;;  %v3942_v21 = vrot.slane %v1777_v58, 9 }
  0xb5   : > { %v1645_v40 = vrot.slane %v1643_v48, 5  ;;  %v1443_v24 = vrot.slane %v1441_v28, 5  ;;  %v1640_v44 = vor.u32 %v1639_v4, %v1635_v51  ;;  %v1903_v42 = vrot.slane %v4993_v1, 5  ;;  %v630_v4 = vld [vmem:[#allocation2 + $0x30] sm:$0xf] }
  0xb6   : > { %v1636_v43 = vsel %vm4582_vm10, %v1631_v49, %v1635_v51  ;;  %v1453_v46 = vrot.slane %v1451_v27, 5  ;;  %v1439_v63 = vrot.slane %v1438_v20, 4  ;;  %v1906_v33 = vrot.slane %v1377_v2, 5  ;;  %v690_v48 = vld [vmem:[#allocation2 + $0x98] sm:$0x1] }
  0xb7   : > { %v1448_v13 = vor.u32 %v1447_v5, %v1443_v24  ;;  %v3934_v55 = vrot.slane %v1769_v17, 9  ;;  %v1641_v16 = vrot.slane %v1640_v44, 4  ;;  %v1904_v54 = vsel %vm4572_vm9, %v3942_v21, %v1903_v42  ;;  %v634_v51 = vld [vmem:[#allocation2 + $0x38] sm:$0x1]  ;;  %v5067_v21 = vld [vmem:[#allocation2 + $0x8c] sm:$0x1] }
  0xb8   : > { %v1905_v18 = vrot.slane %v1903_v42, 4  ;;  %v1847_v61 = vrot.slane %v5013_v45, 5  ;;  %2748 = vrot.lane.b32.xlu0 %v3998_v0, %s4349_s15  ;;  %2860 = vrot.lane.b32.xlu1 %v4022_v25, %s4351_s27  ;;  %v1444_v1 = vsel %vm4582_vm10, %v1439_v63, %v1443_v24  ;;  %v1850_v3 = vrot.slane %v1369_v12, 5  ;;  %v686_v0 = vld [vmem:[#allocation2 + $0x90] sm:$0xf] }
  0xb9   : > { %v1449_v9 = vrot.slane %v1448_v13, 4  ;;  %v471_v36 = vshrl.u32 %v270_v8, 16  ;;  %v1646_v7 = vsel %vm4582_vm10, %v1641_v16, %v1645_v40  ;;  %v474_v2 = vshll.u32 %v270_v8, 16  ;;  %v5065_v24 = vld [vmem:[#allocation2 + $0x88] sm:$0xf] }
  0xba   : > { %v1907_v23 = vsel %vm4572_vm9, %v1905_v18, %v1906_v33  ;;  %v1848_v34 = vsel %vm4572_vm9, %v3934_v55, %v1847_v61  ;;  %v1849_v45 = vrot.slane %v1847_v61, 4  ;;  %v4038_v57 = vcombine.low %v1636_v43, %v1646_v7  ;;  %v727_v8 = vld [vmem:[#allocation2 + $0x24] sm:$0xf] }
  0xbb   : > { %v1454_v53 = vsel %vm4582_vm10, %v1449_v9, %v1453_v46  ;;  %v4054_v19 = vcombine.low %v1904_v54, %v1907_v23  ;;  %v473_v22 = vrot.slane %v471_v36, 7  ;;  %v479_v15 = vshrl.u32 %v271_v56, 16 }
  0xbc   : > { %v4030_v25 = vcombine.low %v1444_v1, %v1454_v53  ;;  %v1851_v31 = vsel %vm4572_vm9, %v1849_v45, %v1850_v3  ;;  %2844 = vrot.lane.b32.xlu0 %v4014_v11, %s4351_s27  ;;  %2940 = vrot.lane.b32.xlu1 %v4038_v57, %s4354_s4  ;;  %v482_v35 = vshll.u32 %v271_v56, 16  ;;  %v335_v30 = vshrl.u32 %v254_v50, 16  ;;  %v5080_v1 = vld [vmem:[#allocation2 + $0x28] sm:$0xf] }
  0xbd   : > { %v4046_v60 = vcombine.low %v1848_v34, %v1851_v31  ;;  %v477_v12 = vrot.slane %v473_v22, 4  ;;  %v476_v47 = vor.u32 %v474_v2, %v473_v22  ;;  %v481_v38 = vrot.slane %v479_v15, 7  ;;  %v5091_v34 = vld [vmem:[#allocation2 + $0x2c] sm:$0x1]  ;;  %v1167_v22 = vld [vmem:[#allocation2 + $0x84] sm:$0xe] }
  0xbe   : > { %v338_v58 = vshll.u32 %v254_v50, 16  ;;  %v343_v59 = vshrl.u32 %v255_v6, 16  ;;  %v337_v28 = vrot.slane %v335_v30, 7  ;;  %v346_v49 = vshll.u32 %v255_v6, 16 }
  0xbf   : > { %v1037_v5 = vshrl.u32 %v743_v32, 16  ;;  %v1040_v27 = vshll.u32 %v743_v32, 16  ;;  %v484_v17 = vor.u32 %v482_v35, %v481_v38  ;;  %v687_v11 = vsel %vm4593_vm11, %v476_v47, %v686_v0 }
  0xc0   : > { %v345_v40 = vrot.slane %v343_v59, 7  ;;  %v486_v20 = vrot.slane %v481_v38, 4  ;;  %2924 = vrot.lane.b32.xlu0 %v4030_v25, %s4354_s4  ;;  %3020 = vrot.lane.b32.xlu1 %v4054_v19, %s4353_s30  ;;  %688 = vst [vmem:[#allocation2 + $0x90] sm:$0xf] %v687_v11  ;;  %v340_v43 = vor.u32 %v338_v58, %v337_v28  ;;  %v341_v44 = vrot.slane %v337_v28, 4 }
  0xc1   : > { %v1039_v46 = vrot.slane %v1037_v5, 4  ;;  %v1042_v42 = vrot.slane %v1040_v27, 5  ;;  %v485_v63 = vsel %vm4599_vm12, %v477_v12, %v484_v17  ;;  %v1046_v18 = vshll.u32 %v5065_v24, 16 }
  0xc2   : > { %v348_v13 = vor.u32 %v346_v49, %v345_v40  ;;  %v691_v33 = vsel %vm4650_vm13, %v486_v20, %v690_v48  ;;  %v350_v55 = vrot.slane %v345_v40, 4  ;;  %689 = vst.msk [vmem:[#allocation2 + $0x94] sm:$0xf] %vm192_vm0, %v485_v63  ;;  %v631_v16 = vsel %vm4593_vm11, %v340_v43, %v630_v4 }
  0xc3   : > { %692 = vst [vmem:[#allocation2 + $0x98] sm:$0x1] %v691_v33  ;;  %v1043_v54 = vor.u32 %v1042_v42, %v1039_v46  ;;  %v1050_v61 = vshrl.u32 %v5065_v24, 16  ;;  %632 = vst [vmem:[#allocation2 + $0x30] sm:$0xf] %v631_v16  ;;  %v1056_v56 = vshll.u32 %v5067_v21, 16 }
  0xc4   : > { %v349_v9 = vsel %vm4599_vm12, %v341_v44, %v348_v13  ;;  %v635_v3 = vsel %vm4650_vm13, %v350_v55, %v634_v51  ;;  %v845_v36 = vshrl.u32 %v727_v8, 16  ;;  %3004 = vrot.lane.b32.xlu0 %v4046_v60, %s4353_s30  ;;  %v5089_v7 = vrot.slane %v1046_v18, 5 }
  0xc5   : > { %633 = vst.msk [vmem:[#allocation2 + $0x34] sm:$0xf] %vm192_vm0, %v349_v9  ;;  %636 = vst [vmem:[#allocation2 + $0x38] sm:$0x1] %v635_v3  ;;  %v1052_v23 = vrot.slane %v1050_v61, 4  ;;  %v848_v45 = vshll.u32 %v727_v8, 16 }
  0xc6   : > { %v5093_v50 = vrot.slane %v1043_v54, 4  ;;  %v847_v57 = vrot.slane %v845_v36, 4  ;;  %v854_v53 = vshll.u32 %v5080_v1, 16  ;;  %v858_v19 = vshrl.u32 %v5080_v1, 16 }
  0xc7   : > { %v1053_v25 = vor.u32 %v1052_v23, %v5089_v7  ;;  %v850_v31 = vrot.slane %v848_v45, 5  ;;  %v1964_v15 = vld [vmem:[#allocation2 + $0x90] sm:$0xf]  ;;  %v1058_v32 = vrot.slane %v1056_v56, 5  ;;  %v864_v30 = vshll.u32 %v5091_v34, 16 }
  0xc8   : > { %v5100_v60 = vrot.slane %v854_v53, 5  ;;  %v860_v12 = vrot.slane %v858_v19, 4  ;;  %v2233_v35 = vshrl.u32 %v1964_v15, 16  ;;  %v2236_v0 = vshll.u32 %v1964_v15, 16  ;;  %v1159_v53 = vld [vmem:[#allocation2 + $0x24] sm:$0xe] }
  0xc9   : > { %v3927_v47 = vrot.slane %v1167_v22, 9  ;;  %v5103_v38 = vld [vmem:[#allocation2 + $0x94] sm:$0xf]  ;;  %v1049_v59 = vsel %vm4582_vm10, %v5093_v50, %v5089_v7  ;;  %v1054_v4 = vrot.slane %v1053_v25, 4  ;;  %v851_v48 = vor.u32 %v850_v31, %v847_v57 }
  0xca   : > { %6439 = vst [vmem:[#allocation6_spill] sm:$0xff] %v5103_v38  ;;  %v5105_v58 = vld [vmem:[#allocation2 + $0x98] sm:$0x1]  ;;  %v1302_v28 = vrot.slane %v5065_v24, 5  ;;  %v2235_v49 = vrot.slane %v2233_v35, 4  ;;  %v2238_v51 = vrot.slane %v2236_v0, 5  ;;  %v861_v17 = vor.u32 %v860_v12, %v5100_v60 }
  0xcb   : > { %6440 = vst [vmem:[#allocation7_spill] sm:$0xff] %v5105_v58  ;;  %v2246_v5 = vshrl.u32 %v5103_v38, 16  ;;  %v1948_v27 = vld [vmem:[#allocation2 + $0x30] sm:$0xf]  ;;  %v4070_v11 = vcombine.low %v1964_v15, %v5103_v38  ;;  %v2242_v44 = vshll.u32 %v5103_v38, 16  ;;  %v866_v63 = vrot.slane %v864_v30, 5 }
  0xcc   : > { %v5115_v40 = vld [vmem:[#allocation2 + $0x34] sm:$0xf]  ;;  %v2041_v20 = vshrl.u32 %v1948_v27, 16  ;;  %v2044_v43 = vshll.u32 %v1948_v27, 16  ;;  %v2239_v24 = vor.u32 %v2238_v51, %v2235_v49  ;;  %v5120_v8 = vld [vmem:[#allocation2 + $0x38] sm:$0x1]  ;;  %v5128_v9 = vsel %vm4572_vm9, %v3927_v47, %v1302_v28 }
  0xcd   : > { %6441 = vst [vmem:[#allocation8_spill] sm:$0xff] %v5115_v40  ;;  %v2054_v46 = vshrl.u32 %v5115_v40, 16  ;;  %v4062_v42 = vcombine.low %v1948_v27, %v5115_v40  ;;  %6442 = vst [vmem:[#allocation9_spill] sm:$0xff] %v5120_v8  ;;  %3116 = vrot.lane.b32.xlu1 %v4070_v11, %s4352_s29  ;;  %v2244_v55 = vrot.slane %v2242_v44, 5  ;;  %v2248_v16 = vrot.slane %v2246_v5, 4 }
  0xce   : > { %v2043_v13 = vrot.slane %v2041_v20, 4  ;;  %v2046_v33 = vrot.slane %v2044_v43, 5  ;;  %v2240_v54 = vrot.slane %v2239_v24, 4  ;;  %v2252_v18 = vshll.u32 %v5105_v58, 16  ;;  %v5140_v51 = vld [vmem:[#allocation2 + $0x90] sm:$0xf] }
  0xcf   : > { %3100 = vrot.lane.b32.xlu0 %v4062_v42, %s4352_s29  ;;  %v2050_v61 = vshll.u32 %v5115_v40, 16  ;;  %v2249_v3 = vor.u32 %v2248_v16, %v2244_v55  ;;  %v2056_v36 = vrot.slane %v2054_v46, 4  ;;  %v2060_v7 = vshll.u32 %v5120_v8, 16  ;;  %v5153_v20 = vld [vmem:[#allocation2 + $0x30] sm:$0xf] }
  0xd0   : > { %v2047_v56 = vor.u32 %v2046_v33, %v2043_v13  ;;  %v2245_v23 = vsel %vm4582_vm10, %v2240_v54, %v2244_v55  ;;  %v2254_v45 = vrot.slane %v2252_v18, 5  ;;  %v1304_v57 = vrot.slane %v1302_v28, 4  ;;  %v5161_v42 = vld [vmem:[#allocation2 + $0x34] sm:$0xf]  ;;  %v1378_v54 = vld [vmem:[#allocation2 + $0x98] sm:$0x1] }
  0xd1   : > { %v2052_v50 = vrot.slane %v2050_v61, 5  ;;  %v2250_v19 = vrot.slane %v2249_v3, 4  ;;  %v2062_v25 = vrot.slane %v2060_v7, 5  ;;  %v1059_v31 = vsel %vm4582_vm10, %v1054_v4, %v1058_v32  ;;  %v5147_v4 = vld [vmem:[#allocation2 + $0x94] sm:$0xf] }
  0xd2   : > { %v2048_v22 = vrot.slane %v2047_v56, 4  ;;  %v3991_v12 = vcombine.low %v1049_v59, %v1059_v31  ;;  %v852_v35 = vrot.slane %v851_v48, 4  ;;  %v862_v0 = vrot.slane %v861_v17, 4  ;;  %v1370_v56 = vld [vmem:[#allocation2 + $0x38] sm:$0x1] }
  0xd3   : > { %v2057_v15 = vor.u32 %v2056_v36, %v2052_v50  ;;  %v2255_v30 = vsel %vm4582_vm10, %v2250_v19, %v2254_v45  ;;  %v1305_v49 = vrot.slane %v5067_v21, 5  ;;  %v3919_v28 = vrot.slane %v1159_v53, 9  ;;  %v5176_v36 = vpop.permute.xlu1 %2744  ;;  %v1160_v2 = vld [vmem:[#allocation2 + $0x30] sm:$0xe] }
  0xd4   : > { %v2053_v47 = vsel %vm4582_vm10, %v2048_v22, %v2052_v50  ;;  %v4086_v5 = vcombine.low %v2245_v23, %v2255_v30  ;;  %v857_v32 = vsel %vm4582_vm10, %v852_v35, %v5100_v60  ;;  %v867_v59 = vsel %vm4582_vm10, %v862_v0, %v866_v63  ;;  %v1770_v30 = vld [vmem:[#allocation2 + $0x30] sm:$0xe] }
  0xd5   : > { %v2058_v27 = vrot.slane %v2057_v15, 4  ;;  %v3983_v48 = vcombine.low %v857_v32, %v867_v59  ;;  %v1306_v17 = vsel %vm4572_vm9, %v1304_v57, %v1305_v49  ;;  %v1246_v21 = vrot.slane %v5080_v1, 5  ;;  %v1778_v57 = vld [vmem:[#allocation2 + $0x90] sm:$0xe] }
  0xd6   : > { %v1249_v11 = vrot.slane %v5091_v34, 5  ;;  %3196 = vrot.lane.b32.xlu1 %v4086_v5, %s4355_s7  ;;  %v4007_v43 = vcombine.low %v5128_v9, %v1306_v17  ;;  %v1648_v44 = vshrl.u32 %v5140_v51, 16  ;;  %v1651_v46 = vshll.u32 %v5140_v51, 16  ;;  %v272_v17 = vld [vmem:[%s4455_s28 + $0x60] sm:$0xf] }
  0xd7   : > { %v2063_v60 = vsel %vm4582_vm10, %v2058_v27, %v2062_v25  ;;  %v1247_v1 = vsel %vm4572_vm9, %v3919_v28, %v1246_v21  ;;  %v1248_v34 = vrot.slane %v1246_v21, 4  ;;  %v1661_v63 = vshrl.u32 %v5147_v4, 16 }
  0xd8   : > { %v4078_v24 = vcombine.low %v2053_v47, %v2063_v60  ;;  %v1650_v13 = vrot.slane %v1648_v44, 4  ;;  %v1653_v33 = vrot.slane %v1651_v46, 5  ;;  %v4023_v55 = vcombine.low %v5140_v51, %v5147_v4  ;;  %v5181_v47 = vpop.permute.xlu0 %2664 }
  0xd9   : > { %v1456_v16 = vshrl.u32 %v5153_v20, 16  ;;  %v1250_v18 = vsel %vm4572_vm9, %v1248_v34, %v1249_v11  ;;  %v1459_v61 = vshll.u32 %v5153_v20, 16  ;;  %v1469_v9 = vshrl.u32 %v5161_v42, 16 }
  0xda   : > { %3180 = vrot.lane.b32.xlu0 %v4078_v24, %s4355_s7  ;;  %v4015_v3 = vcombine.low %v5153_v20, %v5161_v42  ;;  %2686 = vrot.lane.b32.xlu1 %v3991_v12, %s4350_s21  ;;  %v3999_v7 = vcombine.low %v1247_v1, %v1250_v18  ;;  %v1654_v45 = vor.u32 %v1653_v33, %v1650_v13  ;;  %v1657_v50 = vshll.u32 %v5147_v4, 16  ;;  %v256_v18 = vld [vmem:[%s4455_s28 + $0x20] sm:$0xf] }
  0xdb   : > { %v1458_v23 = vrot.slane %v1456_v16, 4  ;;  %v1461_v53 = vrot.slane %v1459_v61, 5  ;;  %v1663_v19 = vrot.slane %v1661_v63, 4  ;;  %v1667_v22 = vshll.u32 %v1378_v54, 16  ;;  %v273_v63 = vld [vmem:[%s4455_s28 + $0x64] sm:$0xf] }
  0xdc   : > { %v1465_v25 = vshll.u32 %v5161_v42, 16  ;;  %v1655_v31 = vrot.slane %v1654_v45, 4  ;;  %v1659_v15 = vrot.slane %v1657_v50, 5  ;;  %v1471_v35 = vrot.slane %v1469_v9, 4  ;;  %v5208_v61 = vpop.permute.xlu0 %2840 }
  0xdd   : > { %v1475_v0 = vshll.u32 %v1370_v56, 16  ;;  %v1669_v12 = vrot.slane %v1667_v22, 5  ;;  %v1462_v49 = vor.u32 %v1461_v53, %v1458_v23  ;;  %v3943_v51 = vrot.slane %v1778_v57, 9  ;;  %v257_v23 = vld [vmem:[%s4455_s28 + $0x24] sm:$0xf] }
  0xde   : > { %2670 = vrot.lane.b32.xlu0 %v3983_v48, %s4350_s21  ;;  %v1467_v28 = vrot.slane %v1465_v25, 5  ;;  %2766 = vrot.lane.b32.xlu1 %v4007_v43, %s4349_s15  ;;  %v1660_v5 = vsel %vm4582_vm10, %v1655_v31, %v1659_v15  ;;  %v1664_v27 = vor.u32 %v1663_v19, %v1659_v15  ;;  %v1910_v59 = vrot.slane %v5147_v4, 5  ;;  %v5189_v48 = vpop.permute.xlu1 %2856  ;;  %v745_v19 = vld [vmem:[#allocation2 + $0x90] sm:$0xf]  ;;  %v693_v15 = vld [vmem:[#allocation2 + $0x9c] sm:$0xf] }
  0xdf   : > { %v1477_v32 = vrot.slane %v1475_v0, 5  ;;  %v1463_v21 = vrot.slane %v1462_v49, 4  ;;  %v1913_v20 = vrot.slane %v1378_v54, 5  ;;  %v3935_v60 = vrot.slane %v1770_v30, 9 }
  0xe0   : > { %v1472_v11 = vor.u32 %v1471_v35, %v1467_v28  ;;  %v1665_v44 = vrot.slane %v1664_v27, 4  ;;  %v1911_v43 = vsel %vm4572_vm9, %v3943_v51, %v1910_v59  ;;  %v1912_v46 = vrot.slane %v1910_v59, 4  ;;  %v637_v51 = vld [vmem:[#allocation2 + $0x3c] sm:$0xf]  ;;  %v641_v59 = vld [vmem:[#allocation2 + $0x44] sm:$0x1] }
  0xe1   : > { %v1854_v24 = vrot.slane %v5161_v42, 5  ;;  %v1468_v4 = vsel %vm4582_vm10, %v1463_v21, %v1467_v28  ;;  %v1857_v34 = vrot.slane %v1370_v56, 5  ;;  %v488_v13 = vshrl.u32 %v272_v17, 16 }
  0xe2   : > { %2750 = vrot.lane.b32.xlu0 %v3999_v7, %s4349_s15  ;;  %v1473_v1 = vrot.slane %v1472_v11, 4  ;;  %2862 = vrot.lane.b32.xlu1 %v4023_v55, %s4351_s27  ;;  %v1670_v33 = vsel %vm4582_vm10, %v1665_v44, %v1669_v12  ;;  %v1914_v16 = vsel %vm4572_vm9, %v1912_v46, %v1913_v20  ;;  %v491_v57 = vshll.u32 %v272_v17, 16  ;;  %v5217_v0 = vpop.permute.xlu1 %3112  ;;  %v5222_v44 = vld [vmem:[#allocation2 + $0x94] sm:$0xf]  ;;  %v5226_v46 = vpop.permute.xlu0 %3096 }
  0xe3   : > { %v5205_v42 = vsel %vm4572_vm9, %v3935_v60, %v1854_v24  ;;  %v1856_v54 = vrot.slane %v1854_v24, 4  ;;  %v4039_v9 = vcombine.low %v1660_v5, %v1670_v33  ;;  %v4055_v7 = vcombine.low %v1911_v43, %v1914_v16  ;;  %v697_v5 = vld [vmem:[#allocation2 + $0xa4] sm:$0x1]  ;;  %v5224_v43 = vld [vmem:[#allocation2 + $0x98] sm:$0x1] }
  0xe4   : > { %v1478_v56 = vsel %vm4582_vm10, %v1473_v1, %v1477_v32  ;;  %v490_v55 = vrot.slane %v488_v13, 7  ;;  %v496_v53 = vshrl.u32 %v273_v63, 16  ;;  %v499_v31 = vshll.u32 %v273_v63, 16  ;;  %v729_v63 = vld [vmem:[#allocation2 + $0x30] sm:$0xf] }
  0xe5   : > { %v4031_v45 = vcombine.low %v1468_v4, %v1478_v56  ;;  %v1858_v50 = vsel %vm4572_vm9, %v1856_v54, %v1857_v34  ;;  %v352_v35 = vshrl.u32 %v256_v18, 16  ;;  %v355_v49 = vshll.u32 %v256_v18, 16 }
  0xe6   : > { %2846 = vrot.lane.b32.xlu0 %v4015_v3, %s4351_s27  ;;  %v4047_v22 = vcombine.low %v5205_v42, %v1858_v50  ;;  %v494_v25 = vrot.slane %v490_v55, 4  ;;  %2942 = vrot.lane.b32.xlu1 %v4039_v9, %s4354_s4  ;;  %v493_v30 = vor.u32 %v491_v57, %v490_v55  ;;  %v498_v12 = vrot.slane %v496_v53, 7  ;;  %v5241_v55 = vpop.permute.xlu1 %2760 }
  0xe7   : > { %v360_v28 = vshrl.u32 %v257_v23, 16  ;;  %v354_v27 = vrot.slane %v352_v35, 7  ;;  %v363_v32 = vshll.u32 %v257_v23, 16  ;;  %v1061_v3 = vshrl.u32 %v745_v19, 16 }
  0xe8   : > { %v1064_v17 = vshll.u32 %v745_v19, 16  ;;  %v501_v21 = vor.u32 %v499_v31, %v498_v12  ;;  %v694_v11 = vsel %vm4593_vm11, %v493_v30, %v693_v15  ;;  %v503_v60 = vrot.slane %v498_v12, 4  ;;  %v5256_v30 = vld [vmem:[#allocation2 + $0x38] sm:$0x1] }
  0xe9   : > { %v362_v20 = vrot.slane %v360_v28, 7  ;;  %695 = vst [vmem:[#allocation2 + $0x9c] sm:$0xf] %v694_v11  ;;  %v357_v24 = vor.u32 %v355_v49, %v354_v27  ;;  %v358_v4 = vrot.slane %v354_v27, 4  ;;  %v1063_v1 = vrot.slane %v1061_v3, 4  ;;  %v5260_v28 = vpop.permute.xlu0 %3000 }
  0xea   : > { %2926 = vrot.lane.b32.xlu0 %v4031_v45, %s4354_s4  ;;  %v1066_v34 = vrot.slane %v1064_v17, 5  ;;  %3022 = vrot.lane.b32.xlu1 %v4055_v7, %s4353_s30  ;;  %v502_v13 = vsel %vm4599_vm12, %v494_v25, %v501_v21  ;;  %v698_v16 = vsel %vm4650_vm13, %v503_v60, %v697_v5  ;;  %v1070_v9 = vshll.u32 %v5222_v44, 16  ;;  %v5239_v7 = vld [vmem:[#allocation2 + $0x34] sm:$0xf] }
  0xeb   : > { %v365_v33 = vor.u32 %v363_v32, %v362_v20  ;;  %v367_v42 = vrot.slane %v362_v20, 4  ;;  %696 = vst.msk [vmem:[#allocation2 + $0xa0] sm:$0xf] %vm192_vm0, %v502_v13  ;;  %v638_v54 = vsel %vm4593_vm11, %v357_v24, %v637_v51  ;;  %699 = vst [vmem:[#allocation2 + $0xa4] sm:$0x1] %v698_v16  ;;  %v1074_v56 = vshrl.u32 %v5222_v44, 16 }
  0xec   : > { %v1067_v18 = vor.u32 %v1066_v34, %v1063_v1  ;;  %639 = vst [vmem:[#allocation2 + $0x3c] sm:$0xf] %v638_v54  ;;  %v1080_v50 = vshll.u32 %v5224_v43, 16  ;;  %v869_v57 = vshrl.u32 %v729_v63, 16  ;;  %v5251_v19 = vrot.slane %v1070_v9, 5 }
  0xed   : > { %v366_v23 = vsel %vm4599_vm12, %v358_v4, %v365_v33  ;;  %v642_v45 = vsel %vm4650_vm13, %v367_v42, %v641_v59  ;;  %v1076_v25 = vrot.slane %v1074_v56, 4  ;;  %v872_v31 = vshll.u32 %v729_v63, 16  ;;  %v5272_v4 = vpop.permute.xlu1 %3016  ;;  %v4248_v33 = vld [vmem:[#allocation2] sm:$0xf]  ;;  %v4249_v16 = vld [vmem:[#allocation2 + $0x4] sm:$0xf] }
  0xee   : > { %3006 = vrot.lane.b32.xlu0 %v4047_v22, %s4353_s30  ;;  %640 = vst.msk [vmem:[#allocation2 + $0x40] sm:$0xf] %vm192_vm0, %v366_v23  ;;  %643 = vst [vmem:[#allocation2 + $0x44] sm:$0x1] %v642_v45  ;;  %v5254_v35 = vrot.slane %v1067_v18, 4  ;;  %v878_v12 = vshll.u32 %v5239_v7, 16  ;;  %v3964_v42 = vcombine.low %v4248_v33, %v4249_v16 }
  0xef   : > { %v882_v49 = vshrl.u32 %v5239_v7, 16  ;;  %v1077_v27 = vor.u32 %v1076_v25, %v5251_v19  ;;  %v5267_v3 = vrot.slane %v1080_v50, 5  ;;  %v871_v17 = vrot.slane %v869_v57, 4 }
  0xf0   : > { %v1966_v59 = vld [vmem:[#allocation2 + $0x9c] sm:$0xf]  ;;  %v874_v21 = vrot.slane %v872_v31, 5  ;;  %v5269_v60 = vrot.slane %v878_v12, 5  ;;  %v888_v24 = vshll.u32 %v5256_v30, 16  ;;  %v1073_v63 = vsel %vm4582_vm10, %v5254_v35, %v5251_v19  ;;  %v5287_v12 = vpop.permute.xlu0 %2746 }
  0xf1   : > { %v2257_v11 = vshrl.u32 %v1966_v59, 16  ;;  %v2260_v20 = vshll.u32 %v1966_v59, 16  ;;  %v884_v13 = vrot.slane %v882_v49, 4  ;;  %vm3256_vm14 = vcmask 130048  }
  0xf2   : > { %v5274_v1 = vld [vmem:[#allocation2 + $0xa0] sm:$0xf]  ;;  %v5276_v34 = vld [vmem:[#allocation2 + $0xa4] sm:$0x1]  ;;  %v1078_v23 = vrot.slane %v1077_v27, 4  ;;  %v875_v16 = vor.u32 %v874_v21, %v871_v17  ;;  %vm3305_vm15 = vcmask 261120  }
  0xf3   : > { %6443 = vst [vmem:[#allocation10_spill] sm:$0xff] %v5274_v1  ;;  %6444 = vst [vmem:[#allocation11_spill] sm:$0xff] %v5276_v34  ;;  %v2259_v54 = vrot.slane %v2257_v11, 4  ;;  %v2262_v18 = vrot.slane %v2260_v20, 5  ;;  %v2270_v9 = vshrl.u32 %v5274_v1, 16  ;;  %v4071_v45 = vcombine.low %v1966_v59, %v5274_v1 }
  0xf4   : > { %v1950_v56 = vld [vmem:[#allocation2 + $0x3c] sm:$0xf]  ;;  %v2266_v31 = vshll.u32 %v5274_v1, 16  ;;  %v2276_v51 = vshll.u32 %v5276_v34, 16  ;;  %v885_v15 = vor.u32 %v884_v13, %v5269_v60  ;;  %v5305_v13 = vpop.permute.xlu0 %2680  ;;  %vm3338_vm1 = vcmask 392192  }
  0xf5   : > { %v5284_v50 = vld [vmem:[#allocation2 + $0x40] sm:$0xf]  ;;  %v2065_v57 = vshrl.u32 %v1950_v56, 16  ;;  %v2068_v25 = vshll.u32 %v1950_v56, 16  ;;  %v2263_v11 = vor.u32 %v2262_v18, %v2259_v54  ;;  %v5291_v20 = vld [vmem:[#allocation2 + $0x44] sm:$0x1]  ;;  %3118 = vrot.lane.b32.xlu1 %v4071_v45, %s4352_s29 }
  0xf6   : > { %6445 = vst [vmem:[#allocation12_spill] sm:$0xff] %v5284_v50  ;;  %v2078_v49 = vshrl.u32 %v5284_v50, 16  ;;  %v4063_v33 = vcombine.low %v1950_v56, %v5284_v50  ;;  %v2268_v5 = vrot.slane %v2266_v31, 5  ;;  %v2272_v32 = vrot.slane %v2270_v9, 4  ;;  %v5298_v56 = vpop.permute.xlu1 %2762  ;;  %v1168_v31 = vld [vmem:[#allocation2 + $0x90] sm:$0xe] }
  0xf7   : > { %v2067_v27 = vrot.slane %v2065_v57, 4  ;;  %v2070_v59 = vrot.slane %v2068_v25, 5  ;;  %v2264_v22 = vrot.slane %v2263_v11, 4  ;;  %v2074_v53 = vshll.u32 %v5284_v50, 16  ;;  %v5492_v50 = vld [vmem:[#allocation2 + $0x70] sm:$0xf] }
  0xf8   : > { %3102 = vrot.lane.b32.xlu0 %v4063_v33, %s4352_s29  ;;  %v2273_v54 = vor.u32 %v2272_v32, %v2268_v5  ;;  %v2080_v17 = vrot.slane %v2078_v49, 4  ;;  %v2084_v21 = vshll.u32 %v5291_v20, 16  ;;  %v2278_v45 = vrot.slane %v2276_v51, 5 }
  0xf9   : > { %v2071_v18 = vor.u32 %v2070_v59, %v2067_v27  ;;  %v2076_v57 = vrot.slane %v2074_v53, 5  ;;  %v890_v25 = vrot.slane %v888_v24, 5  ;;  %v3259_v9 = vsel %vm3256_vm14, %v3964_v42, %v5181_v47 }
  0xfa   : > { %v2269_v33 = vsel %vm4582_vm10, %v2264_v22, %v2268_v5  ;;  %v2274_v11 = vrot.slane %v2273_v54, 4  ;;  %v2086_v27 = vrot.slane %v2084_v21, 5  ;;  %v876_v49 = vrot.slane %v875_v16, 4  ;;  %v5318_v16 = vpop.permute.xlu1 %2936 }
  0xfb   : > { %v2072_v6 = vrot.slane %v2071_v18, 4  ;;  %v2081_v32 = vor.u32 %v2080_v17, %v2076_v57  ;;  %v886_v59 = vrot.slane %v885_v15, 4  ;;  %v1083_v47 = vsel %vm4582_vm10, %v1078_v23, %v5267_v3  ;;  %v5324_v23 = vld [vmem:[#allocation2 + $0x9c] sm:$0xf] }
  0xfc   : > { %v2279_v51 = vsel %vm4582_vm10, %v2274_v11, %v2278_v45  ;;  %v3928_v22 = vrot.slane %v1168_v31, 9  ;;  %v881_v15 = vsel %vm4582_vm10, %v876_v49, %v5269_v60  ;;  %v1309_v18 = vrot.slane %v5222_v44, 5  ;;  %v5336_v45 = vld [vmem:[#allocation2 + $0xa0] sm:$0xf] }
  0xfd   : > { %v4087_v5 = vcombine.low %v2269_v33, %v2279_v51  ;;  %v2077_v24 = vsel %vm4582_vm10, %v2072_v6, %v2076_v57  ;;  %v2082_v42 = vrot.slane %v2081_v32, 4  ;;  %v891_v54 = vsel %vm4582_vm10, %v886_v59, %v890_v25  ;;  %v5346_v33 = vpop.permute.xlu0 %2920 }
  0xfe   : > { %v1312_v17 = vrot.slane %v5224_v43, 5  ;;  %v3920_v3 = vrot.slane %v1160_v2, 9  ;;  %v3992_v60 = vcombine.low %v1073_v63, %v1083_v47  ;;  %v1253_v21 = vrot.slane %v5239_v7, 5  ;;  %v5338_v2 = vld [vmem:[#allocation2 + $0x3c] sm:$0xf] }
  0xff   : > { %3198 = vrot.lane.b32.xlu1 %v4087_v5, %s4355_s7  ;;  %v2087_v6 = vsel %vm4582_vm10, %v2082_v42, %v2086_v27  ;;  %v1256_v44 = vrot.slane %v5256_v30, 5  ;;  %v5342_v57 = vsel %vm3305_vm15, %v3259_v9, %v5176_v36  ;;  %v1310_v25 = vsel %vm4572_vm9, %v3928_v22, %v1309_v18  ;;  %v5350_v63 = vld [vmem:[#allocation2 + $0x40] sm:$0xf]  ;;  %v1379_v47 = vld [vmem:[#allocation2 + $0xa4] sm:$0x1]  ;;  %v5362_v22 = vpop.permute.xlu1 %3192 }
 0x100   : > { %v4079_v43 = vcombine.low %v2077_v24, %v2087_v6  ;;  %v1311_v31 = vrot.slane %v1309_v18, 4  ;;  %v3984_v19 = vcombine.low %v881_v15, %v891_v54  ;;  %v1255_v35 = vrot.slane %v1253_v21, 4  ;;  %v1371_v54 = vld [vmem:[#allocation2 + $0x44] sm:$0x1] }
 0x101   : > { %v1672_v7 = vshrl.u32 %v5324_v23, 16  ;;  %v1675_v30 = vshll.u32 %v5324_v23, 16  ;;  %v1254_v9 = vsel %vm4572_vm9, %v3920_v3, %v1253_v21  ;;  %v1685_v11 = vshrl.u32 %v5336_v45, 16 }
 0x102   : > { %3182 = vrot.lane.b32.xlu0 %v4079_v43, %s4355_s7  ;;  %v1313_v36 = vsel %vm4572_vm9, %v1311_v31, %v1312_v17  ;;  %v1480_v32 = vshrl.u32 %v5338_v2, 16  ;;  %v1257_v49 = vsel %vm4572_vm9, %v1255_v35, %v1256_v44  ;;  %v4024_v5 = vcombine.low %v5324_v23, %v5336_v45  ;;  %v5371_v23 = vpop.permute.xlu0 %3176 }
 0x103   : > { %2688 = vrot.lane.b32.xlu1 %v3992_v60, %s4350_s21  ;;  %v4008_v27 = vcombine.low %v1310_v25, %v1313_v36  ;;  %v1674_v59 = vrot.slane %v1672_v7, 4  ;;  %v1677_v51 = vrot.slane %v1675_v30, 5  ;;  %v1483_v42 = vshll.u32 %v5338_v2, 16  ;;  %v1779_v60 = vld [vmem:[#allocation2 + $0x9c] sm:$0xe] }
 0x104   : > { %v1482_v24 = vrot.slane %v1480_v32, 4  ;;  %v1493_v15 = vshrl.u32 %v5350_v63, 16  ;;  %v4000_v18 = vcombine.low %v1254_v9, %v1257_v49  ;;  %v1681_v3 = vshll.u32 %v5336_v45, 16  ;;  %v1771_v32 = vld [vmem:[#allocation2 + $0x3c] sm:$0xe] }
 0x105   : > { %v1678_v17 = vor.u32 %v1677_v51, %v1674_v59  ;;  %v1687_v6 = vrot.slane %v1685_v11, 4  ;;  %v1485_v21 = vrot.slane %v1483_v42, 5  ;;  %v1691_v44 = vshll.u32 %v1379_v47, 16 }
 0x106   : > { %2672 = vrot.lane.b32.xlu0 %v3984_v19, %s4350_s21  ;;  %v1489_v43 = vshll.u32 %v5350_v63, 16  ;;  %v1495_v25 = vrot.slane %v1493_v15, 4  ;;  %v4016_v31 = vcombine.low %v5338_v2, %v5350_v63  ;;  %v1683_v7 = vrot.slane %v1681_v3, 5  ;;  %v5380_v15 = vpop.permute.xlu1 %2682 }
 0x107   : > { %2768 = vrot.lane.b32.xlu1 %v4008_v27, %s4349_s15  ;;  %v1679_v35 = vrot.slane %v1678_v17, 4  ;;  %v1499_v30 = vshll.u32 %v1371_v54, 16  ;;  %v1486_v36 = vor.u32 %v1485_v21, %v1482_v24  ;;  %v3944_v11 = vrot.slane %v1779_v60, 9  ;;  %v274_v27 = vld [vmem:[%s4455_s28 + $0x68] sm:$0xf] }
 0x108   : > { %v1491_v9 = vrot.slane %v1489_v43, 5  ;;  %v1917_v19 = vrot.slane %v5336_v45, 5  ;;  %v1688_v59 = vor.u32 %v1687_v6, %v1683_v7  ;;  %v1693_v51 = vrot.slane %v1691_v44, 5  ;;  %v275_v43 = vld [vmem:[%s4455_s28 + $0x6c] sm:$0xf] }
 0x109   : > { %v1684_v49 = vsel %vm4582_vm10, %v1679_v35, %v1683_v7  ;;  %v1920_v42 = vrot.slane %v1379_v47, 5  ;;  %v1487_v2 = vrot.slane %v1486_v36, 4  ;;  %v1501_v24 = vrot.slane %v1499_v30, 5  ;;  %v5390_v35 = vpop.permute.xlu0 %2666  ;;  %v258_v30 = vld [vmem:[%s4455_s28 + $0x28] sm:$0xf] }
 0x10a   : > { %2752 = vrot.lane.b32.xlu0 %v4000_v18, %s4349_s15  ;;  %v1496_v17 = vor.u32 %v1495_v25, %v1491_v9  ;;  %v1919_v3 = vrot.slane %v1917_v19, 4  ;;  %v1689_v45 = vrot.slane %v1688_v59, 4  ;;  %v3936_v60 = vrot.slane %v1771_v32, 9  ;;  %v259_v32 = vld [vmem:[%s4455_s28 + $0x2c] sm:$0xf] }
 0x10b   : > { %2864 = vrot.lane.b32.xlu1 %v4024_v5, %s4351_s27  ;;  %v1861_v21 = vrot.slane %v5350_v63, 5  ;;  %v1864_v6 = vrot.slane %v1371_v54, 5  ;;  %v1492_v47 = vsel %vm4582_vm10, %v1487_v2, %v1491_v9  ;;  %v1918_v18 = vsel %vm4572_vm9, %v3944_v11, %v1917_v19 }
 0x10c   : > { %v1497_v44 = vrot.slane %v1496_v17, 4  ;;  %v505_v25 = vshrl.u32 %v274_v27, 16  ;;  %v1694_v5 = vsel %vm4582_vm10, %v1689_v45, %v1693_v51  ;;  %v1921_v7 = vsel %vm4572_vm9, %v1919_v3, %v1920_v42  ;;  %v700_v17 = vld [vmem:[#allocation2 + $0xa8] sm:$0xf]  ;;  %v5405_v3 = vpop.permute.xlu1 %2858 }
 0x10d   : > { %v1862_v63 = vsel %vm4572_vm9, %v3936_v60, %v1861_v21  ;;  %v1863_v54 = vrot.slane %v1861_v21, 4  ;;  %v4040_v36 = vcombine.low %v1684_v49, %v1694_v5  ;;  %v508_v19 = vshll.u32 %v274_v27, 16  ;;  %v4251_v5 = vld [vmem:[#allocation2 + $0x64] sm:$0xf] }
 0x10e   : > { %2848 = vrot.lane.b32.xlu0 %v4016_v31, %s4351_s27  ;;  %v1502_v9 = vsel %vm4582_vm10, %v1497_v44, %v1501_v24  ;;  %v507_v11 = vrot.slane %v505_v25, 7  ;;  %v513_v2 = vshrl.u32 %v275_v43, 16  ;;  %v516_v42 = vshll.u32 %v275_v43, 16  ;;  %v4250_v25 = vld [vmem:[#allocation2 + $0x60] sm:$0xf] }
 0x10f   : > { %v4032_v59 = vcombine.low %v1492_v47, %v1502_v9  ;;  %v1865_v51 = vsel %vm4572_vm9, %v1863_v54, %v1864_v6  ;;  %2944 = vrot.lane.b32.xlu1 %v4040_v36, %s4354_s4  ;;  %v4056_v45 = vcombine.low %v1918_v18, %v1921_v7  ;;  %v369_v60 = vshrl.u32 %v258_v30, 16  ;;  %v704_v9 = vld [vmem:[#allocation2 + $0xb0] sm:$0x1]  ;;  %v5411_v36 = vpop.permute.xlu0 %2842 }
 0x110   : > { %v510_v31 = vor.u32 %v508_v19, %v507_v11  ;;  %v511_v49 = vrot.slane %v507_v11, 4  ;;  %v515_v21 = vrot.slane %v513_v2, 7  ;;  %v372_v24 = vshll.u32 %v258_v30, 16  ;;  %v644_v30 = vld [vmem:[#allocation2 + $0x48] sm:$0xf] }
 0x111   : > { %v377_v44 = vshrl.u32 %v259_v32, 16  ;;  %v380_v27 = vshll.u32 %v259_v32, 16  ;;  %v4048_v47 = vcombine.low %v1862_v63, %v1865_v51  ;;  %v371_v43 = vrot.slane %v369_v60, 7  ;;  %v5422_v60 = vld [vmem:[#allocation2 + $0xa0] sm:$0xf] }
 0x112   : > { %2928 = vrot.lane.b32.xlu0 %v4032_v59, %s4354_s4  ;;  %v701_v6 = vsel %vm4593_vm11, %v510_v31, %v700_v17  ;;  %v3972_v54 = vcombine.low %v4250_v25, %v4251_v5  ;;  %v518_v18 = vor.u32 %v516_v42, %v515_v21  ;;  %v520_v11 = vrot.slane %v515_v21, 4  ;;  %v747_v59 = vld [vmem:[#allocation2 + $0x9c] sm:$0xf]  ;;  %v648_v31 = vld [vmem:[#allocation2 + $0x50] sm:$0x1] }
 0x113   : > { %702 = vst [vmem:[#allocation2 + $0xa8] sm:$0xf] %v701_v6  ;;  %v379_v7 = vrot.slane %v377_v44, 7  ;;  %3024 = vrot.lane.b32.xlu1 %v4056_v45, %s4353_s30  ;;  %v374_v19 = vor.u32 %v372_v24, %v371_v43  ;;  %v375_v63 = vrot.slane %v371_v43, 4  ;;  %vm3371_vm2 = vcmask 523264   ;;  %v5424_v45 = vpop.permute.xlu1 %2938  ;;  %v5446_v25 = vpop.permute.xlu0 %2922 }
 0x114   : > { %v3283_v32 = vsel %vm3256_vm14, %v3972_v54, %v5305_v13  ;;  %v519_v51 = vsel %vm4599_vm12, %v511_v49, %v518_v18  ;;  %v705_v17 = vsel %vm4650_vm13, %v520_v11, %v704_v9  ;;  %v3340_v13 = vsel %vm3338_vm1, %v5342_v57, %v5208_v61  ;;  %v5435_v24 = vld [vmem:[#allocation2 + $0xa4] sm:$0x1] }
 0x115   : > { %v382_v2 = vor.u32 %v380_v27, %v379_v7  ;;  %v3323_v42 = vsel %vm3305_vm15, %v3283_v32, %v5241_v55  ;;  %703 = vst.msk [vmem:[#allocation2 + $0xac] sm:$0xf] %vm192_vm0, %v519_v51  ;;  %v645_v49 = vsel %vm4593_vm11, %v374_v19, %v644_v30  ;;  %706 = vst [vmem:[#allocation2 + $0xb0] sm:$0x1] %v705_v17  ;;  %v384_v55 = vrot.slane %v379_v7, 4 }
 0x116   : > { %3008 = vrot.lane.b32.xlu0 %v4048_v47, %s4353_s30  ;;  %v3356_v21 = vsel %vm3338_vm1, %v3323_v42, %v5189_v48  ;;  %646 = vst [vmem:[#allocation2 + $0x48] sm:$0xf] %v645_v49  ;;  %vm3404_vm3 = vcmask 654336   ;;  %v1085_v61 = vshrl.u32 %v747_v59, 16  ;;  %v1088_v57 = vshll.u32 %v747_v59, 16 }
 0x117   : > { %v383_v44 = vsel %vm4599_vm12, %v375_v63, %v382_v2  ;;  %v731_v27 = vld [vmem:[#allocation2 + $0x3c] sm:$0xf]  ;;  %v649_v47 = vsel %vm4650_vm13, %v384_v55, %v648_v31  ;;  %v3373_v6 = vsel %vm3371_vm2, %v3340_v13, %v5346_v33  ;;  %v1094_v48 = vshll.u32 %v5422_v60, 16  ;;  %v5451_v7 = vld [vmem:[#allocation2 + $0x40] sm:$0xf]  ;;  %v5461_v2 = vpop.permute.xlu1 %3018 }
 0x118   : > { %647 = vst.msk [vmem:[#allocation2 + $0x4c] sm:$0xf] %vm192_vm0, %v383_v44  ;;  %v1098_v43 = vshrl.u32 %v5422_v60, 16  ;;  %650 = vst [vmem:[#allocation2 + $0x50] sm:$0x1] %v649_v47  ;;  %v3389_v5 = vsel %vm3371_vm2, %v3356_v21, %v5318_v16  ;;  %v1087_v54 = vrot.slane %v1085_v61, 4  ;;  %v5459_v16 = vsel %vm3404_vm3, %v3373_v6, %v5260_v28 }
 0x119   : > { %v1090_v9 = vrot.slane %v1088_v57, 5  ;;  %v1104_v18 = vshll.u32 %v5435_v24, 16  ;;  %v5454_v33 = vrot.slane %v1094_v48, 5  ;;  %v893_v63 = vshrl.u32 %v731_v27, 16 }
 0x11a   : > { %v1968_v11 = vld [vmem:[#allocation2 + $0xa8] sm:$0xf]  ;;  %v1100_v19 = vrot.slane %v1098_v43, 4  ;;  %v5465_v42 = vsel %vm3404_vm3, %v3389_v5, %v5272_v4  ;;  %v896_v31 = vshll.u32 %v731_v27, 16  ;;  %v902_v13 = vshll.u32 %v5451_v7, 16  ;;  %v5476_v27 = vpop.permute.xlu0 %3002 }
 0x11b   : > { %v2281_v59 = vshrl.u32 %v1968_v11, 16  ;;  %v2284_v51 = vshll.u32 %v1968_v11, 16  ;;  %v1106_v17 = vrot.slane %v1104_v18, 5  ;;  %v1091_v61 = vor.u32 %v1090_v9, %v1087_v54  ;;  %v5486_v1 = vpop.permute.xlu1 %3114 }
 0x11c   : > { %v5468_v49 = vld [vmem:[#allocation2 + $0xac] sm:$0xf]  ;;  %v5470_v44 = vld [vmem:[#allocation2 + $0xb0] sm:$0x1]  ;;  %v1101_v28 = vor.u32 %v1100_v19, %v5454_v33  ;;  %v895_v48 = vrot.slane %v893_v63, 4  ;;  %v898_v32 = vrot.slane %v896_v31, 5 }
 0x11d   : > { %v2283_v55 = vrot.slane %v2281_v59, 4  ;;  %v2286_v21 = vrot.slane %v2284_v51, 5  ;;  %6446 = vst [vmem:[#allocation13_spill] sm:$0xff] %v5470_v44  ;;  %v2294_v57 = vshrl.u32 %v5468_v49, 16  ;;  %v4072_v47 = vcombine.low %v1968_v11, %v5468_v49  ;;  %v1952_v6 = vld [vmem:[#allocation2 + $0x48] sm:$0xf] }
 0x11e   : > { %v2290_v4 = vshll.u32 %v5468_v49, 16  ;;  %v2089_v5 = vshrl.u32 %v1952_v6, 16  ;;  %v2092_v18 = vshll.u32 %v1952_v6, 16  ;;  %v2300_v51 = vshll.u32 %v5470_v44, 16  ;;  %6448 = vst [vmem:[#allocation15_spill] sm:$0xff] %v5486_v1 }
 0x11f   : > { %v5478_v43 = vld [vmem:[#allocation2 + $0x4c] sm:$0xf]  ;;  %v2287_v59 = vor.u32 %v2286_v21, %v2283_v55  ;;  %3120 = vrot.lane.b32.xlu1 %v4072_v47, %s4352_s29  ;;  %v5484_v19 = vld [vmem:[#allocation2 + $0x50] sm:$0x1]  ;;  %v2296_v34 = vrot.slane %v2294_v57, 4  ;;  %v5490_v47 = vrot.slane %v902_v13, 5  ;;  %v5501_v13 = vpop.permute.xlu0 %3098  ;;  %v899_v1 = vor.u32 %v898_v32, %v895_v48  ;;  %v5515_v48 = vpop.permute.xlu1 %3194 }
 0x120   : > { %v2102_v54 = vshrl.u32 %v5478_v43, 16  ;;  %v4064_v9 = vcombine.low %v1952_v6, %v5478_v43  ;;  %v2292_v11 = vrot.slane %v2290_v4, 5  ;;  %6447 = vst [vmem:[#allocation14_spill] sm:$0xff] %v5484_v19  ;;  %v2091_v63 = vrot.slane %v2089_v5, 4  ;;  %v5494_v6 = vld [vmem:[#allocation2 + $0x6c] sm:$0xf] }
 0x121   : > { %v2094_v53 = vrot.slane %v2092_v18, 5  ;;  %v2288_v30 = vrot.slane %v2287_v59, 4  ;;  %v2098_v55 = vshll.u32 %v5478_v43, 16  ;;  %v2302_v5 = vrot.slane %v2300_v51, 5  ;;  %v5503_v44 = vld [vmem:[#allocation2 + $0x44] sm:$0x1] }
 0x122   : > { %3104 = vrot.lane.b32.xlu0 %v4064_v9, %s4352_s29  ;;  %v2104_v21 = vrot.slane %v2102_v54, 4  ;;  %v2297_v4 = vor.u32 %v2296_v34, %v2292_v11  ;;  %v2108_v57 = vshll.u32 %v5484_v19, 16  ;;  %v1092_v58 = vrot.slane %v1091_v61, 4  ;;  %v2376_v61 = vld [vmem:[#allocation2 + $0x18] sm:$0xe] }
 0x123   : > { %v2095_v18 = vor.u32 %v2094_v53, %v2091_v63  ;;  %v2293_v59 = vsel %vm4582_vm10, %v2288_v30, %v2292_v11  ;;  %v2100_v9 = vrot.slane %v2098_v55, 5  ;;  %v1102_v54 = vrot.slane %v1101_v28, 4  ;;  %v2384_v32 = vld [vmem:[#allocation2 + $0x78] sm:$0xe] }
 0x124   : > { %v2298_v8 = vrot.slane %v2297_v4, 4  ;;  %v2110_v40 = vrot.slane %v2108_v57, 5  ;;  %v1097_v34 = vsel %vm4582_vm10, %v1092_v58, %v5454_v33  ;;  %v906_v30 = vshrl.u32 %v5451_v7, 16 }
 0x125   : > { %v2096_v38 = vrot.slane %v2095_v18, 4  ;;  %v2105_v31 = vor.u32 %v2104_v21, %v2100_v9  ;;  %v1107_v53 = vsel %vm4582_vm10, %v1102_v54, %v1106_v17  ;;  %v900_v63 = vrot.slane %v899_v1, 4  ;;  %v4254_v18 = vld [vmem:[#allocation2 + $0x1c] sm:$0xf]  ;;  %v5525_v54 = vpop.permute.xlu0 %3178 }
 0x126   : > { %v2303_v28 = vsel %vm4582_vm10, %v2298_v8, %v2302_v5  ;;  %v3993_v11 = vcombine.low %v1097_v34, %v1107_v53  ;;  %v908_v58 = vrot.slane %v906_v30, 4  ;;  %v912_v33 = vshll.u32 %v5503_v44, 16  ;;  %v4255_v5 = vld [vmem:[#allocation2 + $0x20] sm:$0x1] }
 0x127   : > { %v2101_v51 = vsel %vm4582_vm10, %v2096_v38, %v2100_v9  ;;  %v4088_v55 = vcombine.low %v2293_v59, %v2303_v28  ;;  %v2106_v21 = vrot.slane %v2105_v31, 4  ;;  %v905_v17 = vsel %vm4582_vm10, %v900_v63, %v5490_v47  ;;  %v1169_v38 = vld [vmem:[#allocation2 + $0x9c] sm:$0xe] }
 0x128   : > { %v3948_v4 = vrot.slane %v2376_v61, 9  ;;  %v2442_v8 = vrot.slane %v4254_v18, 5  ;;  %v2445_v57 = vrot.slane %v4255_v5, 5  ;;  %v909_v31 = vor.u32 %v908_v58, %v5490_v47  ;;  %v4256_v61 = vld [vmem:[#allocation2 + $0x7c] sm:$0xf]  ;;  %v5536_v58 = vpop.permute.xlu1 %2684 }
 0x129   : > { %3200 = vrot.lane.b32.xlu1 %v4088_v55, %s4355_s7  ;;  %v2111_v1 = vsel %vm4582_vm10, %v2106_v21, %v2110_v40  ;;  %v914_v59 = vrot.slane %v912_v33, 5  ;;  %v3956_v9 = vrot.slane %v2384_v32, 9  ;;  %v2498_v28 = vrot.slane %v4256_v61, 5  ;;  %v4257_v18 = vld [vmem:[#allocation2 + $0x80] sm:$0x1] }
 0x12a   : > { %v4080_v34 = vcombine.low %v2101_v51, %v2111_v1  ;;  %v2443_v53 = vsel %vm4572_vm9, %v3948_v4, %v2442_v8  ;;  %v2444_v30 = vrot.slane %v2442_v8, 4  ;;  %v910_v63 = vrot.slane %v909_v31, 4  ;;  %v1161_v40 = vld [vmem:[#allocation2 + $0x3c] sm:$0xe] }
 0x12b   : > { %v2501_v5 = vrot.slane %v4257_v18, 5  ;;  %v3929_v55 = vrot.slane %v1169_v38, 9  ;;  %v1316_v19 = vrot.slane %v5422_v60, 5  ;;  %v2499_v51 = vsel %vm4572_vm9, %v3956_v9, %v2498_v28  ;;  %v1361_v9 = vld [vmem:[#allocation2 + $0xa8] sm:$0xf] }
 0x12c   : > { %3184 = vrot.lane.b32.xlu0 %v4080_v34, %s4355_s7  ;;  %v2446_v47 = vsel %vm4572_vm9, %v2444_v30, %v2445_v57  ;;  %v2500_v32 = vrot.slane %v2498_v28, 4  ;;  %v1319_v21 = vrot.slane %v5435_v24, 5  ;;  %v915_v33 = vsel %vm4582_vm10, %v910_v63, %v914_v59  ;;  %v5550_v34 = vpop.permute.xlu0 %2668  ;;  %v5558_v30 = vld [vmem:[#allocation2 + $0xac] sm:$0xf]  ;;  %v4258_v63 = vld [vmem:[#allocation2 + $0x10] sm:$0xf] }
 0x12d   : > { %2690 = vrot.lane.b32.xlu1 %v3993_v11, %s4350_s21  ;;  %v4092_v60 = vcombine.low %v2443_v53, %v2446_v47  ;;  %v1317_v4 = vsel %vm4572_vm9, %v3929_v55, %v1316_v19  ;;  %v1318_v8 = vrot.slane %v1316_v19, 4  ;;  %v3985_v38 = vcombine.low %v905_v17, %v915_v33  ;;  %v4259_v18 = vld [vmem:[#allocation2 + $0xc] sm:$0xf]  ;;  %v1345_v55 = vld [vmem:[#allocation2 + $0x48] sm:$0xf] }
 0x12e   : > { %v2502_v57 = vsel %vm4572_vm9, %v2500_v32, %v2501_v5  ;;  %v3921_v1 = vrot.slane %v1161_v40, 9  ;;  %v1260_v31 = vrot.slane %v5451_v7, 5  ;;  %v1263_v59 = vrot.slane %v5503_v44, 5 }
 0x12f   : > { %4118 = vmatprep.mubr.msk.bf16.mxu0 %vm3256_vm14, %v4092_v60  ;;  %v4100_v24 = vcombine.low %v2499_v51, %v2502_v57  ;;  %v1320_v11 = vsel %vm4572_vm9, %v1318_v8, %v1319_v21  ;;  %vm3437_vm4 = vcmask 785408   ;;  %vm3470_vm5 = vcmask 916480   ;;  %v1372_v57 = vld [vmem:[#allocation2 + $0x50] sm:$0x1] }
 0x130   : > { %2674 = vrot.lane.b32.xlu0 %v3985_v38, %s4350_s21  ;;  %v4009_v19 = vcombine.low %v1317_v4, %v1320_v11  ;;  %v1261_v17 = vsel %vm4572_vm9, %v3921_v1, %v1260_v31  ;;  %v1262_v53 = vrot.slane %v1260_v31, 4  ;;  %v3439_v7 = vsel %vm3437_vm4, %v5459_v16, %v5226_v46  ;;  %v5569_v46 = vld [vmem:[#allocation2 + $0x4c] sm:$0xf]  ;;  %v5587_v1 = vpop.permute.xlu0 %2748 }
 0x131   : > { %4126 = vmatprep.mubr.msk.bf16.mxu1 %vm3256_vm14, %v4100_v24  ;;  %v3455_v44 = vsel %vm3437_vm4, %v5465_v42, %v5217_v0  ;;  %v6449_v61 = vcombine.low %v5494_v6, %v5492_v50  ;;  %v3965_v5 = vcombine.low %v4259_v18, %v4258_v63  ;;  %v3472_v0 = vsel %vm3470_vm5, %v3439_v7, %v5371_v23  ;;  %v5578_v6 = vpop.permute.xlu1 %2764  ;;  %v1380_v23 = vld [vmem:[#allocation2 + $0xb0] sm:$0x1]  ;;  %v1780_v18 = vld [vmem:[#allocation2 + $0xa8] sm:$0xe] }
 0x132   : > { %2770 = vrot.lane.b32.xlu1 %v4009_v19, %s4349_s15  ;;  %v1264_v16 = vsel %vm4572_vm9, %v1262_v53, %v1263_v59  ;;  %v3496_v42 = vsel %vm3470_vm5, %v3455_v44, %v5362_v22  ;;  %v1696_v50 = vshrl.u32 %v1361_v9, 16  ;;  %3679 = vmatmul.mubr.bf16.vlgmr.msra.gmra.mxu0 %v3472_v0  ;;  %v1699_v40 = vshll.u32 %v1361_v9, 16 }
 0x133   : > { %v3286_v28 = vsel %vm3256_vm14, %v6449_v61, %v5380_v15  ;;  %v4001_v15 = vcombine.low %v1261_v17, %v1264_v16  ;;  %3743 = vmatmul.mubr.bf16.vlgmr.msra.gmra.mxu1 %v3496_v42  ;;  %v1709_v47 = vshrl.u32 %v5558_v30, 16  ;;  %v4025_v51 = vcombine.low %v1361_v9, %v5558_v30  ;;  %v1772_v16 = vld [vmem:[#allocation2 + $0x48] sm:$0xe] }
 0x134   : > { %v1698_v32 = vrot.slane %v1696_v50, 4  ;;  %v1504_v21 = vshrl.u32 %v1345_v55, 16  ;;  %v1507_v33 = vshll.u32 %v1345_v55, 16  ;;  %v1517_v60 = vshrl.u32 %v5569_v46, 16 }
 0x135   : > { %2754 = vrot.lane.b32.xlu0 %v4001_v15, %s4349_s15  ;;  %v1701_v8 = vrot.slane %v1699_v40, 5  ;;  %v4017_v38 = vcombine.low %v1345_v55, %v5569_v46  ;;  %v3262_v31 = vsel %vm3256_vm14, %v3965_v5, %v5390_v35  ;;  %v3325_v59 = vsel %vm3305_vm15, %v3286_v28, %v5298_v56  ;;  %v5596_v55 = vpop.permute.xlu1 %2860 }
 0x136   : > { %2866 = vrot.lane.b32.xlu1 %v4025_v51, %s4351_s27  ;;  %v1506_v24 = vrot.slane %v1504_v21, 4  ;;  %v1509_v11 = vrot.slane %v1507_v33, 5  ;;  %v1705_v19 = vshll.u32 %v5558_v30, 16  ;;  %v1711_v17 = vrot.slane %v1709_v47, 4 }
 0x137   : > { %v1702_v9 = vor.u32 %v1701_v8, %v1698_v32  ;;  %v1715_v53 = vshll.u32 %v1380_v23, 16  ;;  %v1513_v44 = vshll.u32 %v5569_v46, 16  ;;  %v1519_v61 = vrot.slane %v1517_v60, 4 }
 0x138   : > { %v1510_v7 = vor.u32 %v1509_v11, %v1506_v24  ;;  %v1523_v63 = vshll.u32 %v1372_v57, 16  ;;  %v3358_v35 = vsel %vm3338_vm1, %v3325_v59, %v5405_v3  ;;  %v3309_v56 = vsel %vm3305_vm15, %v3262_v31, %v5287_v12  ;;  %v5606_v3 = vpop.permute.xlu0 %2844  ;;  %v276_v24 = vld [vmem:[%s4455_s28 + $0x70] sm:$0xf] }
 0x139   : > { %2850 = vrot.lane.b32.xlu0 %v4017_v38, %s4351_s27  ;;  %v1703_v28 = vrot.slane %v1702_v9, 4  ;;  %v1707_v5 = vrot.slane %v1705_v19, 5  ;;  %v3342_v0 = vsel %vm3338_vm1, %v3309_v56, %v5411_v36  ;;  %v1717_v42 = vrot.slane %v1715_v53, 5  ;;  %v5619_v19 = vpop.permute.xlu1 %2940 }
 0x13a   : > { %v1511_v50 = vrot.slane %v1510_v7, 4  ;;  %v1515_v15 = vrot.slane %v1513_v44, 5  ;;  %v1525_v47 = vrot.slane %v1523_v63, 5  ;;  %v3945_v51 = vrot.slane %v1780_v18, 9  ;;  %v260_v44 = vld [vmem:[%s4455_s28 + $0x30] sm:$0xf] }
 0x13b   : > { %v1712_v40 = vor.u32 %v1711_v17, %v1707_v5  ;;  %v1924_v32 = vrot.slane %v5558_v30, 5  ;;  %v1708_v12 = vsel %vm4582_vm10, %v1703_v28, %v1707_v5  ;;  %v1927_v33 = vrot.slane %v1380_v23, 5  ;;  %v277_v23 = vld [vmem:[%s4455_s28 + $0x74] sm:$0xf] }
 0x13c   : > { %v1520_v21 = vor.u32 %v1519_v61, %v1515_v15  ;;  %v3937_v60 = vrot.slane %v1772_v16, 9  ;;  %v1868_v31 = vrot.slane %v5569_v46, 5  ;;  %v1516_v30 = vsel %vm4582_vm10, %v1511_v50, %v1515_v15  ;;  %v261_v18 = vld [vmem:[%s4455_s28 + $0x34] sm:$0xf]  ;;  %v5633_v16 = vpop.permute.xlu0 %2924 }
 0x13d   : > { %v1713_v36 = vrot.slane %v1712_v40, 4  ;;  %v1925_v8 = vsel %vm4572_vm9, %v3945_v51, %v1924_v32  ;;  %v1926_v38 = vrot.slane %v1924_v32, 4  ;;  %v3391_v59 = vsel %vm3371_vm2, %v3358_v35, %v5424_v45  ;;  %v707_v40 = vld [vmem:[#allocation2 + $0xb4] sm:$0xf] }
 0x13e   : > { %v1521_v11 = vrot.slane %v1520_v21, 4  ;;  %v1871_v9 = vrot.slane %v1372_v57, 5  ;;  %v1869_v46 = vsel %vm4572_vm9, %v3937_v60, %v1868_v31  ;;  %v1870_v7 = vrot.slane %v1868_v31, 4  ;;  %v711_v31 = vld [vmem:[#allocation2 + $0xbc] sm:$0x1] }
 0x13f   : > { %v1718_v17 = vsel %vm4582_vm10, %v1713_v36, %v1717_v42  ;;  %v1928_v53 = vsel %vm4572_vm9, %v1926_v38, %v1927_v33  ;;  %v522_v57 = vshrl.u32 %v276_v24, 16  ;;  %v525_v28 = vshll.u32 %v276_v24, 16  ;;  %v2377_v33 = vld [vmem:[#allocation2 + $0x24] sm:$0xe]  ;;  %v5639_v24 = vpop.permute.xlu1 %3020 }
 0x140   : > { %v4041_v61 = vcombine.low %v1708_v12, %v1718_v17  ;;  %v1526_v63 = vsel %vm4582_vm10, %v1521_v11, %v1525_v47  ;;  %v4057_v45 = vcombine.low %v1925_v8, %v1928_v53  ;;  %v1872_v56 = vsel %vm4572_vm9, %v1870_v7, %v1871_v9  ;;  %v2385_v53 = vld [vmem:[#allocation2 + $0x84] sm:$0xe]  ;;  %v655_v7 = vld [vmem:[#allocation2 + $0x5c] sm:$0x1] }
 0x141   : > { %v4033_v35 = vcombine.low %v1516_v30, %v1526_v63  ;;  %v530_v5 = vshrl.u32 %v277_v23, 16  ;;  %v4049_v42 = vcombine.low %v1869_v46, %v1872_v56  ;;  %v524_v50 = vrot.slane %v522_v57, 7 }
 0x142   : > { %2946 = vrot.lane.b32.xlu1 %v4041_v61, %s4354_s4  ;;  %v533_v15 = vshll.u32 %v277_v23, 16  ;;  %v386_v51 = vshrl.u32 %v260_v44, 16  ;;  %v389_v32 = vshll.u32 %v260_v44, 16  ;;  %v394_v12 = vshrl.u32 %v261_v18, 16  ;;  %v651_v23 = vld [vmem:[#allocation2 + $0x54] sm:$0xf] }
 0x143   : > { %2930 = vrot.lane.b32.xlu0 %v4033_v35, %s4354_s4  ;;  %v532_v47 = vrot.slane %v530_v5, 7  ;;  %v397_v21 = vshll.u32 %v261_v18, 16  ;;  %v3375_v60 = vsel %vm3371_vm2, %v3342_v0, %v5446_v25  ;;  %v527_v36 = vor.u32 %v525_v28, %v524_v50  ;;  %v749_v61 = vld [vmem:[#allocation2 + $0xa8] sm:$0xf]  ;;  %v5653_v18 = vpop.permute.xlu0 %3004 }
 0x144   : > { %v528_v8 = vrot.slane %v524_v50, 4  ;;  %v388_v38 = vrot.slane %v386_v51, 7  ;;  %v3424_v30 = vsel %vm3404_vm3, %v3391_v59, %v5461_v2  ;;  %v396_v9 = vrot.slane %v394_v12, 7 }
 0x145   : > { %v535_v11 = vor.u32 %v533_v15, %v532_v47  ;;  %v537_v17 = vrot.slane %v532_v47, 4  ;;  %v708_v46 = vsel %vm4593_vm11, %v527_v36, %v707_v40  ;;  %v3949_v44 = vrot.slane %v2377_v33, 9 }
 0x146   : > { %3026 = vrot.lane.b32.xlu1 %v4057_v45, %s4353_s30  ;;  %v391_v25 = vor.u32 %v389_v32, %v388_v38  ;;  %v392_v0 = vrot.slane %v388_v38, 4  ;;  %709 = vst [vmem:[#allocation2 + $0xb4] sm:$0xf] %v708_v46  ;;  %v399_v59 = vor.u32 %v397_v21, %v396_v9  ;;  %v401_v57 = vrot.slane %v396_v9, 4  ;;  %v5651_v45 = vld [vmem:[#allocation2 + $0xac] sm:$0xf] }
 0x147   : > { %3010 = vrot.lane.b32.xlu0 %v4049_v42, %s4353_s30  ;;  %v536_v2 = vsel %vm4599_vm12, %v528_v8, %v535_v11  ;;  %v712_v63 = vsel %vm4650_vm13, %v537_v17, %v711_v31  ;;  %v6450_v56 = vrot.slane %v4958_v62, 5  ;;  %v3957_v50 = vrot.slane %v2385_v53, 9  ;;  %v5670_v32 = vld [vmem:[#allocation2 + $0xb0] sm:$0x1]  ;;  %v5682_v31 = vpop.permute.xlu1 %3116  ;;  %v5693_v53 = vld [vmem:[#allocation2 + $0x4c] sm:$0xf] }
 0x148   : > { %710 = vst.msk [vmem:[#allocation2 + $0xb8] sm:$0xf] %vm192_vm0, %v536_v2  ;;  %v652_v35 = vsel %vm4593_vm11, %v391_v25, %v651_v23  ;;  %713 = vst [vmem:[#allocation2 + $0xbc] sm:$0x1] %v712_v63  ;;  %v400_v15 = vsel %vm4599_vm12, %v392_v0, %v399_v59  ;;  %v656_v40 = vsel %vm4650_vm13, %v401_v57, %v655_v7  ;;  %v6452_v51 = vrot.slane %v4950_v37, 5  ;;  %v5706_v2 = vpop.permute.xlu0 %3100 }
 0x149   : > { %v2450_v28 = vsel %vm4572_vm9, %v3949_v44, %v6450_v56  ;;  %v6451_v5 = vmov %v6450_v56  ;;  %653 = vst [vmem:[#allocation2 + $0x54] sm:$0xf] %v652_v35  ;;  %v1109_v12 = vshrl.u32 %v749_v61, 16  ;;  %654 = vst.msk [vmem:[#allocation2 + $0x58] sm:$0xf] %vm192_vm0, %v400_v15  ;;  %v6453_v62 = vrot.slane %v4967_v26, 5 }
 0x14a   : > { %v2451_v42 = vrot.slane %v6451_v5, 4  ;;  %v2507_v47 = vrot.slane %v6452_v51, 4  ;;  %657 = vst [vmem:[#allocation2 + $0x5c] sm:$0x1] %v656_v40  ;;  %v6454_v33 = vmov %v6452_v51  ;;  %v1112_v8 = vshll.u32 %v749_v61, 16 }
 0x14b   : > { %v2506_v36 = vsel %vm4572_vm9, %v3957_v50, %v6454_v33  ;;  %v1118_v38 = vshll.u32 %v5651_v45, 16  ;;  %v3408_v11 = vsel %vm3404_vm3, %v3375_v60, %v5476_v27  ;;  %v6455_v23 = vrot.slane %v4954_v14, 5  ;;  %v5691_v37 = vld [vmem:[#allocation2 + $0x48] sm:$0xf]  ;;  %v6456_v27 = vld [vmem:[#allocation15_spill] sm:$0xff] }
 0x14c   : > { %v2453_v21 = vsel %vm4572_vm9, %v2451_v42, %v6453_v62  ;;  %v1122_v17 = vshrl.u32 %v5651_v45, 16  ;;  %v1111_v25 = vrot.slane %v1109_v12, 4  ;;  %v1114_v0 = vrot.slane %v1112_v8, 5  ;;  %v5719_v62 = vpop.permute.xlu1 %3196  ;;  %v4266_v44 = vld [vmem:[#allocation2 + $0x24] sm:$0xf] }
 0x14d   : > { %v4093_v9 = vcombine.low %v2450_v28, %v2453_v21  ;;  %v2509_v26 = vsel %vm4572_vm9, %v2507_v47, %v6455_v23  ;;  %v1128_v7 = vshll.u32 %v5670_v32, 16  ;;  %v5699_v60 = vsel %vm3437_vm4, %v3424_v30, %v6456_v27  ;;  %v1970_v59 = vld [vmem:[#allocation2 + $0xb4] sm:$0xf] }
 0x14e   : > { %v4101_v46 = vcombine.low %v2506_v36, %v2509_v26  ;;  %v3441_v14 = vsel %vm3437_vm4, %v3408_v11, %v5501_v13  ;;  %v5704_v61 = vrot.slane %v1118_v38, 5  ;;  %v1124_v63 = vrot.slane %v1122_v17, 4 }
 0x14f   : > { %4119 = vmatprep.mubr.msk.bf16.mxu0 %vm3256_vm14, %v4093_v9  ;;  %v917_v57 = vshrl.u32 %v5691_v37, 16  ;;  %v920_v35 = vshll.u32 %v5691_v37, 16  ;;  %v926_v30 = vshll.u32 %v5693_v53, 16  ;;  %v5712_v56 = vld [vmem:[#allocation2 + $0xb8] sm:$0xf]  ;;  %v2305_v28 = vshrl.u32 %v1970_v59, 16 }
 0x150   : > { %4127 = vmatprep.mubr.msk.bf16.mxu1 %vm3256_vm14, %v4101_v46  ;;  %v2308_v13 = vshll.u32 %v1970_v59, 16  ;;  %v1130_v5 = vrot.slane %v1128_v7, 5  ;;  %v3475_v42 = vsel %vm3470_vm5, %v3441_v14, %v5525_v54  ;;  %v2318_v50 = vshrl.u32 %v5712_v56, 16  ;;  %v1954_v40 = vld [vmem:[#allocation2 + $0x54] sm:$0xf]  ;;  %v5731_v7 = vpop.permute.xlu0 %3180 }
 0x151   : > { %v4073_v15 = vcombine.low %v1970_v59, %v5712_v56  ;;  %v1989_v51 = vld [vmem:[#allocation2 + $0xbc] sm:$0x1]  ;;  %v2314_v47 = vshll.u32 %v5712_v56, 16  ;;  %v1115_v12 = vor.u32 %v1114_v0, %v1111_v25  ;;  %3687 = vmatmul.mubr.bf16.gmra.mxu0 %v3475_v42  ;;  %v2307_v21 = vrot.slane %v2305_v28, 4  ;;  %v5721_v36 = vld [vmem:[#allocation2 + $0x58] sm:$0xf] }
 0x152   : > { %v2310_v33 = vrot.slane %v2308_v13, 5  ;;  %v2113_v8 = vshrl.u32 %v1954_v40, 16  ;;  %v2116_v38 = vshll.u32 %v1954_v40, 16  ;;  %v2126_v54 = vshrl.u32 %v5721_v36, 16  ;;  %v5726_v23 = vld [vmem:[#allocation2 + $0x5c] sm:$0x1] }
 0x153   : > { %3122 = vrot.lane.b32.xlu1 %v4073_v15, %s4352_s29  ;;  %v4065_v11 = vcombine.low %v1954_v40, %v5721_v36  ;;  %v2316_v9 = vrot.slane %v2314_v47, 5  ;;  %v930_v26 = vshrl.u32 %v5693_v53, 16  ;;  %v2320_v25 = vrot.slane %v2318_v50, 4  ;;  %v5729_v0 = vld [vmem:[#allocation2 + $0x50] sm:$0x1] }
 0x154   : > { %v2115_v17 = vrot.slane %v2113_v8, 4  ;;  %v2118_v37 = vrot.slane %v2116_v38, 5  ;;  %v2311_v46 = vor.u32 %v2310_v33, %v2307_v21  ;;  %v2324_v27 = vshll.u32 %v1989_v51, 16  ;;  %v5738_v8 = vpop.permute.xlu1 %2686 }
 0x155   : > { %3106 = vrot.lane.b32.xlu0 %v4065_v11, %s4352_s29  ;;  %v2122_v14 = vshll.u32 %v5721_v36, 16  ;;  %v2128_v59 = vrot.slane %v2126_v54, 4  ;;  %v1125_v28 = vor.u32 %v1124_v63, %v5704_v61  ;;  %v2321_v42 = vor.u32 %v2320_v25, %v2316_v9 }
 0x156   : > { %v2312_v13 = vrot.slane %v2311_v46, 4  ;;  %v2119_v15 = vor.u32 %v2118_v37, %v2115_v17  ;;  %v2132_v40 = vshll.u32 %v5726_v23, 16  ;;  %v2326_v47 = vrot.slane %v2324_v27, 5 }
 0x157   : > { %v2124_v21 = vrot.slane %v2122_v14, 5  ;;  %v1116_v50 = vrot.slane %v1115_v12, 4  ;;  %v936_v33 = vshll.u32 %v5729_v0, 16  ;;  %v2322_v38 = vrot.slane %v2321_v42, 4  ;;  %v1170_v14 = vld [vmem:[#allocation2 + $0xa8] sm:$0xe] }
 0x158   : > { %v2317_v51 = vsel %vm4582_vm10, %v2312_v13, %v2316_v9  ;;  %v2120_v11 = vrot.slane %v2119_v15, 4  ;;  %v2134_v54 = vrot.slane %v2132_v40, 5  ;;  %v1126_v17 = vrot.slane %v1125_v28, 4  ;;  %v5749_v9 = vpop.permute.xlu0 %2670 }
 0x159   : > { %v2129_v22 = vor.u32 %v2128_v59, %v2124_v21  ;;  %v1121_v63 = vsel %vm4582_vm10, %v1116_v50, %v5704_v61  ;;  %v919_v37 = vrot.slane %v917_v57, 4  ;;  %v2327_v12 = vsel %vm4582_vm10, %v2322_v38, %v2326_v47  ;;  %v1162_v47 = vld [vmem:[#allocation2 + $0x48] sm:$0xe]  ;;  %v4262_v38 = vld [vmem:[#allocation2 + $0x18] sm:$0xf] }
 0x15a   : > { %v2125_v46 = vsel %vm4582_vm10, %v2120_v11, %v2124_v21  ;;  %v922_v25 = vrot.slane %v920_v35, 5  ;;  %v928_v27 = vrot.slane %v926_v30, 5  ;;  %v4089_v13 = vcombine.low %v2317_v51, %v2327_v12  ;;  %v4261_v21 = vld [vmem:[#allocation2 + $0x7c] sm:$0xf] }
 0x15b   : > { %v2130_v42 = vrot.slane %v2129_v22, 4  ;;  %v1131_v59 = vsel %vm4582_vm10, %v1126_v17, %v1130_v5  ;;  %v932_v15 = vrot.slane %v930_v26, 4  ;;  %v938_v57 = vrot.slane %v936_v33, 5  ;;  %v4260_v22 = vld [vmem:[#allocation2 + $0x78] sm:$0xf]  ;;  %v5759_v26 = vpop.permute.xlu1 %2766 }
 0x15c   : > { %v3994_v61 = vcombine.low %v1121_v63, %v1131_v59  ;;  %v923_v28 = vor.u32 %v922_v25, %v919_v37  ;;  %v3499_v40 = vsel %vm3470_vm5, %v5699_v60, %v5515_v48  ;;  %3202 = vrot.lane.b32.xlu1 %v4089_v13, %s4355_s7  ;;  %v3974_v50 = vcombine.low %v4260_v22, %v4261_v21  ;;  %v4263_v11 = vld [vmem:[#allocation2 + $0x1c] sm:$0xf]  ;;  %v6457_v60 = vld [vmem:[#allocation13_spill] sm:$0xff]  ;;  %v5785_v21 = vld [vmem:[#allocation2 + $0x58] sm:$0xf] }
 0x15d   : > { %v2135_v35 = vsel %vm4582_vm10, %v2130_v42, %v2134_v54  ;;  %v933_v30 = vor.u32 %v932_v15, %v928_v27  ;;  %3751 = vmatmul.mubr.bf16.gmra.mxu1 %v3499_v40  ;;  %v3930_v5 = vrot.slane %v1170_v14, 9  ;;  %v3966_v63 = vcombine.low %v4262_v38, %v4263_v11  ;;  %v1363_v25 = vld [vmem:[#allocation2 + $0xb4] sm:$0xf]  ;;  %v6458_v13 = vld [vmem:[#allocation14_spill] sm:$0xff]  ;;  %v5770_v15 = vpop.permute.xlu0 %2750 }
 0x15e   : > { %v4081_v51 = vcombine.low %v2125_v46, %v2135_v35  ;;  %v924_v33 = vrot.slane %v923_v28, 4  ;;  %v1323_v48 = vrot.slane %v5651_v45, 5  ;;  %v1326_v54 = vrot.slane %v5670_v32, 5 }
 0x15f   : > { %v934_v37 = vrot.slane %v933_v30, 4  ;;  %v3922_v12 = vrot.slane %v1162_v47, 9  ;;  %v3289_v32 = vsel %vm3256_vm14, %v3974_v50, %v5536_v58  ;;  %v1267_v28 = vrot.slane %v5693_v53, 5  ;;  %v5779_v47 = vld [vmem:[#allocation2 + $0xb8] sm:$0xf] }
 0x160   : > { %3186 = vrot.lane.b32.xlu0 %v4081_v51, %s4355_s7  ;;  %v929_v46 = vsel %vm4582_vm10, %v924_v33, %v928_v27  ;;  %v1324_v14 = vsel %vm4572_vm9, %v3930_v5, %v1323_v48  ;;  %v1325_v59 = vrot.slane %v1323_v48, 4  ;;  %2692 = vrot.lane.b32.xlu1 %v3994_v61, %s4350_s21  ;;  %v1270_v40 = vrot.slane %v5729_v0, 5  ;;  %v1347_v27 = vld [vmem:[#allocation2 + $0x54] sm:$0xf]  ;;  %v5789_v0 = vpop.permute.xlu1 %2862 }
 0x161   : > { %v939_v45 = vsel %vm4582_vm10, %v934_v37, %v938_v57  ;;  %v3265_v30 = vsel %vm3256_vm14, %v3966_v63, %v5550_v34  ;;  %v1720_v22 = vshrl.u32 %v1363_v25, 16  ;;  %v1268_v58 = vsel %vm4572_vm9, %v3922_v12, %v1267_v28  ;;  %v1381_v37 = vld [vmem:[#allocation2 + $0xbc] sm:$0x1] }
 0x162   : > { %v3986_v35 = vcombine.low %v929_v46, %v939_v45  ;;  %v1327_v61 = vsel %vm4572_vm9, %v1325_v59, %v1326_v54  ;;  %v1269_v53 = vrot.slane %v1267_v28, 4  ;;  %v1723_v50 = vshll.u32 %v1363_v25, 16  ;;  %v5802_v59 = vpop.permute.xlu0 %2846 }
 0x163   : > { %v4010_v57 = vcombine.low %v1324_v14, %v1327_v61  ;;  %v1722_v5 = vrot.slane %v1720_v22, 4  ;;  %v1733_v51 = vshrl.u32 %v5779_v47, 16  ;;  %v4026_v34 = vcombine.low %v1363_v25, %v5779_v47  ;;  %v1373_v25 = vld [vmem:[#allocation2 + $0x5c] sm:$0x1] }
 0x164   : > { %2676 = vrot.lane.b32.xlu0 %v3986_v35, %s4350_s21  ;;  %v1528_v33 = vshrl.u32 %v1347_v27, 16  ;;  %v1271_v38 = vsel %vm4572_vm9, %v1269_v53, %v1270_v40  ;;  %v1725_v11 = vrot.slane %v1723_v50, 5  ;;  %v1531_v63 = vshll.u32 %v1347_v27, 16  ;;  %v1781_v53 = vld [vmem:[#allocation2 + $0xb4] sm:$0xe]  ;;  %v5809_v50 = vpop.permute.xlu1 %2942 }
 0x165   : > { %2772 = vrot.lane.b32.xlu1 %v4010_v57, %s4349_s15  ;;  %v1541_v48 = vshrl.u32 %v5785_v21, 16  ;;  %v4002_v54 = vcombine.low %v1268_v58, %v1271_v38  ;;  %v3327_v12 = vsel %vm3305_vm15, %v3289_v32, %v5578_v6  ;;  %v3311_v46 = vsel %vm3305_vm15, %v3265_v30, %v5587_v1  ;;  %v1773_v38 = vld [vmem:[#allocation2 + $0x54] sm:$0xe] }
 0x166   : > { %v1530_v14 = vrot.slane %v1528_v33, 4  ;;  %v1533_v45 = vrot.slane %v1531_v63, 5  ;;  %v4018_v28 = vcombine.low %v1347_v27, %v5785_v21  ;;  %v1726_v40 = vor.u32 %v1725_v11, %v1722_v5 }
 0x167   : > { %v1729_v35 = vshll.u32 %v5779_v47, 16  ;;  %v1735_v61 = vrot.slane %v1733_v51, 4  ;;  %v1739_v22 = vshll.u32 %v1381_v37, 16  ;;  %v1537_v57 = vshll.u32 %v5785_v21, 16 }
 0x168   : > { %2756 = vrot.lane.b32.xlu0 %v4002_v54, %s4349_s15  ;;  %v1543_v6 = vrot.slane %v1541_v48, 4  ;;  %v1727_v1 = vrot.slane %v1726_v40, 4  ;;  %v1534_v30 = vor.u32 %v1533_v45, %v1530_v14  ;;  %v1547_v58 = vshll.u32 %v1373_v25, 16 }
 0x169   : > { %2868 = vrot.lane.b32.xlu1 %v4026_v34, %s4351_s27  ;;  %v1731_v32 = vrot.slane %v1729_v35, 5  ;;  %v3360_v27 = vsel %vm3338_vm1, %v3327_v12, %v5596_v55  ;;  %v3344_v5 = vsel %vm3338_vm1, %v3311_v46, %v5606_v3  ;;  %v1741_v51 = vrot.slane %v1739_v22, 5  ;;  %v5819_v12 = vpop.permute.xlu0 %2926 }
 0x16a   : > { %v1539_v33 = vrot.slane %v1537_v57, 5  ;;  %v1535_v63 = vrot.slane %v1534_v30, 4  ;;  %v1549_v48 = vrot.slane %v1547_v58, 5  ;;  %v3946_v14 = vrot.slane %v1781_v53, 9  ;;  %v279_v30 = vld [vmem:[%s4455_s28 + $0x7c] sm:$0xf]  ;;  %v5834_v58 = vpop.permute.xlu1 %3022 }
 0x16b   : > { %v1732_v11 = vsel %vm4582_vm10, %v1727_v1, %v1731_v32  ;;  %v1736_v34 = vor.u32 %v1735_v61, %v1731_v32  ;;  %v1931_v45 = vrot.slane %v5779_v47, 5  ;;  %v1934_v55 = vrot.slane %v1381_v37, 5 }
 0x16c   : > { %2852 = vrot.lane.b32.xlu0 %v4018_v28, %s4351_s27  ;;  %v1544_v54 = vor.u32 %v1543_v6, %v1539_v33  ;;  %v1540_v46 = vsel %vm4582_vm10, %v1535_v63, %v1539_v33  ;;  %v3938_v40 = vrot.slane %v1773_v38, 9  ;;  %v1875_v35 = vrot.slane %v5785_v21, 5  ;;  %v278_v6 = vld [vmem:[%s4455_s28 + $0x78] sm:$0xf]  ;;  %v1956_v33 = vld [vmem:[#allocation2 + $0x60] sm:$0xf] }
 0x16d   : > { %v1737_v3 = vrot.slane %v1736_v34, 4  ;;  %v1932_v22 = vsel %vm4572_vm9, %v3946_v14, %v1931_v45  ;;  %v1933_v28 = vrot.slane %v1931_v45, 4  ;;  %v1878_v57 = vrot.slane %v1373_v25, 5  ;;  %v5842_v38 = vld [vmem:[#allocation2 + $0x64] sm:$0xf]  ;;  %v5847_v45 = vpop.permute.xlu0 %3006  ;;  %s4137_s28 = sshll.u32 %s6497_s16, 8 }
 0x16e   : > { %v1545_v61 = vrot.slane %v1544_v54, 4  ;;  %v3393_v37 = vsel %vm3371_vm2, %v3360_v27, %v5619_v19  ;;  %v1876_v1 = vsel %vm4572_vm9, %v3938_v40, %v1875_v35  ;;  %v1877_v32 = vrot.slane %v1875_v35, 4 }
 0x16f   : > { %v1742_v47 = vsel %vm4582_vm10, %v1737_v3, %v1741_v51  ;;  %v3377_v25 = vsel %vm3371_vm2, %v3344_v5, %v5633_v16  ;;  %v1935_v51 = vsel %vm4572_vm9, %v1933_v28, %v1934_v55  ;;  %v539_v63 = vshrl.u32 %v278_v6, 16  ;;  %v5856_v28 = vld [vmem:[#allocation2 + $0x68] sm:$0x1] }
 0x170   : > { %v4042_v21 = vcombine.low %v1732_v11, %v1742_v47  ;;  %v1550_v53 = vsel %vm4582_vm10, %v1545_v61, %v1549_v48  ;;  %v4058_v27 = vcombine.low %v1932_v22, %v1935_v51  ;;  %v1879_v34 = vsel %vm4572_vm9, %v1877_v32, %v1878_v57  ;;  %v714_v22 = vld [vmem:[#allocation2 + $0xc0] sm:$0xf]  ;;  %v718_v32 = vld [vmem:[#allocation2 + $0xc8] sm:$0x1] }
 0x171   : > { %v4034_v19 = vcombine.low %v1540_v46, %v1550_v53  ;;  %v4050_v11 = vcombine.low %v1876_v1, %v1879_v34  ;;  %v542_v54 = vshll.u32 %v278_v6, 16  ;;  %v547_v48 = vshrl.u32 %v279_v30, 16  ;;  %v5875_v39 = vpop.permute.xlu0 %3102 }
 0x172   : > { %2948 = vrot.lane.b32.xlu1 %v4042_v21, %s4354_s4  ;;  %v550_v14 = vshll.u32 %v279_v30, 16  ;;  %v541_v16 = vrot.slane %v539_v63, 7  ;;  %v2137_v5 = vshrl.u32 %v1956_v33, 16  ;;  %v2140_v55 = vshll.u32 %v1956_v33, 16  ;;  %v5858_v30 = vpop.permute.xlu1 %3118  ;;  %v2386_v63 = vld [vmem:[#allocation2 + $0x90] sm:$0xe] }
 0x173   : > { %2932 = vrot.lane.b32.xlu0 %v4034_v19, %s4354_s4  ;;  %v2150_v3 = vshrl.u32 %v5842_v38, 16  ;;  %v3426_v40 = vsel %vm3404_vm3, %v3393_v37, %v5639_v24  ;;  %v3410_v35 = vsel %vm3404_vm3, %v3377_v25, %v5653_v18  ;;  %v549_v61 = vrot.slane %v547_v48, 7  ;;  %v2378_v18 = vld [vmem:[#allocation2 + $0x30] sm:$0xe] }
 0x174   : > { %v544_v57 = vor.u32 %v542_v54, %v541_v16  ;;  %v545_v6 = vrot.slane %v541_v16, 4  ;;  %v2139_v47 = vrot.slane %v2137_v5, 4  ;;  %v2142_v1 = vrot.slane %v2140_v55, 5  ;;  %v5867_v54 = vld [vmem:[#allocation2 + $0xb4] sm:$0xf]  ;;  %v6459_v55 = vld [vmem:[#allocation8_spill] sm:$0xff] }
 0x175   : > { %v552_v21 = vor.u32 %v550_v14, %v549_v61  ;;  %v4066_v53 = vcombine.low %v1956_v33, %v5842_v38  ;;  %v554_v24 = vrot.slane %v549_v61, 4  ;;  %v2146_v37 = vshll.u32 %v5842_v38, 16 }
 0x176   : > { %3028 = vrot.lane.b32.xlu1 %v4058_v27, %s4353_s30  ;;  %v715_v25 = vsel %vm4593_vm11, %v544_v57, %v714_v22  ;;  %v2143_v51 = vor.u32 %v2142_v1, %v2139_v47  ;;  %v2152_v19 = vrot.slane %v2150_v3, 4  ;;  %v2156_v34 = vshll.u32 %v5856_v28, 16  ;;  %v6461_v57 = vld [vmem:[#allocation6_spill] sm:$0xff] }
 0x177   : > { %3012 = vrot.lane.b32.xlu0 %v4050_v11, %s4353_s30  ;;  %v553_v27 = vsel %vm4599_vm12, %v545_v6, %v552_v21  ;;  %716 = vst [vmem:[#allocation2 + $0xc0] sm:$0xf] %v715_v25  ;;  %v3459_v33 = vsel %vm3437_vm4, %v3426_v40, %v5682_v31  ;;  %v719_v11 = vsel %vm4650_vm13, %v554_v24, %v718_v32  ;;  %v2148_v48 = vrot.slane %v2146_v37, 5  ;;  %v5882_v40 = vld [vmem:[#allocation2 + $0xb8] sm:$0xf]  ;;  %v6464_v21 = vld [vmem:[#allocation9_spill] sm:$0xff] }
 0x178   : > { %717 = vst.msk [vmem:[#allocation2 + $0xc4] sm:$0xf] %vm192_vm0, %v553_v27  ;;  %720 = vst [vmem:[#allocation2 + $0xc8] sm:$0x1] %v719_v11  ;;  %v2144_v14 = vrot.slane %v2143_v51, 4  ;;  %v2158_v16 = vrot.slane %v2156_v34, 5  ;;  %v5899_v51 = vpop.permute.xlu1 %3198 }
 0x179   : > { %v3950_v5 = vrot.slane %v2378_v18, 9  ;;  %v6460_v3 = vrot.slane %v6459_v55, 5  ;;  %v2153_v61 = vor.u32 %v2152_v19, %v2148_v48  ;;  %v3958_v22 = vrot.slane %v2386_v63, 9  ;;  %v5896_v18 = vld [vmem:[#allocation2 + $0xbc] sm:$0x1]  ;;  %v6467_v27 = vld [vmem:[#allocation7_spill] sm:$0xff] }
 0x17a   : > { %v6462_v6 = vrot.slane %v6461_v57, 5  ;;  %v1133_v52 = vshrl.u32 %v5867_v54, 16  ;;  %v2149_v47 = vsel %vm4582_vm10, %v2144_v14, %v2148_v48  ;;  %v6465_v24 = vrot.slane %v6464_v21, 5  ;;  %v5909_v14 = vld [vmem:[#allocation2 + $0x54] sm:$0xf] }
 0x17b   : > { %v2458_v41 = vrot.slane %v6460_v3, 4  ;;  %3108 = vrot.lane.b32.xlu0 %v4066_v53, %s4352_s29  ;;  %v6463_v1 = vmov %v6460_v3  ;;  %v1136_v25 = vshll.u32 %v5867_v54, 16  ;;  %v2154_v53 = vrot.slane %v2153_v61, 4 }
 0x17c   : > { %v2514_v31 = vrot.slane %v6462_v6, 4  ;;  %v2457_v32 = vsel %vm4572_vm9, %v3950_v5, %v6463_v1  ;;  %v6466_v34 = vmov %v6462_v6  ;;  %v6468_v11 = vrot.slane %v6467_v27, 5  ;;  %v5936_v27 = vpop.permute.xlu1 %2688 }
 0x17d   : > { %v2460_v37 = vsel %vm4572_vm9, %v2458_v41, %v6465_v24  ;;  %v2513_v63 = vsel %vm4572_vm9, %v3958_v22, %v6466_v34  ;;  %v1135_v55 = vrot.slane %v1133_v52, 4  ;;  %v1138_v3 = vrot.slane %v1136_v25, 5 }
 0x17e   : > { %v4094_v19 = vcombine.low %v2457_v32, %v2460_v37  ;;  %v2516_v48 = vsel %vm4572_vm9, %v2514_v31, %v6468_v11  ;;  %v1142_v41 = vshll.u32 %v5882_v40, 16  ;;  %v3443_v61 = vsel %vm3437_vm4, %v3410_v35, %v5706_v2  ;;  %v5919_v31 = vpop.permute.xlu0 %3182  ;;  %v1972_v1 = vld [vmem:[#allocation2 + $0xc0] sm:$0xf] }
 0x17f   : > { %v4102_v5 = vcombine.low %v2513_v63, %v2516_v48  ;;  %v2159_v57 = vsel %vm4582_vm10, %v2154_v53, %v2158_v16  ;;  %v1146_v22 = vshrl.u32 %v5882_v40, 16  ;;  %v1152_v6 = vshll.u32 %v5896_v18, 16  ;;  %v5923_v2 = vld [vmem:[#allocation2 + $0xc4] sm:$0xf]  ;;  %v5925_v37 = vld [vmem:[#allocation2 + $0xc8] sm:$0x1] }
 0x180   : > { %4120 = vmatprep.mubr.msk.bf16.mxu0 %vm3256_vm14, %v4094_v19  ;;  %v4082_v32 = vcombine.low %v2149_v47, %v2159_v57  ;;  %v1139_v52 = vor.u32 %v1138_v3, %v1135_v55  ;;  %v1144_v21 = vrot.slane %v1142_v41, 5  ;;  %v941_v24 = vshrl.u32 %v5909_v14, 16 }
 0x181   : > { %4128 = vmatprep.mubr.msk.bf16.mxu1 %vm3256_vm14, %v4102_v5  ;;  %v2329_v35 = vshrl.u32 %v1972_v1, 16  ;;  %v2332_v16 = vshll.u32 %v1972_v1, 16  ;;  %v3478_v25 = vsel %vm3470_vm5, %v3443_v61, %v5731_v7  ;;  %v3502_v53 = vsel %vm3470_vm5, %v3459_v33, %v5719_v62  ;;  %v5940_v62 = vld [vmem:[#allocation2 + $0x58] sm:$0xf]  ;;  %v5943_v61 = vld [vmem:[#allocation2 + $0x5c] sm:$0x1] }
 0x182   : > { %v2342_v47 = vshrl.u32 %v5923_v2, 16  ;;  %v4074_v19 = vcombine.low %v1972_v1, %v5923_v2  ;;  %v2338_v34 = vshll.u32 %v5923_v2, 16  ;;  %3188 = vrot.lane.b32.xlu0 %v4082_v32, %s4355_s7  ;;  %v944_v63 = vshll.u32 %v5909_v14, 16  ;;  %3695 = vmatmul.mubr.bf16.gmra.mxu0 %v3478_v25  ;;  %v5945_v46 = vpop.permute.xlu0 %2672 }
 0x183   : > { %v2331_v48 = vrot.slane %v2329_v35, 4  ;;  %v2334_v7 = vrot.slane %v2332_v16, 5  ;;  %v2348_v5 = vshll.u32 %v5925_v37, 16  ;;  %3759 = vmatmul.mubr.bf16.gmra.mxu1 %v3502_v53  ;;  %v1140_v3 = vrot.slane %v1139_v52, 4 }
 0x184   : > { %3124 = vrot.lane.b32.xlu1 %v4074_v19, %s4352_s29  ;;  %v2340_v33 = vrot.slane %v2338_v34, 5  ;;  %v2344_v55 = vrot.slane %v2342_v47, 4  ;;  %v1148_v41 = vrot.slane %v1146_v22, 4  ;;  %v1154_v32 = vrot.slane %v1152_v6, 5  ;;  %v4264_v6 = vld [vmem:[#allocation2 + $0x84] sm:$0xf] }
 0x185   : > { %v2335_v57 = vor.u32 %v2334_v7, %v2331_v48  ;;  %v2350_v1 = vrot.slane %v2348_v5, 5  ;;  %v943_v25 = vrot.slane %v941_v24, 4  ;;  %v1145_v16 = vsel %vm4582_vm10, %v1140_v3, %v1144_v21  ;;  %v4265_v24 = vld [vmem:[#allocation2 + $0x88] sm:$0xf]  ;;  %v5952_v5 = vpop.permute.xlu1 %2768 }
 0x186   : > { %v2345_v35 = vor.u32 %v2344_v55, %v2340_v33  ;;  %v1149_v11 = vor.u32 %v1148_v41, %v1144_v21  ;;  %v946_v53 = vrot.slane %v944_v63, 5  ;;  %v950_v19 = vshll.u32 %v5940_v62, 16  ;;  %v1171_v41 = vld [vmem:[#allocation2 + $0xb4] sm:$0xe] }
 0x187   : > { %v2336_v17 = vrot.slane %v2335_v57, 4  ;;  %v954_v52 = vshrl.u32 %v5940_v62, 16  ;;  %v960_v22 = vshll.u32 %v5943_v61, 16  ;;  %v3975_v7 = vcombine.low %v4264_v6, %v4265_v24 }
 0x188   : > { %v2346_v47 = vrot.slane %v2345_v35, 4  ;;  %v1150_v34 = vrot.slane %v1149_v11, 4  ;;  %v947_v48 = vor.u32 %v946_v53, %v943_v25  ;;  %v952_v21 = vrot.slane %v950_v19, 5  ;;  %v1163_v53 = vld [vmem:[#allocation2 + $0x54] sm:$0xe]  ;;  %v5962_v19 = vpop.permute.xlu0 %2752 }
 0x189   : > { %v2341_v55 = vsel %vm4582_vm10, %v2336_v17, %v2340_v33  ;;  %v956_v63 = vrot.slane %v954_v52, 4  ;;  %v962_v3 = vrot.slane %v960_v22, 5  ;;  %v3292_v25 = vsel %vm3256_vm14, %v3975_v7, %v5738_v8  ;;  %v4267_v17 = vld [vmem:[#allocation2 + $0x28] sm:$0xf] }
 0x18a   : > { %v2351_v57 = vsel %vm4582_vm10, %v2346_v47, %v2350_v1  ;;  %v1155_v35 = vsel %vm4582_vm10, %v1150_v34, %v1154_v32  ;;  %v948_v11 = vrot.slane %v947_v48, 4  ;;  %v3967_v33 = vcombine.low %v4266_v44, %v4267_v17  ;;  %v1365_v44 = vld [vmem:[#allocation2 + $0xc0] sm:$0xf] }
 0x18b   : > { %v4090_v6 = vcombine.low %v2341_v55, %v2351_v57  ;;  %v3995_v24 = vcombine.low %v1145_v16, %v1155_v35  ;;  %v957_v42 = vor.u32 %v956_v63, %v952_v21  ;;  %v3931_v1 = vrot.slane %v1171_v41, 9  ;;  %v5979_v63 = vpop.permute.xlu1 %2864  ;;  %v1349_v35 = vld [vmem:[#allocation2 + $0x60] sm:$0xf] }
 0x18c   : > { %v953_v52 = vsel %vm4582_vm10, %v948_v11, %v952_v21  ;;  %v1330_v22 = vrot.slane %v5882_v40, 5  ;;  %v1333_v32 = vrot.slane %v5896_v18, 5  ;;  %v3268_v16 = vsel %vm3256_vm14, %v3967_v33, %v5749_v9  ;;  %v5977_v18 = vld [vmem:[#allocation2 + $0xc4] sm:$0xf] }
 0x18d   : > { %3204 = vrot.lane.b32.xlu1 %v4090_v6, %s4355_s7  ;;  %v958_v8 = vrot.slane %v957_v42, 4  ;;  %v3923_v47 = vrot.slane %v1163_v53, 9  ;;  %v1274_v34 = vrot.slane %v5940_v62, 5  ;;  %v1277_v55 = vrot.slane %v5943_v61, 5  ;;  %v1350_v53 = vld [vmem:[#allocation2 + $0x64] sm:$0xf] }
 0x18e   : > { %v1331_v48 = vsel %vm4572_vm9, %v3931_v1, %v1330_v22  ;;  %v1332_v7 = vrot.slane %v1330_v22, 4  ;;  %v3329_v21 = vsel %vm3305_vm15, %v3292_v25, %v5759_v26  ;;  %v3313_v57 = vsel %vm3305_vm15, %v3268_v16, %v5770_v15  ;;  %v5994_v1 = vpop.permute.xlu0 %2848 }
 0x18f   : > { %v963_v9 = vsel %vm4582_vm10, %v958_v8, %v962_v3  ;;  %v1275_v42 = vsel %vm4572_vm9, %v3923_v47, %v1274_v34  ;;  %v1276_v41 = vrot.slane %v1274_v34, 4  ;;  %v1744_v26 = vshrl.u32 %v1365_v44, 16  ;;  %v1382_v8 = vld [vmem:[#allocation2 + $0xc8] sm:$0x1] }
 0x190   : > { %v3987_v11 = vcombine.low %v953_v52, %v963_v9  ;;  %v1334_v61 = vsel %vm4572_vm9, %v1332_v7, %v1333_v32  ;;  %v1747_v25 = vshll.u32 %v1365_v44, 16  ;;  %v1757_v17 = vshrl.u32 %v5977_v18, 16 }
 0x191   : > { %2694 = vrot.lane.b32.xlu1 %v3995_v24, %s4350_s21  ;;  %v4011_v6 = vcombine.low %v1331_v48, %v1334_v61  ;;  %v1278_v3 = vsel %vm4572_vm9, %v1276_v41, %v1277_v55  ;;  %v4027_v33 = vcombine.low %v1365_v44, %v5977_v18  ;;  %v1746_v52 = vrot.slane %v1744_v26, 4  ;;  %v1374_v48 = vld [vmem:[#allocation2 + $0x68] sm:$0x1]  ;;  %v6002_v41 = vpop.permute.xlu1 %2944 }
 0x192   : > { %2678 = vrot.lane.b32.xlu0 %v3987_v11, %s4350_s21  ;;  %v4003_v15 = vcombine.low %v1275_v42, %v1278_v3  ;;  %v1749_v22 = vrot.slane %v1747_v25, 5  ;;  %v1552_v32 = vshrl.u32 %v1349_v35, 16  ;;  %v1555_v16 = vshll.u32 %v1349_v35, 16  ;;  %v1782_v3 = vld [vmem:[#allocation2 + $0xc0] sm:$0xe]  ;;  %v6008_v4 = vpop.permute.xlu0 %2928 }
 0x193   : > { %v1565_v47 = vshrl.u32 %v1350_v53, 16  ;;  %v4019_v24 = vcombine.low %v1349_v35, %v1350_v53  ;;  %v3362_v34 = vsel %vm3338_vm1, %v3329_v21, %v5789_v0  ;;  %v3346_v44 = vsel %vm3338_vm1, %v3313_v57, %v5802_v59 }
 0x194   : > { %v1554_v7 = vrot.slane %v1552_v32, 4  ;;  %v1750_v55 = vor.u32 %v1749_v22, %v1746_v52  ;;  %v1753_v9 = vshll.u32 %v5977_v18, 16  ;;  %v1557_v42 = vrot.slane %v1555_v16, 5  ;;  %v1774_v22 = vld [vmem:[#allocation2 + $0x60] sm:$0xe] }
 0x195   : > { %2774 = vrot.lane.b32.xlu1 %v4011_v6, %s4349_s15  ;;  %v1759_v11 = vrot.slane %v1757_v17, 4  ;;  %v1763_v61 = vshll.u32 %v1382_v8, 16  ;;  %v1561_v26 = vshll.u32 %v1350_v53, 16  ;;  %v1567_v21 = vrot.slane %v1565_v47, 4 }
 0x196   : > { %2758 = vrot.lane.b32.xlu0 %v4003_v15, %s4349_s15  ;;  %v1751_v35 = vrot.slane %v1750_v55, 4  ;;  %v1755_v0 = vrot.slane %v1753_v9, 5  ;;  %v1571_v25 = vshll.u32 %v1374_v48, 16  ;;  %v1558_v59 = vor.u32 %v1557_v42, %v1554_v7 }
 0x197   : > { %v1765_v32 = vrot.slane %v1763_v61, 5  ;;  %v1563_v57 = vrot.slane %v1561_v26, 5  ;;  %v3395_v52 = vsel %vm3371_vm2, %v3362_v34, %v5809_v50  ;;  %v3379_v15 = vsel %vm3371_vm2, %v3346_v44, %v5819_v12  ;;  %v6017_v26 = vpop.permute.xlu1 %3024 }
 0x198   : > { %v1756_v6 = vsel %vm4582_vm10, %v1751_v35, %v1755_v0  ;;  %v1760_v17 = vor.u32 %v1759_v11, %v1755_v0  ;;  %v1573_v16 = vrot.slane %v1571_v25, 5  ;;  %v1559_v47 = vrot.slane %v1558_v59, 4  ;;  %v1974_v0 = vld [vmem:[#allocation2 + $0xcc] sm:$0xf] }
 0x199   : > { %2870 = vrot.lane.b32.xlu1 %v4027_v33, %s4351_s27  ;;  %v1568_v55 = vor.u32 %v1567_v21, %v1563_v57  ;;  %v3947_v7 = vrot.slane %v1782_v3, 9  ;;  %v1938_v9 = vrot.slane %v5977_v18, 5  ;;  %v1941_v34 = vrot.slane %v1382_v8, 5 }
 0x19a   : > { %2854 = vrot.lane.b32.xlu0 %v4019_v24, %s4351_s27  ;;  %v1761_v50 = vrot.slane %v1760_v17, 4  ;;  %v3939_v42 = vrot.slane %v1774_v22, 9  ;;  %v1882_v61 = vrot.slane %v1350_v53, 5  ;;  %v1564_v11 = vsel %vm4582_vm10, %v1559_v47, %v1563_v57  ;;  %v6027_v53 = vld [vmem:[#allocation2 + $0xd0] sm:$0xf]  ;;  %v6037_v22 = vpop.permute.xlu0 %3008 }
 0x19b   : > { %v1569_v35 = vrot.slane %v1568_v55, 4  ;;  %v1939_v12 = vsel %vm4572_vm9, %v3947_v7, %v1938_v9  ;;  %v1940_v33 = vrot.slane %v1938_v9, 4  ;;  %v1885_v8 = vrot.slane %v1374_v48, 5  ;;  %6469 = vst [vmem:[#allocation15_spill] sm:$0xff] %v6027_v53  ;;  %v1958_v57 = vld [vmem:[#allocation2 + $0x6c] sm:$0xf] }
 0x19c   : > { %v1766_v44 = vsel %vm4582_vm10, %v1761_v50, %v1765_v32  ;;  %v1883_v18 = vsel %vm4572_vm9, %v3939_v42, %v1882_v61  ;;  %v1884_v24 = vrot.slane %v1882_v61, 4  ;;  %v3428_v59 = vsel %vm3404_vm3, %v3395_v52, %v5834_v58  ;;  %v6035_v32 = vld [vmem:[#allocation2 + $0x70] sm:$0xf]  ;;  %v6048_v42 = vld [vmem:[#allocation2 + $0xd4] sm:$0x1]  ;;  %v6050_v61 = vpop.permute.xlu1 %3120 }
 0x19d   : > { %v4043_v21 = vcombine.low %v1756_v6, %v1766_v44  ;;  %v1574_v25 = vsel %vm4582_vm10, %v1569_v35, %v1573_v16  ;;  %v1942_v3 = vsel %vm4572_vm9, %v1940_v33, %v1941_v34  ;;  %v3412_v6 = vsel %vm3404_vm3, %v3379_v15, %v5847_v45  ;;  %6470 = vst [vmem:[#allocation13_spill] sm:$0xff] %v6048_v42 }
 0x19e   : > { %v4035_v17 = vcombine.low %v1564_v11, %v1574_v25  ;;  %v4059_v48 = vcombine.low %v1939_v12, %v1942_v3  ;;  %v1886_v47 = vsel %vm4572_vm9, %v1884_v24, %v1885_v8  ;;  %v2353_v55 = vshrl.u32 %v1974_v0, 16  ;;  %v6055_v12 = vld [vmem:[#allocation2 + $0x74] sm:$0x1]  ;;  %v2379_v8 = vld [vmem:[#allocation2 + $0x3c] sm:$0xe] }
 0x19f   : > { %2950 = vrot.lane.b32.xlu1 %v4043_v21, %s4354_s4  ;;  %v4051_v16 = vcombine.low %v1883_v18, %v1886_v47  ;;  %v2356_v7 = vshll.u32 %v1974_v0, 16  ;;  %v2366_v58 = vshrl.u32 %v6027_v53, 16  ;;  %v4075_v52 = vcombine.low %v1974_v0, %v6027_v53  ;;  %v2387_v47 = vld [vmem:[#allocation2 + $0x9c] sm:$0xe] }
 0x1a0   : > { %2934 = vrot.lane.b32.xlu0 %v4035_v17, %s4354_s4  ;;  %v2161_v9 = vshrl.u32 %v1958_v57, 16  ;;  %v2164_v50 = vshll.u32 %v1958_v57, 16  ;;  %v2174_v34 = vshrl.u32 %v6035_v32, 16  ;;  %v2355_v45 = vrot.slane %v2353_v55, 4 }
 0x1a1   : > { %v2358_v15 = vrot.slane %v2356_v7, 5  ;;  %v4067_v11 = vcombine.low %v1958_v57, %v6035_v32  ;;  %v3461_v35 = vsel %vm3437_vm4, %v3428_v59, %v5858_v30  ;;  %v3445_v18 = vsel %vm3437_vm4, %v3412_v6, %v5875_v39  ;;  %v6063_v57 = vpop.permute.xlu0 %3104 }
 0x1a2   : > { %v2163_v33 = vrot.slane %v2161_v9, 4  ;;  %v2166_v44 = vrot.slane %v2164_v50, 5  ;;  %v2362_v24 = vshll.u32 %v6027_v53, 16  ;;  %v2368_v21 = vrot.slane %v2366_v58, 4  ;;  %v6069_v53 = vpop.permute.xlu1 %3200 }
 0x1a3   : > { %3030 = vrot.lane.b32.xlu1 %v4059_v48, %s4353_s30  ;;  %v2359_v0 = vor.u32 %v2358_v15, %v2355_v45  ;;  %v2372_v25 = vshll.u32 %v6048_v42, 16  ;;  %v2170_v3 = vshll.u32 %v6035_v32, 16  ;;  %v2176_v17 = vrot.slane %v2174_v34, 4  ;;  %v6471_v45 = vld [vmem:[#allocation12_spill] sm:$0xff] }
 0x1a4   : > { %3014 = vrot.lane.b32.xlu0 %v4051_v16, %s4353_s30  ;;  %v2364_v30 = vrot.slane %v2362_v24, 5  ;;  %v2167_v59 = vor.u32 %v2166_v44, %v2163_v33  ;;  %v2180_v39 = vshll.u32 %v6055_v12, 16  ;;  %v3951_v48 = vrot.slane %v2379_v8, 9  ;;  %s6257_s30 = scalar_lea.vmem %s6406_s3, %s4137_s28 }
 0x1a5   : > { %v2360_v6 = vrot.slane %v2359_v0, 4  ;;  %v2374_v55 = vrot.slane %v2372_v25, 5  ;;  %v2172_v7 = vrot.slane %v2170_v3, 5  ;;  %v6472_v15 = vrot.slane %v6471_v45, 5  ;;  %v6475_v25 = vld [vmem:[#allocation10_spill] sm:$0xff] }
 0x1a6   : > { %v2369_v9 = vor.u32 %v2368_v21, %v2364_v30  ;;  %v2168_v58 = vrot.slane %v2167_v59, 4  ;;  %v2182_v50 = vrot.slane %v2180_v39, 5  ;;  %v3959_v24 = vrot.slane %v2387_v47, 9  ;;  %v4268_v45 = vld [vmem:[#allocation2 + $0x90] sm:$0xf] }
 0x1a7   : > { %v2465_v42 = vrot.slane %v6472_v15, 4  ;;  %3126 = vrot.lane.b32.xlu1 %v4075_v52, %s4352_s29  ;;  %v2365_v16 = vsel %vm4582_vm10, %v2360_v6, %v2364_v30  ;;  %v2177_v34 = vor.u32 %v2176_v17, %v2172_v7  ;;  %v6473_v33 = vmov %v6472_v15  ;;  %v3185_v6 = vpop.permute.xlu0 %3184  ;;  %v4269_v15 = vld [vmem:[#allocation2 + $0x94] sm:$0xf] }
 0x1a8   : > { %v2464_v44 = vsel %vm4572_vm9, %v3951_v48, %v6473_v33  ;;  %3110 = vrot.lane.b32.xlu0 %v4067_v11, %s4352_s29  ;;  %v2370_v8 = vrot.slane %v2369_v9, 4  ;;  %v2173_v0 = vsel %vm4582_vm10, %v2168_v58, %v2172_v7  ;;  %v6474_v21 = vrot.slane %v5291_v20, 5  ;;  %v2380_v7 = vld [vmem:[#allocation2 + $0x48] sm:$0xe]  ;;  %v6478_v48 = vld [vmem:[#allocation11_spill] sm:$0xff] }
 0x1a9   : > { %v6476_v3 = vrot.slane %v6475_v25, 5  ;;  %v2178_v59 = vrot.slane %v2177_v34, 4  ;;  %v3481_v11 = vsel %vm3470_vm5, %v3445_v18, %v5919_v31  ;;  %v3505_v58 = vsel %vm3470_vm5, %v3461_v35, %v5899_v51  ;;  %v2388_v33 = vld [vmem:[#allocation2 + $0xa8] sm:$0xe] }
 0x1aa   : > { %v2467_v52 = vsel %vm4572_vm9, %v2465_v42, %v6474_v21  ;;  %v2375_v20 = vsel %vm4582_vm10, %v2370_v8, %v2374_v55  ;;  %v6479_v42 = vrot.slane %v6478_v48, 5  ;;  %v3976_v34 = vcombine.low %v4268_v45, %v4269_v15  ;;  %v4270_v55 = vld [vmem:[#allocation2 + $0x30] sm:$0xf]  ;;  %v2381_v21 = vld [vmem:[#allocation2 + $0x54] sm:$0xe] }
 0x1ab   : > { %v2521_v30 = vrot.slane %v6476_v3, 4  ;;  %v4095_v17 = vcombine.low %v2464_v44, %v2467_v52  ;;  %v6477_v39 = vmov %v6476_v3  ;;  %v4091_v44 = vcombine.low %v2365_v16, %v2375_v20  ;;  %v6108_v16 = vpop.permute.xlu1 %2690 }
 0x1ac   : > { %v2520_v47 = vsel %vm4572_vm9, %v3959_v24, %v6477_v39  ;;  %v2183_v31 = vsel %vm4582_vm10, %v2178_v59, %v2182_v50  ;;  %v4271_v24 = vld [vmem:[#allocation2 + $0x34] sm:$0xf]  ;;  %v3295_v51 = vsel %vm3256_vm14, %v3976_v34, %v5936_v27  ;;  %v3952_v35 = vrot.slane %v2380_v7, 9 }
 0x1ad   : > { %v2523_v9 = vsel %vm4572_vm9, %v2521_v30, %v6479_v42  ;;  %4121 = vmatprep.mubr.msk.bf16.mxu0 %vm3256_vm14, %v4095_v17  ;;  %v3968_v8 = vcombine.low %v4270_v55, %v4271_v24  ;;  %v4083_v52 = vcombine.low %v2173_v0, %v2183_v31  ;;  %v6480_v25 = vrot.slane %v5478_v43, 5  ;;  %3206 = vrot.lane.b32.xlu1 %v4091_v44, %s4355_s7  ;;  %v2382_v24 = vld [vmem:[#allocation2 + $0x60] sm:$0xe] }
 0x1ae   : > { %v4103_v18 = vcombine.low %v2520_v47, %v2523_v9  ;;  %3703 = vmatmul.mubr.bf16.gmra.mxu0 %v3481_v11  ;;  %v3331_v50 = vsel %vm3305_vm15, %v3295_v51, %v5952_v5  ;;  %v3960_v0 = vrot.slane %v2388_v33, 9  ;;  %v6481_v30 = vrot.slane %v5468_v49, 5  ;;  %v2389_v9 = vld [vmem:[#allocation2 + $0xb4] sm:$0xe]  ;;  %v2390_v51 = vld [vmem:[#allocation2 + $0xc0] sm:$0xe] }
 0x1af   : > { %v2472_v3 = vrot.slane %v6480_v25, 4  ;;  %v3271_v29 = vsel %vm3256_vm14, %v3968_v8, %v5945_v46  ;;  %3190 = vrot.lane.b32.xlu0 %v4083_v52, %s4355_s7  ;;  %v3364_v17 = vsel %vm3338_vm1, %v3331_v50, %v5979_v63  ;;  %v6482_v39 = vmov %v6480_v25  ;;  %v6139_v63 = vpop.permute.xlu0 %2674 }
 0x1b0   : > { %4129 = vmatprep.mubr.msk.bf16.mxu1 %vm3256_vm14, %v4103_v18  ;;  %v2528_v27 = vrot.slane %v6481_v30, 4  ;;  %v3315_v59 = vsel %vm3305_vm15, %v3271_v29, %v5962_v19  ;;  %v2471_v46 = vsel %vm4572_vm9, %v3952_v35, %v6482_v39  ;;  %v3953_v47 = vrot.slane %v2381_v21, 9 }
 0x1b1   : > { %3767 = vmatmul.mubr.bf16.gmra.mxu1 %v3505_v58  ;;  %v3348_v5 = vsel %vm3338_vm1, %v3315_v59, %v5994_v1  ;;  %v3397_v11 = vsel %vm3371_vm2, %v3364_v17, %v6002_v41  ;;  %v6483_v7 = vrot.slane %v6458_v13, 5  ;;  %v6484_v20 = vmov %v6481_v30  ;;  %v2391_v59 = vld [vmem:[#allocation2 + $0xcc] sm:$0xe] }
 0x1b2   : > { %v2527_v43 = vsel %vm4572_vm9, %v3960_v0, %v6484_v20  ;;  %v3381_v48 = vsel %vm3371_vm2, %v3348_v5, %v6008_v4  ;;  %v3430_v1 = vsel %vm3404_vm3, %v3397_v11, %v6017_v26  ;;  %v6485_v41 = vrot.slane %v6457_v60, 5  ;;  %v4272_v4 = vld [vmem:[#allocation2 + $0xbc] sm:$0x1] }
 0x1b3   : > { %v2474_v19 = vsel %vm4572_vm9, %v2472_v3, %v6483_v7  ;;  %v2480_v49 = vrot.slane %v5726_v23, 5  ;;  %v3414_v58 = vsel %vm3404_vm3, %v3381_v48, %v6037_v22  ;;  %v3463_v45 = vsel %vm3437_vm4, %v3430_v1, %v6050_v61  ;;  %v6160_v23 = vpop.permute.xlu1 %2770  ;;  %v2755_v21 = vpop.permute.xlu0 %2754  ;;  %v2383_v3 = vld [vmem:[#allocation2 + $0x6c] sm:$0xe] }
 0x1b4   : > { %v4096_v42 = vcombine.low %v2471_v46, %v2474_v19  ;;  %v2530_v13 = vsel %vm4572_vm9, %v2528_v27, %v6485_v41  ;;  %v2536_v34 = vrot.slane %v4272_v4, 5  ;;  %v2484_v26 = vrot.slane %v5842_v38, 5  ;;  %v6490_v41 = vld [vmem:[#allocation15_spill] sm:$0xff] }
 0x1b5   : > { %v4104_v15 = vcombine.low %v2527_v43, %v2530_v13  ;;  %v3447_v60 = vsel %vm3437_vm4, %v3414_v58, %v6063_v57  ;;  %v3508_v33 = vsel %vm3470_vm5, %v3463_v45, %v6069_v53  ;;  %v6486_v61 = vrot.slane %v5721_v36, 5 }
 0x1b6   : > { %4122 = vmatprep.mubr.msk.bf16.mxu0 %vm3256_vm14, %v4096_v42  ;;  %v3484_v22 = vsel %vm3470_vm5, %v3447_v60, %v3185_v6  ;;  %v3961_v57 = vrot.slane %v2389_v9, 9  ;;  %v2540_v18 = vrot.slane %v5923_v2, 5  ;;  %v6488_v53 = vrot.slane %v5712_v56, 5  ;;  %v6491_v9 = vld [vmem:[#allocation13_spill] sm:$0xff] }
 0x1b7   : > { %4130 = vmatprep.mubr.msk.bf16.mxu1 %vm3256_vm14, %v4104_v15  ;;  %v2478_v44 = vsel %vm4572_vm9, %v3953_v47, %v6486_v61  ;;  %v6487_v38 = vmov %v6486_v61  ;;  %3711 = vmatmul.mubr.bf16.gmra.mxu0 %v3484_v22  ;;  %v2487_v8 = vrot.slane %v5856_v28, 5  ;;  %v2543_v35 = vrot.slane %v5925_v37, 5  ;;  %v2867_v0 = vpop.permute.xlu1 %2866  ;;  %v2851_v19 = vpop.permute.xlu0 %2850  ;;  %v4274_v22 = vld [vmem:[#allocation2 + $0xa0] sm:$0xf] }
 0x1b8   : > { %v2479_v31 = vrot.slane %v6487_v38, 4  ;;  %v2535_v55 = vrot.slane %v6488_v53, 4  ;;  %v6489_v52 = vmov %v6488_v53  ;;  %v3954_v28 = vrot.slane %v2382_v24, 9  ;;  %v4275_v38 = vld [vmem:[#allocation2 + $0x3c] sm:$0xf] }
 0x1b9   : > { %v2534_v36 = vsel %vm4572_vm9, %v3961_v57, %v6489_v52  ;;  %3775 = vmatmul.mubr.bf16.gmra.mxu1 %v3508_v33  ;;  %v2486_v50 = vrot.slane %v2484_v26, 4  ;;  %v3962_v30 = vrot.slane %v2390_v51, 9  ;;  %v2542_v56 = vrot.slane %v2540_v18, 4  ;;  %v4273_v33 = vld [vmem:[#allocation2 + $0x9c] sm:$0xf] }
 0x1ba   : > { %v2481_v6 = vsel %vm4572_vm9, %v2479_v31, %v2480_v49  ;;  %v2537_v25 = vsel %vm4572_vm9, %v2535_v55, %v2536_v34  ;;  %v3979_v27 = vcombine.low %v5867_v54, %v5882_v40  ;;  %v2485_v37 = vsel %vm4572_vm9, %v3954_v28, %v2484_v26  ;;  %v4276_v31 = vld [vmem:[#allocation2 + $0x40] sm:$0xf] }
 0x1bb   : > { %v4097_v2 = vcombine.low %v2478_v44, %v2481_v6  ;;  %v4105_v29 = vcombine.low %v2534_v36, %v2537_v25  ;;  %v2488_v17 = vsel %vm4572_vm9, %v2486_v50, %v2487_v8  ;;  %v3971_v39 = vcombine.low %v5909_v14, %v5940_v62  ;;  %v2947_v58 = vpop.permute.xlu1 %2946  ;;  %v2931_v34 = vpop.permute.xlu0 %2930 }
 0x1bc   : > { %v3955_v46 = vrot.slane %v2383_v3, 9  ;;  %v4098_v47 = vcombine.low %v2485_v37, %v2488_v17  ;;  %v2541_v5 = vsel %vm4572_vm9, %v3962_v30, %v2540_v18  ;;  %v2544_v11 = vsel %vm4572_vm9, %v2542_v56, %v2543_v35  ;;  %v4277_v17 = vld [vmem:[#allocation2 + $0x48] sm:$0xf] }
 0x1bd   : > { %4123 = vmatprep.mubr.msk.bf16.mxu0 %vm3256_vm14, %v4097_v2  ;;  %4131 = vmatprep.mubr.msk.bf16.mxu1 %vm3256_vm14, %v4105_v29  ;;  %v2491_v7 = vrot.slane %v6035_v32, 5  ;;  %v4106_v20 = vcombine.low %v2541_v5, %v2544_v11  ;;  %v2494_v43 = vrot.slane %v6055_v12, 5  ;;  %v3963_v48 = vrot.slane %v2391_v59, 9 }
 0x1be   : > { %v2547_v13 = vrot.slane %v6490_v41, 5  ;;  %v2550_v49 = vrot.slane %v6491_v9, 5  ;;  %v3977_v61 = vcombine.low %v4273_v33, %v4274_v22  ;;  %v3969_v57 = vcombine.low %v4275_v38, %v4276_v31  ;;  %v6250_v41 = vld [vmem:[%s6405_s2] ss:$0 sm:$0xff] }
 0x1bf   : > { %v6201_v1 = vsel %vm4572_vm9, %v3955_v46, %v2491_v7  ;;  %v2493_v42 = vrot.slane %v2491_v7, 4  ;;  %v3027_v60 = vpop.permute.xlu1 %3026  ;;  %v3011_v44 = vpop.permute.xlu0 %3010  ;;  %v4278_v46 = vld [vmem:[#allocation2 + $0x4c] sm:$0xf] }
 0x1c0   : > { %v6211_v32 = vsel %vm4572_vm9, %v3963_v48, %v2547_v13  ;;  %v2549_v12 = vrot.slane %v2547_v13, 4  ;;  %v3298_v53 = vsel %vm3256_vm14, %v3977_v61, %v6108_v16  ;;  %v3274_v8 = vsel %vm3256_vm14, %v3969_v57, %v6139_v63 }
 0x1c1   : > { %v6207_v45 = vsel %vm4572_vm9, %v2493_v42, %v2494_v43  ;;  %v3333_v10 = vsel %vm3305_vm15, %v3298_v53, %v6160_v23  ;;  %v3317_v52 = vsel %vm3305_vm15, %v3274_v8, %v2755_v21  ;;  %v3970_v5 = vcombine.low %v4277_v17, %v4278_v46 }
 0x1c2   : > { %v4099_v15 = vcombine.low %v6201_v1, %v6207_v45  ;;  %v6217_v4 = vsel %vm4572_vm9, %v2549_v12, %v2550_v49  ;;  %v3366_v55 = vsel %vm3338_vm1, %v3333_v10, %v2867_v0  ;;  %v3350_v51 = vsel %vm3338_vm1, %v3317_v52, %v2851_v19 }
 0x1c3   : > { %v4107_v26 = vcombine.low %v6211_v32, %v6217_v4  ;;  %v3399_v6 = vsel %vm3371_vm2, %v3366_v55, %v2947_v58  ;;  %v3383_v2 = vsel %vm3371_vm2, %v3350_v51, %v2931_v34  ;;  %v4279_v34 = vld [vmem:[#allocation2 + $0xa8] sm:$0xf] }
 0x1c4   : > { %v3432_v36 = vsel %vm3404_vm3, %v3399_v6, %v3027_v60  ;;  %v3416_v25 = vsel %vm3404_vm3, %v3383_v2, %v3011_v44  ;;  %v4280_v60 = vld [vmem:[#allocation2 + $0xac] sm:$0xf] }
 0x1c5   : > { %v3123_v18 = vpop.permute.xlu1 %3122  ;;  %v3978_v33 = vcombine.low %v4279_v34, %v4280_v60 }
 0x1c6   : > { %v3465_v35 = vsel %vm3437_vm4, %v3432_v36, %v3123_v18 }
 0x1c7   : > { %v3107_v24 = vpop.permute.xlu0 %3106 }
 0x1c8   : > { %v3449_v63 = vsel %vm3437_vm4, %v3416_v25, %v3107_v24 }
 0x1ce   : > { %v3203_v16 = vpop.permute.xlu1 %3202 }
 0x1cf   : > { %v3511_v23 = vsel %vm3470_vm5, %v3465_v35, %v3203_v16 }
 0x1d0   : > { %3783 = vmatmul.mubr.bf16.gmra.mxu1 %v3511_v23 }
 0x1d1   : > { %4132 = vmatprep.mubr.msk.bf16.mxu1 %vm3256_vm14, %v4106_v20 }
 0x1d2   : > { %v3187_v3 = vpop.permute.xlu0 %3186  ;;  %v2693_v28 = vpop.permute.xlu1 %2692 }
 0x1d3   : > { %v3487_v21 = vsel %vm3470_vm5, %v3449_v63, %v3187_v3  ;;  %v3301_v53 = vsel %vm3256_vm14, %v3978_v33, %v2693_v28 }
 0x1d4   : > { %3719 = vmatmul.mubr.bf16.gmra.mxu0 %v3487_v21 }
 0x1d5   : > { %4124 = vmatprep.mubr.msk.bf16.mxu0 %vm3256_vm14, %v4098_v47 }
 0x1d6   : > { %v2677_v29 = vpop.permute.xlu0 %2676 }
 0x1d7   : > { %v2773_v0 = vpop.permute.xlu1 %2772  ;;  %v3277_v19 = vsel %vm3256_vm14, %v3970_v5, %v2677_v29 }
 0x1d8   : > { %v3335_v1 = vsel %vm3305_vm15, %v3301_v53, %v2773_v0 }
 0x1da   : > { %v2757_v50 = vpop.permute.xlu0 %2756 }
 0x1db   : > { %v2869_v56 = vpop.permute.xlu1 %2868  ;;  %v3319_v20 = vsel %vm3305_vm15, %v3277_v19, %v2757_v50 }
 0x1dc   : > { %v3368_v24 = vsel %vm3338_vm1, %v3335_v1, %v2869_v56 }
 0x1de   : > { %v2853_v30 = vpop.permute.xlu0 %2852 }
 0x1df   : > { %v3352_v47 = vsel %vm3338_vm1, %v3319_v20, %v2853_v30 }
 0x1e4   : > { %v2949_v11 = vpop.permute.xlu1 %2948 }
 0x1e5   : > { %v2933_v59 = vpop.permute.xlu0 %2932  ;;  %v3401_v8 = vsel %vm3371_vm2, %v3368_v24, %v2949_v11 }
 0x1e6   : > { %v3385_v43 = vsel %vm3371_vm2, %v3352_v47, %v2933_v59 }
 0x1e8   : > { %v3029_v48 = vpop.permute.xlu1 %3028 }
 0x1e9   : > { %v3013_v37 = vpop.permute.xlu0 %3012  ;;  %v3434_v6 = vsel %vm3404_vm3, %v3401_v8, %v3029_v48 }
 0x1ea   : > { %v3418_v42 = vsel %vm3404_vm3, %v3385_v43, %v3013_v37 }
 0x1ed   : > { %v3109_v7 = vpop.permute.xlu0 %3108 }
 0x1ee   : > { %v3451_v13 = vsel %vm3437_vm4, %v3418_v42, %v3109_v7 }
 0x1f2   : > { %v3680_v58 = vpop.f32.mrf.mxu0 }
 0x1f3   : > { %v3744_v12 = vpop.f32.mrf.mxu1  ;;  %v3681_v22 = vadd.f32 %v6250_v41, %v3680_v58 }
 0x1f4   : > { %v3189_v9 = vpop.permute.xlu0 %3188  ;;  %v3745_v61 = vadd.f32 %v6250_v41, %v3744_v12  ;;  %v3682_v44 = vpop.f32.mrf.mxu0 }
 0x1f5   : > { %v3490_v49 = vsel %vm3470_vm5, %v3451_v13, %v3189_v9  ;;  %v3746_v38 = vpop.f32.mrf.mxu1  ;;  %3807 = vst.msk [vmem:[%s6257_s30] sm:$0xff] %vm3305_vm15, %v3681_v22 }
 0x1f6   : > { %3727 = vmatmul.mubr.bf16.gmra.mxu0 %v3490_v49  ;;  %v3125_v31 = vpop.permute.xlu1 %3124  ;;  %3823 = vst.msk [vmem:[%s6257_s30 + $0x80] sm:$0xff] %vm3305_vm15, %v3745_v61  ;;  %v3683_v57 = vpop.f32.mrf.mxu0 }
 0x1f7   : > { %4125 = vmatprep.mubr.msk.bf16.mxu0 %vm3256_vm14, %v4099_v15  ;;  %v3747_v18 = vpop.f32.mrf.mxu1  ;;  %v3684_v10 = vadd.f32 %v6250_v41, %v3683_v57  ;;  %v3467_v52 = vsel %vm3437_vm4, %v3434_v6, %v3125_v31 }
 0x1f8   : > { %v3748_v55 = vadd.f32 %v6250_v41, %v3747_v18  ;;  %v3685_v45 = vpop.f32.mrf.mxu0 }
 0x1f9   : > { %v3749_v15 = vpop.f32.mrf.mxu1  ;;  %3808 = vst.msk [vmem:[%s6257_s30 + $0x8] sm:$0xff] %vm3305_vm15, %v3684_v10 }
 0x1fa   : > { %3824 = vst.msk [vmem:[%s6257_s30 + $0x88] sm:$0xff] %vm3305_vm15, %v3748_v55 }
 0x1ff   : > { %v3205_v36 = vpop.permute.xlu1 %3204 }
 0x200   : > { %v3514_v51 = vsel %vm3470_vm5, %v3467_v52, %v3205_v36 }
 0x201   : > { %3791 = vmatmul.mubr.bf16.gmra.mxu1 %v3514_v51 }
 0x202   : > { %4133 = vmatprep.mubr.msk.bf16.mxu1 %vm3256_vm14, %v4107_v26 }
 0x203   : > { %v2695_v35 = vpop.permute.xlu1 %2694 }
 0x204   : > { %v2679_v16 = vpop.permute.xlu0 %2678  ;;  %v3304_v59 = vsel %vm3256_vm14, %v3979_v27, %v2695_v35 }
 0x205   : > { %v3280_v17 = vsel %vm3256_vm14, %v3971_v39, %v2679_v16 }
 0x207   : > { %v2775_v2 = vpop.permute.xlu1 %2774 }
 0x208   : > { %v2759_v23 = vpop.permute.xlu0 %2758  ;;  %v3337_v46 = vsel %vm3305_vm15, %v3304_v59, %v2775_v2 }
 0x209   : > { %v3321_v5 = vsel %vm3305_vm15, %v3280_v17, %v2759_v23 }
 0x20b   : > { %v2871_v25 = vpop.permute.xlu1 %2870 }
 0x20c   : > { %v2855_v63 = vpop.permute.xlu0 %2854  ;;  %v3370_v11 = vsel %vm3338_vm1, %v3337_v46, %v2871_v25 }
 0x20d   : > { %v3354_v7 = vsel %vm3338_vm1, %v3321_v5, %v2855_v63 }
 0x211   : > { %v2951_v3 = vpop.permute.xlu1 %2950  ;;  %v3688_v29 = vpop.f32.mrf.mxu0 }
 0x212   : > { %v2935_v21 = vpop.permute.xlu0 %2934  ;;  %v3689_v28 = vadd.f32 %v6250_v41, %v3688_v29  ;;  %v3403_v19 = vsel %vm3371_vm2, %v3370_v11, %v2951_v3 }
 0x213   : > { %v3690_v50 = vpop.f32.mrf.mxu0  ;;  %v3387_v54 = vsel %vm3371_vm2, %v3354_v7, %v2935_v21 }
 0x214   : > { %3809 = vst.msk [vmem:[%s6257_s30 + $0x10] sm:$0xff] %vm3305_vm15, %v3689_v28 }
 0x215   : > { %v3031_v0 = vpop.permute.xlu1 %3030  ;;  %v3691_v32 = vpop.f32.mrf.mxu0 }
 0x216   : > { %v3015_v30 = vpop.permute.xlu0 %3014  ;;  %v3692_v4 = vadd.f32 %v6250_v41, %v3691_v32  ;;  %v3436_v40 = vsel %vm3404_vm3, %v3403_v19, %v3031_v0 }
 0x217   : > { %v3693_v26 = vpop.f32.mrf.mxu0  ;;  %v3420_v14 = vsel %vm3404_vm3, %v3387_v54, %v3015_v30 }
 0x218   : > { %3810 = vst.msk [vmem:[%s6257_s30 + $0x18] sm:$0xff] %vm3305_vm15, %v3692_v4 }
 0x219   : > { %v3127_v56 = vpop.permute.xlu1 %3126 }
 0x21a   : > { %v3111_v37 = vpop.permute.xlu0 %3110  ;;  %v3469_v62 = vsel %vm3437_vm4, %v3436_v40, %v3127_v56 }
 0x21b   : > { %v3453_v47 = vsel %vm3437_vm4, %v3420_v14, %v3111_v37 }
 0x21d   : > { %v3752_v27 = vpop.f32.mrf.mxu1 }
 0x21e   : > { %v3753_v20 = vadd.f32 %v6250_v41, %v3752_v27 }
 0x21f   : > { %v3207_v39 = vpop.permute.xlu1 %3206  ;;  %v3754_v42 = vpop.f32.mrf.mxu1 }
 0x220   : > { %v3517_v48 = vsel %vm3470_vm5, %v3469_v62, %v3207_v39  ;;  %3825 = vst.msk [vmem:[%s6257_s30 + $0x90] sm:$0xff] %vm3305_vm15, %v3753_v20 }
 0x221   : > { %v3191_v43 = vpop.permute.xlu0 %3190  ;;  %3799 = vmatmul.mubr.bf16.gmra.mxu1 %v3517_v48  ;;  %v3755_v9 = vpop.f32.mrf.mxu1 }
 0x222   : > { %v3493_v13 = vsel %vm3470_vm5, %v3453_v47, %v3191_v43  ;;  %v3756_v49 = vadd.f32 %v6250_v41, %v3755_v9 }
 0x223   : > { %3735 = vmatmul.mubr.bf16.gmra.mxu0 %v3493_v13  ;;  %v3757_v58 = vpop.f32.mrf.mxu1 }
 0x224   : > { %3826 = vst.msk [vmem:[%s6257_s30 + $0x98] sm:$0xff] %vm3305_vm15, %v3756_v49 }
 0x242   : > { %v3696_v12 = vpop.f32.mrf.mxu0 }
 0x243   : > { %v3697_v34 = vadd.f32 %v6250_v41, %v3696_v12  ;;  %v3760_v60 = vpop.f32.mrf.mxu1 }
 0x244   : > { %v3761_v33 = vadd.f32 %v6250_v41, %v3760_v60  ;;  %v3698_v22 = vpop.f32.mrf.mxu0 }
 0x245   : > { %3811 = vst.msk [vmem:[%s6257_s30 + $0x20] sm:$0xff] %vm3305_vm15, %v3697_v34  ;;  %v3762_v61 = vpop.f32.mrf.mxu1 }
 0x246   : > { %3827 = vst.msk [vmem:[%s6257_s30 + $0xa0] sm:$0xff] %vm3305_vm15, %v3761_v33  ;;  %v3699_v44 = vpop.f32.mrf.mxu0 }
 0x247   : > { %v3700_v38 = vadd.f32 %v6250_v41, %v3699_v44  ;;  %v3763_v31 = vpop.f32.mrf.mxu1 }
 0x248   : > { %v3764_v57 = vadd.f32 %v6250_v41, %v3763_v31  ;;  %v3701_v18 = vpop.f32.mrf.mxu0 }
 0x249   : > { %3812 = vst.msk [vmem:[%s6257_s30 + $0x28] sm:$0xff] %vm3305_vm15, %v3700_v38  ;;  %v3765_v53 = vpop.f32.mrf.mxu1 }
 0x24a   : > { %3828 = vst.msk [vmem:[%s6257_s30 + $0xa8] sm:$0xff] %vm3305_vm15, %v3764_v57 }
 0x26e   : > { %v3704_v10 = vpop.f32.mrf.mxu0 }
 0x26f   : > { %v3705_v55 = vadd.f32 %v6250_v41, %v3704_v10 }
 0x270   : > { %v3706_v45 = vpop.f32.mrf.mxu0 }
 0x271   : > { %v3768_v1 = vpop.f32.mrf.mxu1  ;;  %3813 = vst.msk [vmem:[%s6257_s30 + $0x30] sm:$0xff] %vm3305_vm15, %v3705_v55 }
 0x272   : > { %v3769_v15 = vadd.f32 %v6250_v41, %v3768_v1  ;;  %v3707_v8 = vpop.f32.mrf.mxu0 }
 0x273   : > { %v3770_v24 = vpop.f32.mrf.mxu1  ;;  %v3708_v6 = vadd.f32 %v6250_v41, %v3707_v8 }
 0x274   : > { %3829 = vst.msk [vmem:[%s6257_s30 + $0xb0] sm:$0xff] %vm3305_vm15, %v3769_v15  ;;  %v3709_v36 = vpop.f32.mrf.mxu0 }
 0x275   : > { %v3771_v52 = vpop.f32.mrf.mxu1  ;;  %3814 = vst.msk [vmem:[%s6257_s30 + $0x38] sm:$0xff] %vm3305_vm15, %v3708_v6 }
 0x276   : > { %v3772_v51 = vadd.f32 %v6250_v41, %v3771_v52 }
 0x277   : > { %v3773_v35 = vpop.f32.mrf.mxu1  ;;  %v3712_v16 = vpop.f32.mrf.mxu0 }
 0x278   : > { %3830 = vst.msk [vmem:[%s6257_s30 + $0xb8] sm:$0xff] %vm3305_vm15, %v3772_v51  ;;  %v3713_v2 = vadd.f32 %v6250_v41, %v3712_v16 }
 0x279   : > { %v3776_v23 = vpop.f32.mrf.mxu1  ;;  %v3714_v25 = vpop.f32.mrf.mxu0 }
 0x27a   : > { %3815 = vst.msk [vmem:[%s6257_s30 + $0x40] sm:$0xff] %vm3305_vm15, %v3713_v2  ;;  %v3777_v63 = vadd.f32 %v6250_v41, %v3776_v23 }
 0x27b   : > { %v3778_v3 = vpop.f32.mrf.mxu1  ;;  %v3715_v21 = vpop.f32.mrf.mxu0 }
 0x27c   : > { %3831 = vst.msk [vmem:[%s6257_s30 + $0xc0] sm:$0xff] %vm3305_vm15, %v3777_v63  ;;  %v3716_v29 = vadd.f32 %v6250_v41, %v3715_v21 }
 0x27d   : > { %v3779_v28 = vpop.f32.mrf.mxu1  ;;  %v3717_v50 = vpop.f32.mrf.mxu0 }
 0x27e   : > { %3816 = vst.msk [vmem:[%s6257_s30 + $0x48] sm:$0xff] %vm3305_vm15, %v3716_v29  ;;  %v3780_v0 = vadd.f32 %v6250_v41, %v3779_v28 }
 0x27f   : > { %v3781_v30 = vpop.f32.mrf.mxu1 }
 0x280   : > { %3832 = vst.msk [vmem:[%s6257_s30 + $0xc8] sm:$0xff] %vm3305_vm15, %v3780_v0 }
 0x290   : > { %v3784_v32 = vpop.f32.mrf.mxu1 }
 0x291   : > { %v3785_v4 = vadd.f32 %v6250_v41, %v3784_v32 }
 0x292   : > { %v3786_v26 = vpop.f32.mrf.mxu1 }
 0x293   : > { %3833 = vst.msk [vmem:[%s6257_s30 + $0xd0] sm:$0xff] %vm3305_vm15, %v3785_v4 }
 0x294   : > { %v3720_v56 = vpop.f32.mrf.mxu0  ;;  %v3787_v37 = vpop.f32.mrf.mxu1 }
 0x295   : > { %v3721_v59 = vadd.f32 %v6250_v41, %v3720_v56  ;;  %v3788_v46 = vadd.f32 %v6250_v41, %v3787_v37 }
 0x296   : > { %v3722_v17 = vpop.f32.mrf.mxu0  ;;  %v3789_v5 = vpop.f32.mrf.mxu1 }
 0x297   : > { %3817 = vst.msk [vmem:[%s6257_s30 + $0x50] sm:$0xff] %vm3305_vm15, %v3721_v59  ;;  %3834 = vst.msk [vmem:[%s6257_s30 + $0xd8] sm:$0xff] %vm3305_vm15, %v3788_v46 }
 0x298   : > { %v3723_v11 = vpop.f32.mrf.mxu0 }
 0x299   : > { %v3724_v7 = vadd.f32 %v6250_v41, %v3723_v11 }
 0x29a   : > { %v3725_v19 = vpop.f32.mrf.mxu0 }
 0x29b   : > { %3818 = vst.msk [vmem:[%s6257_s30 + $0x58] sm:$0xff] %vm3305_vm15, %v3724_v7 }
 0x2b6   : > { %v3728_v54 = vpop.f32.mrf.mxu0 }
 0x2b7   : > { %v3729_v40 = vadd.f32 %v6250_v41, %v3728_v54 }
 0x2b8   : > { %v3730_v27 = vpop.f32.mrf.mxu0 }
 0x2b9   : > { %3819 = vst.msk [vmem:[%s6257_s30 + $0x60] sm:$0xff] %vm3305_vm15, %v3729_v40 }
 0x2ba   : > { %v3731_v14 = vpop.f32.mrf.mxu0 }
 0x2bb   : > { %v3732_v62 = vadd.f32 %v6250_v41, %v3731_v14 }
 0x2bc   : > { %v3733_v39 = vpop.f32.mrf.mxu0 }
 0x2bd   : > { %3820 = vst.msk [vmem:[%s6257_s30 + $0x68] sm:$0xff] %vm3305_vm15, %v3732_v62 }
 0x2c1   : > { %v3792_v20 = vpop.f32.mrf.mxu1 }
 0x2c2   : > { %v3793_v47 = vadd.f32 %v6250_v41, %v3792_v20 }
 0x2c3   : > { %v3794_v43 = vpop.f32.mrf.mxu1 }
 0x2c4   : > { %3835 = vst.msk [vmem:[%s6257_s30 + $0xe0] sm:$0xff] %vm3305_vm15, %v3793_v47 }
 0x2c5   : > { %v3795_v48 = vpop.f32.mrf.mxu1 }
 0x2c6   : > { %v3796_v42 = vadd.f32 %v6250_v41, %v3795_v48 }
 0x2c7   : > { %v3797_v13 = vpop.f32.mrf.mxu1 }
 0x2c8   : > { %3836 = vst.msk [vmem:[%s6257_s30 + $0xe8] sm:$0xff] %vm3305_vm15, %v3796_v42 }
 0x2e1   : > { %v3800_v9 = vpop.f32.mrf.mxu1 }
 0x2e2   : > { %v3801_v58 = vadd.f32 %v6250_v41, %v3800_v9 }
 0x2e3   : > { %v3736_v49 = vpop.f32.mrf.mxu0  ;;  %v3802_v34 = vpop.f32.mrf.mxu1 }
 0x2e4   : > { %v3737_v12 = vadd.f32 %v6250_v41, %v3736_v49  ;;  %3837 = vst.msk [vmem:[%s6257_s30 + $0xf0] sm:$0xff] %vm3305_vm15, %v3801_v58 }
 0x2e5   : > { %v3738_v60 = vpop.f32.mrf.mxu0  ;;  %v3803_v33 = vpop.f32.mrf.mxu1 }
 0x2e6   : > { %3821 = vst.msk [vmem:[%s6257_s30 + $0x70] sm:$0xff] %vm3305_vm15, %v3737_v12  ;;  %v3804_v61 = vadd.f32 %v6250_v41, %v3803_v33 }
 0x2e7   : > { %v3739_v22 = vpop.f32.mrf.mxu0  ;;  %v3805_v38 = vpop.f32.mrf.mxu1 }
 0x2e8   : > { %v3740_v44 = vadd.f32 %v6250_v41, %v3739_v22  ;;  %3838 = vst.msk [vmem:[%s6257_s30 + $0xf8] sm:$0xff] %vm3305_vm15, %v3804_v61 }
 0x2e9   : > { %v3741_v31 = vpop.f32.mrf.mxu0 }
 0x2ea   : > { %3822 = vst.msk [vmem:[%s6257_s30 + $0x78] sm:$0xff] %vm3305_vm15, %v3740_v44 }
 0x2eb PF: > { %p13_p9 = scmp.ge.s32.totalorder %s4398_s17, 4   ;;  %s6492_s12 = smov %s4335_s13 }
 0x2ec   : > { %s6493_s13 = smov %s4339_s14  ;;  %s6494_s14 = smov %s4408_s20 }
 0x2ed   : > { %s6495_s15 = smov %s4398_s17  ;;  %15 = sbr.rel (!%p13_p9) target bundleno = 3 (0x3), region = 74 }
 0x2f2   :  { %3860 = vsyncpa [#allocation4], 1 }
 0x2f3   :  { %3862 = vsyncpa [#allocation4 + $0x1], 1 }

</bundles_post_ra>
